<compile_context>
chip_gen: v7x
topology: tpu7x:2x2x1
jax: 0.10.0
libtpu: 0.0.40
codegen_flags: <defaults>
</compile_context>

<pallas_src>
import jax
import jax.numpy as jnp
import numpy as np
from jax import lax
from jax.experimental import pallas as pl
from jax.experimental.pallas import tpu as pltpu


# --------------------------- Fused forward kernel ----------------------------
def bilstm_fused_kernel(ids_ref, emb_ref, lstm_ref, head_ref, o_ref):
    V, E = emb_ref.shape
    H8 = lstm_ref.shape[1]
    H = H8 // 8
    B, C = o_ref.shape
    TB = ids_ref.shape[0]
    T = TB // B
    H2, H3, H4, H5, H6, H7 = 2 * H, 3 * H, 4 * H, 5 * H, 6 * H, 7 * H

    # ---- embedding lookup fused as a one-hot matmul (time-major rows) --------
    ids = ids_ref[...]                                        # (T*B, 1) int32
    iota = lax.broadcasted_iota(jnp.int32, (TB, V), 1)
    onehot = (ids == iota).astype(jnp.float32)                # (T*B, V)
    x2d = jnp.dot(onehot, emb_ref[...],
                  preferred_element_type=jnp.float32)         # (T*B, E)
    # dropout(p=0.5) after the embedding: identity in eval mode

    def run_layer(xp, whh, collect):
        """One bidirectional LSTM layer over hoisted projections xp (T*B, 8H).

        Column layout of xp / gates: [i_f f_f g_f o_f | i_b f_b g_b o_b], H each.
        The backward direction simply walks time in reverse (tb = T-1-s).
        """
        h_cat = jnp.zeros((B, H2), jnp.float32)               # [h_fwd | h_bwd]
        c_f = jnp.zeros((B, H), jnp.float32)
        c_b = jnp.zeros((B, H), jnp.float32)
        outs_f, outs_b = [], []
        for s in range(T):                                    # fully unrolled
            tf, tb = s, T - 1 - s
            # fwd gate columns come from time tf, bwd gate columns from time tb.
            pre = jnp.concatenate(
                [xp[tf * B:(tf + 1) * B, 0:H4],
                 xp[tb * B:(tb + 1) * B, H4:H8]], axis=1)      # (B, 8H)
            # ONE recurrent matmul per step for both directions (block-diag W_hh).
            gates = pre + jnp.dot(h_cat, whh,
                                  preferred_element_type=jnp.float32)
            sg = jax.nn.sigmoid(gates)                        # whole-tile activate,
            tg = jnp.tanh(gates)                              # slice afterwards
            # gate order per direction: i, f, g, o
            c_f = sg[:, H:H2] * c_f + sg[:, 0:H] * tg[:, H2:H3]
            c_b = sg[:, H5:H6] * c_b + sg[:, H4:H5] * tg[:, H6:H7]
            h_f = sg[:, H3:H4] * jnp.tanh(c_f)
            h_b = sg[:, H7:H8] * jnp.tanh(c_b)
            h_cat = jnp.concatenate([h_f, h_b], axis=1)
            if collect:
                outs_f.append(h_f)                            # time index tf
                outs_b.append(h_b)                            # time index tb
        return h_cat, outs_f, outs_b

    # ---- layer 0: hoisted input projection (one matmul over all T steps) -----
    xp0 = (jnp.dot(x2d, lstm_ref[0:E, :],
                   preferred_element_type=jnp.float32)
           + lstm_ref[E + H6:E + H6 + 1, :])                  # (T*B, 8H)
    hn0, outs_f, outs_b = run_layer(xp0, lstm_ref[E:E + H2, :], collect=True)

    # ---- layer 1: sequence stays register-resident, projections hoisted ------
    seq_f = jnp.concatenate(outs_f, axis=0)                   # (T*B, H) time order
    seq_b = jnp.concatenate(outs_b[::-1], axis=0)             # (T*B, H) time order
    xp1 = (jnp.dot(seq_f, lstm_ref[E + H2:E + H3, :],
                   preferred_element_type=jnp.float32)
           + jnp.dot(seq_b, lstm_ref[E + H3:E + H4, :],
                     preferred_element_type=jnp.float32)
           + lstm_ref[E + H6 + 1:E + H6 + 2, :])              # (T*B, 8H)
    hn1, _, _ = run_layer(xp1, lstm_ref[E + H4:E + H6, :], collect=False)

    # ---- head: pool over [l0f,l0b,l1f,l1b], LayerNorm, fc+tanh, out ----------
    m = jnp.maximum(hn0, hn1)
    x1 = jnp.maximum(m[:, 0:H], m[:, H:H2])                   # max_pool1d(k=4)
    sm = hn0 + hn1
    x2 = (sm[:, 0:H] + sm[:, H:H2]) * 0.25                    # avg_pool1d(k=4)
    xcat = jnp.concatenate([x1, x2], axis=1)                  # (B, 2H)
    mu = jnp.mean(xcat, axis=-1, keepdims=True)
    var = jnp.mean((xcat - mu) ** 2, axis=-1, keepdims=True)
    xn = ((xcat - mu) * lax.rsqrt(var + 1e-5)
          * head_ref[0:1, :] + head_ref[1:2, :])              # LayerNorm(2H)
    hidden = jnp.tanh(
        jnp.dot(xn, head_ref[2:2 + H2, 0:H],
                preferred_element_type=jnp.float32)
        + head_ref[2 + H2:3 + H2, 0:H])
    # dropout before `out`: identity in eval mode
    o_ref[...] = (jnp.dot(hidden, head_ref[3 + H2:3 + H2 + H, 0:C],
                          preferred_element_type=jnp.float32)
                  + head_ref[3 + H2 + H:4 + H2 + H, 0:C])


# --------------------------- Host-side param packing -------------------------
def _pack_params(params, E, H):
    """Pack the 16 LSTM/head tensors into two lane-friendly VMEM slabs."""
    lstm = params["lstm"]
    H4 = 4 * H
    z = jnp.zeros((H, H4), jnp.float32)

    def fuse_ih(l):                                   # (D, 8H) = [fwd | bwd] gates
        return jnp.concatenate([lstm[(l, 0)][0], lstm[(l, 1)][0]], axis=1)

    def fuse_hh(l):                                   # (2H, 8H) block-diagonal
        top = jnp.concatenate([lstm[(l, 0)][1], z], axis=1)
        bot = jnp.concatenate([z, lstm[(l, 1)][1]], axis=1)
        return jnp.concatenate([top, bot], axis=0)

    def fuse_b(l):                                    # (1, 8H)
        return jnp.concatenate([lstm[(l, 0)][2], lstm[(l, 1)][2]], axis=1)

    lstm_slab = jnp.concatenate(
        [fuse_ih(0), fuse_hh(0), fuse_ih(1), fuse_hh(1), fuse_b(0), fuse_b(1)],
        axis=0)                                       # (E + 6H + 2, 8H)

    W = 2 * H

    def pad(a):
        return jnp.pad(a, ((0, 0), (0, W - a.shape[1])))

    head_slab = jnp.concatenate(
        [params["ln_g"], params["ln_b"],
         pad(params["fc_w"]), pad(params["fc_b"]),
         pad(params["out_w"]), pad(params["out_b"])], axis=0)   # (4 + 3H, 2H)
    return lstm_slab, head_slab


def forward(token_ids, params, num_layers=2):
    assert num_layers == 2, "fused kernel is specialized for num_layers=2"
    emb_tbl = params["embedding"]                       # (V, E)
    V, E = emb_tbl.shape
    B, T = token_ids.shape
    H = params["lstm"][(0, 0)][1].shape[0]
    C = params["out_w"].shape[1]

    lstm_slab, head_slab = _pack_params(params, E, H)
    ids2d = token_ids.T.reshape(T * B, 1).astype(jnp.int32)   # time-major ids

    vm = pl.BlockSpec(memory_space=pltpu.MemorySpace.VMEM)
    return pl.pallas_call(
        bilstm_fused_kernel,
        out_shape=jax.ShapeDtypeStruct((B, C), jnp.float32),
        in_specs=[vm, vm, vm, vm],
        out_specs=vm,
    )(ids2d, emb_tbl, lstm_slab, head_slab)


# --------------------------- Pure-JAX reference ------------------------------
def lstm_layer_ref(x, wih, whh, b):
    H = whh.shape[0]
    B = x.shape[1]

    def step(carry, xt):
        h, c = carry
        gates = xt @ wih + h @ whh + b
        i = jax.nn.sigmoid(gates[:, :H])
        f = jax.nn.sigmoid(gates[:, H:2 * H])
        g = jnp.tanh(gates[:, 2 * H:3 * H])
        o = jax.nn.sigmoid(gates[:, 3 * H:])
        c = f * c + i * g
        h = o * jnp.tanh(c)
        return (h, c), h

    (h, _), out = lax.scan(step, (jnp.zeros((B, H)), jnp.zeros((B, H))), x)
    return out, h


def forward_ref(token_ids, params, num_layers=2):
    x = jnp.take(params["embedding"], token_ids, axis=0)
    x = jnp.transpose(x, (1, 0, 2))
    hns = []
    layer_in = x
    for l in range(num_layers):
        wih_f, whh_f, b_f = params["lstm"][(l, 0)]
        wih_b, whh_b, b_b = params["lstm"][(l, 1)]
        out_f, hn_f = lstm_layer_ref(layer_in, wih_f, whh_f, b_f)
        out_b_rev, hn_b = lstm_layer_ref(layer_in[::-1], wih_b, whh_b, b_b)
        out_b = out_b_rev[::-1]
        layer_in = jnp.concatenate([out_f, out_b], axis=-1)
        hns += [hn_f, hn_b]
    hn = jnp.stack(hns, axis=0)
    x1 = jnp.max(hn, axis=0)
    x2 = jnp.mean(hn, axis=0)
    x = jnp.concatenate([x1, x2], axis=-1)
    mu = jnp.mean(x, axis=-1, keepdims=True)
    var = jnp.mean((x - mu) ** 2, axis=-1, keepdims=True)
    xn = (x - mu) * lax.rsqrt(var + 1e-5) * params["ln_g"] + params["ln_b"]
    h = jnp.tanh(xn @ params["fc_w"] + params["fc_b"])
    return h @ params["out_w"] + params["out_b"]


# ------------------------------ Parameters -----------------------------------
def init_params(key, vocab, E, H, C, num_layers):
    keys = iter(jax.random.split(key, 64))
    p = {}
    p["embedding"] = 0.1 * jax.random.normal(next(keys), (vocab, E), jnp.float32)
    k = 1.0 / np.sqrt(H)
    lstm = {}
    for l in range(num_layers):
        D = E if l == 0 else 2 * H
        for d in range(2):  # 0 = forward, 1 = backward
            wih = jax.random.uniform(next(keys), (D, 4 * H), jnp.float32, -k, k)
            whh = jax.random.uniform(next(keys), (H, 4 * H), jnp.float32, -k, k)
            # single combined bias (= b_ih + b_hh when loading a PyTorch ckpt)
            b = jax.random.uniform(next(keys), (1, 4 * H), jnp.float32, -k, k)
            lstm[(l, d)] = (wih, whh, b)
    p["lstm"] = lstm
    p["ln_g"] = jnp.ones((1, 2 * H), jnp.float32)
    p["ln_b"] = jnp.zeros((1, 2 * H), jnp.float32)
    kf = 1.0 / np.sqrt(2 * H)
    p["fc_w"] = jax.random.uniform(next(keys), (2 * H, H), jnp.float32, -kf, kf)
    p["fc_b"] = jax.random.uniform(next(keys), (1, H), jnp.float32, -kf, kf)
    ko = 1.0 / np.sqrt(H)
    p["out_w"] = jax.random.uniform(next(keys), (H, C), jnp.float32, -ko, ko)
    p["out_b"] = jax.random.uniform(next(keys), (1, C), jnp.float32, -ko, ko)
    return p


if __name__ == "__main__":
    VOCAB, E, H, T, C, B, NL = 50, 16, 32, 8, 4, 2, 2
    key = jax.random.PRNGKey(0)
    kp, kx = jax.random.split(key)
    params = init_params(kp, VOCAB, E, H, C, NL)
    token_ids = jax.random.randint(kx, (B, T), 1, VOCAB, dtype=jnp.int32)

    # TODO(synk): attention branch (is_add_att=True) is not implemented; this kernel
    # covers the default is_add_att=False forward path in eval mode (dropout = id).
    logits = jax.block_until_ready(forward(token_ids, params, NL))
    ref = jax.block_until_ready(forward_ref(token_ids, params, NL))
    np.testing.assert_allclose(np.asarray(logits), np.asarray(ref),
                               atol=2e-3, rtol=2e-3)
    print("KERNEL_OK")
</pallas_src>

<mosaic_0001>
module attributes {stable_mosaic.version = 11 : i64} {
  func.func @bilstm_fused_kernel(%arg0: memref<16x1xi32, #tpu.memory_space<vmem>>, %arg1: memref<50x16xf32, #tpu.memory_space<vmem>>, %arg2: memref<210x256xf32, #tpu.memory_space<vmem>>, %arg3: memref<100x64xf32, #tpu.memory_space<vmem>>, %arg4: memref<2x4xf32, #tpu.memory_space<vmem>>) attributes {dimension_semantics = [], scalar_prefetch = 0 : i64, scratch_operands = 0 : i64, tpu.core_type = #tpu.core_type<tc>} {
    %c0 = arith.constant 0 : index
    %c0_0 = arith.constant 0 : index
    %0 = vector.load %arg0[%c0, %c0_0] : memref<16x1xi32, #tpu.memory_space<vmem>>, vector<16x1xi32>
    %1 = tpu.iota {dimensions = array<i32: 1>} : vector<16x50xi32>
    %2 = vector.broadcast %0 : vector<16x1xi32> to vector<16x50xi32>
    %3 = arith.cmpi eq, %2, %1 : vector<16x50xi32>
    %4 = arith.extui %3 : vector<16x50xi1> to vector<16x50xi32>
    %5 = arith.sitofp %4 : vector<16x50xi32> to vector<16x50xf32>
    %c0_1 = arith.constant 0 : index
    %c0_2 = arith.constant 0 : index
    %6 = vector.load %arg1[%c0_1, %c0_2] : memref<50x16xf32, #tpu.memory_space<vmem>>, vector<50x16xf32>
    %cst = arith.constant dense<0.000000e+00> : vector<16x16xf32>
    %7 = tpu.matmul %5, %6, %cst {dimension_numbers = #tpu.dot_dimension_numbers<[1], [0], [0], [1], [0, 0, 1, 1], [], []>} : vector<16x50xf32>, vector<50x16xf32>, vector<16x16xf32> -> vector<16x16xf32>
    %c0_3 = arith.constant 0 : index
    %c0_4 = arith.constant 0 : index
    %8 = vector.load %arg2[%c0_3, %c0_4] : memref<210x256xf32, #tpu.memory_space<vmem>>, vector<16x256xf32>
    %cst_5 = arith.constant dense<0.000000e+00> : vector<16x256xf32>
    %9 = tpu.matmul %7, %8, %cst_5 {dimension_numbers = #tpu.dot_dimension_numbers<[1], [0], [0], [1], [0, 0, 1, 1], [], []>} : vector<16x16xf32>, vector<16x256xf32>, vector<16x256xf32> -> vector<16x256xf32>
    %c208 = arith.constant 208 : index
    %c0_6 = arith.constant 0 : index
    %10 = vector.load %arg2[%c208, %c0_6] : memref<210x256xf32, #tpu.memory_space<vmem>>, vector<1x256xf32>
    %11 = vector.broadcast %10 : vector<1x256xf32> to vector<16x256xf32>
    %12 = arith.addf %9, %11 : vector<16x256xf32>
    %c16 = arith.constant 16 : index
    %c0_7 = arith.constant 0 : index
    %13 = vector.load %arg2[%c16, %c0_7] : memref<210x256xf32, #tpu.memory_space<vmem>>, vector<64x256xf32>
    %cst_8 = arith.constant 0.000000e+00 : f32
    %14 = vector.broadcast %cst_8 : f32 to vector<2x64xf32>
    %cst_9 = arith.constant 0.000000e+00 : f32
    %15 = vector.broadcast %cst_9 : f32 to vector<2x32xf32>
    %cst_10 = arith.constant 0.000000e+00 : f32
    %16 = vector.broadcast %cst_10 : f32 to vector<2x32xf32>
    %17 = vector.extract_strided_slice %12 {offsets = [0, 0], sizes = [2, 128], strides = [1, 1]} : vector<16x256xf32> to vector<2x128xf32>
    %18 = vector.extract_strided_slice %12 {offsets = [14, 128], sizes = [2, 128], strides = [1, 1]} : vector<16x256xf32> to vector<2x128xf32>
    %19 = tpu.concatenate %17, %18 in 1 : vector<2x128xf32>, vector<2x128xf32> -> vector<2x256xf32>
    %cst_11 = arith.constant dense<0.000000e+00> : vector<2x256xf32>
    %20 = tpu.matmul %14, %13, %cst_11 {dimension_numbers = #tpu.dot_dimension_numbers<[1], [0], [0], [1], [0, 0, 1, 1], [], []>} : vector<2x64xf32>, vector<64x256xf32>, vector<2x256xf32> -> vector<2x256xf32>
    %21 = arith.addf %19, %20 : vector<2x256xf32>
    %22 = arith.negf %21 : vector<2x256xf32>
    %23 = math.exp %22 : vector<2x256xf32>
    %cst_12 = arith.constant 1.000000e+00 : f32
    %24 = vector.broadcast %cst_12 : f32 to vector<2x256xf32>
    %25 = arith.addf %24, %23 : vector<2x256xf32>
    %26 = arith.divf %24, %25 : vector<2x256xf32>
    %27 = math.tanh %21 : vector<2x256xf32>
    %28 = vector.extract_strided_slice %26 {offsets = [0, 32], sizes = [2, 32], strides = [1, 1]} : vector<2x256xf32> to vector<2x32xf32>
    %29 = arith.mulf %28, %15 : vector<2x32xf32>
    %30 = vector.extract_strided_slice %26 {offsets = [0, 0], sizes = [2, 32], strides = [1, 1]} : vector<2x256xf32> to vector<2x32xf32>
    %31 = vector.extract_strided_slice %27 {offsets = [0, 64], sizes = [2, 32], strides = [1, 1]} : vector<2x256xf32> to vector<2x32xf32>
    %32 = arith.mulf %30, %31 : vector<2x32xf32>
    %33 = arith.addf %29, %32 : vector<2x32xf32>
    %34 = vector.extract_strided_slice %26 {offsets = [0, 160], sizes = [2, 32], strides = [1, 1]} : vector<2x256xf32> to vector<2x32xf32>
    %35 = arith.mulf %34, %16 : vector<2x32xf32>
    %36 = vector.extract_strided_slice %26 {offsets = [0, 128], sizes = [2, 32], strides = [1, 1]} : vector<2x256xf32> to vector<2x32xf32>
    %37 = vector.extract_strided_slice %27 {offsets = [0, 192], sizes = [2, 32], strides = [1, 1]} : vector<2x256xf32> to vector<2x32xf32>
    %38 = arith.mulf %36, %37 : vector<2x32xf32>
    %39 = arith.addf %35, %38 : vector<2x32xf32>
    %40 = vector.extract_strided_slice %26 {offsets = [0, 96], sizes = [2, 32], strides = [1, 1]} : vector<2x256xf32> to vector<2x32xf32>
    %41 = math.tanh %33 : vector<2x32xf32>
    %42 = arith.mulf %40, %41 : vector<2x32xf32>
    %43 = vector.extract_strided_slice %26 {offsets = [0, 224], sizes = [2, 32], strides = [1, 1]} : vector<2x256xf32> to vector<2x32xf32>
    %44 = math.tanh %39 : vector<2x32xf32>
    %45 = arith.mulf %43, %44 : vector<2x32xf32>
    %46 = tpu.concatenate %42, %45 in 1 : vector<2x32xf32>, vector<2x32xf32> -> vector<2x64xf32>
    %47 = vector.extract_strided_slice %12 {offsets = [2, 0], sizes = [2, 128], strides = [1, 1]} : vector<16x256xf32> to vector<2x128xf32>
    %48 = vector.extract_strided_slice %12 {offsets = [12, 128], sizes = [2, 128], strides = [1, 1]} : vector<16x256xf32> to vector<2x128xf32>
    %49 = tpu.concatenate %47, %48 in 1 : vector<2x128xf32>, vector<2x128xf32> -> vector<2x256xf32>
    %cst_13 = arith.constant dense<0.000000e+00> : vector<2x256xf32>
    %50 = tpu.matmul %46, %13, %cst_13 {dimension_numbers = #tpu.dot_dimension_numbers<[1], [0], [0], [1], [0, 0, 1, 1], [], []>} : vector<2x64xf32>, vector<64x256xf32>, vector<2x256xf32> -> vector<2x256xf32>
    %51 = arith.addf %49, %50 : vector<2x256xf32>
    %52 = arith.negf %51 : vector<2x256xf32>
    %53 = math.exp %52 : vector<2x256xf32>
    %cst_14 = arith.constant 1.000000e+00 : f32
    %54 = vector.broadcast %cst_14 : f32 to vector<2x256xf32>
    %55 = arith.addf %54, %53 : vector<2x256xf32>
    %56 = arith.divf %54, %55 : vector<2x256xf32>
    %57 = math.tanh %51 : vector<2x256xf32>
    %58 = vector.extract_strided_slice %56 {offsets = [0, 32], sizes = [2, 32], strides = [1, 1]} : vector<2x256xf32> to vector<2x32xf32>
    %59 = arith.mulf %58, %33 : vector<2x32xf32>
    %60 = vector.extract_strided_slice %56 {offsets = [0, 0], sizes = [2, 32], strides = [1, 1]} : vector<2x256xf32> to vector<2x32xf32>
    %61 = vector.extract_strided_slice %57 {offsets = [0, 64], sizes = [2, 32], strides = [1, 1]} : vector<2x256xf32> to vector<2x32xf32>
    %62 = arith.mulf %60, %61 : vector<2x32xf32>
    %63 = arith.addf %59, %62 : vector<2x32xf32>
    %64 = vector.extract_strided_slice %56 {offsets = [0, 160], sizes = [2, 32], strides = [1, 1]} : vector<2x256xf32> to vector<2x32xf32>
    %65 = arith.mulf %64, %39 : vector<2x32xf32>
    %66 = vector.extract_strided_slice %56 {offsets = [0, 128], sizes = [2, 32], strides = [1, 1]} : vector<2x256xf32> to vector<2x32xf32>
    %67 = vector.extract_strided_slice %57 {offsets = [0, 192], sizes = [2, 32], strides = [1, 1]} : vector<2x256xf32> to vector<2x32xf32>
    %68 = arith.mulf %66, %67 : vector<2x32xf32>
    %69 = arith.addf %65, %68 : vector<2x32xf32>
    %70 = vector.extract_strided_slice %56 {offsets = [0, 96], sizes = [2, 32], strides = [1, 1]} : vector<2x256xf32> to vector<2x32xf32>
    %71 = math.tanh %63 : vector<2x32xf32>
    %72 = arith.mulf %70, %71 : vector<2x32xf32>
    %73 = vector.extract_strided_slice %56 {offsets = [0, 224], sizes = [2, 32], strides = [1, 1]} : vector<2x256xf32> to vector<2x32xf32>
    %74 = math.tanh %69 : vector<2x32xf32>
    %75 = arith.mulf %73, %74 : vector<2x32xf32>
    %76 = tpu.concatenate %72, %75 in 1 : vector<2x32xf32>, vector<2x32xf32> -> vector<2x64xf32>
    %77 = vector.extract_strided_slice %12 {offsets = [4, 0], sizes = [2, 128], strides = [1, 1]} : vector<16x256xf32> to vector<2x128xf32>
    %78 = vector.extract_strided_slice %12 {offsets = [10, 128], sizes = [2, 128], strides = [1, 1]} : vector<16x256xf32> to vector<2x128xf32>
    %79 = tpu.concatenate %77, %78 in 1 : vector<2x128xf32>, vector<2x128xf32> -> vector<2x256xf32>
    %cst_15 = arith.constant dense<0.000000e+00> : vector<2x256xf32>
    %80 = tpu.matmul %76, %13, %cst_15 {dimension_numbers = #tpu.dot_dimension_numbers<[1], [0], [0], [1], [0, 0, 1, 1], [], []>} : vector<2x64xf32>, vector<64x256xf32>, vector<2x256xf32> -> vector<2x256xf32>
    %81 = arith.addf %79, %80 : vector<2x256xf32>
    %82 = arith.negf %81 : vector<2x256xf32>
    %83 = math.exp %82 : vector<2x256xf32>
    %cst_16 = arith.constant 1.000000e+00 : f32
    %84 = vector.broadcast %cst_16 : f32 to vector<2x256xf32>
    %85 = arith.addf %84, %83 : vector<2x256xf32>
    %86 = arith.divf %84, %85 : vector<2x256xf32>
    %87 = math.tanh %81 : vector<2x256xf32>
    %88 = vector.extract_strided_slice %86 {offsets = [0, 32], sizes = [2, 32], strides = [1, 1]} : vector<2x256xf32> to vector<2x32xf32>
    %89 = arith.mulf %88, %63 : vector<2x32xf32>
    %90 = vector.extract_strided_slice %86 {offsets = [0, 0], sizes = [2, 32], strides = [1, 1]} : vector<2x256xf32> to vector<2x32xf32>
    %91 = vector.extract_strided_slice %87 {offsets = [0, 64], sizes = [2, 32], strides = [1, 1]} : vector<2x256xf32> to vector<2x32xf32>
    %92 = arith.mulf %90, %91 : vector<2x32xf32>
    %93 = arith.addf %89, %92 : vector<2x32xf32>
    %94 = vector.extract_strided_slice %86 {offsets = [0, 160], sizes = [2, 32], strides = [1, 1]} : vector<2x256xf32> to vector<2x32xf32>
    %95 = arith.mulf %94, %69 : vector<2x32xf32>
    %96 = vector.extract_strided_slice %86 {offsets = [0, 128], sizes = [2, 32], strides = [1, 1]} : vector<2x256xf32> to vector<2x32xf32>
    %97 = vector.extract_strided_slice %87 {offsets = [0, 192], sizes = [2, 32], strides = [1, 1]} : vector<2x256xf32> to vector<2x32xf32>
    %98 = arith.mulf %96, %97 : vector<2x32xf32>
    %99 = arith.addf %95, %98 : vector<2x32xf32>
    %100 = vector.extract_strided_slice %86 {offsets = [0, 96], sizes = [2, 32], strides = [1, 1]} : vector<2x256xf32> to vector<2x32xf32>
    %101 = math.tanh %93 : vector<2x32xf32>
    %102 = arith.mulf %100, %101 : vector<2x32xf32>
    %103 = vector.extract_strided_slice %86 {offsets = [0, 224], sizes = [2, 32], strides = [1, 1]} : vector<2x256xf32> to vector<2x32xf32>
    %104 = math.tanh %99 : vector<2x32xf32>
    %105 = arith.mulf %103, %104 : vector<2x32xf32>
    %106 = tpu.concatenate %102, %105 in 1 : vector<2x32xf32>, vector<2x32xf32> -> vector<2x64xf32>
    %107 = vector.extract_strided_slice %12 {offsets = [6, 0], sizes = [2, 128], strides = [1, 1]} : vector<16x256xf32> to vector<2x128xf32>
    %108 = vector.extract_strided_slice %12 {offsets = [8, 128], sizes = [2, 128], strides = [1, 1]} : vector<16x256xf32> to vector<2x128xf32>
    %109 = tpu.concatenate %107, %108 in 1 : vector<2x128xf32>, vector<2x128xf32> -> vector<2x256xf32>
    %cst_17 = arith.constant dense<0.000000e+00> : vector<2x256xf32>
    %110 = tpu.matmul %106, %13, %cst_17 {dimension_numbers = #tpu.dot_dimension_numbers<[1], [0], [0], [1], [0, 0, 1, 1], [], []>} : vector<2x64xf32>, vector<64x256xf32>, vector<2x256xf32> -> vector<2x256xf32>
    %111 = arith.addf %109, %110 : vector<2x256xf32>
    %112 = arith.negf %111 : vector<2x256xf32>
    %113 = math.exp %112 : vector<2x256xf32>
    %cst_18 = arith.constant 1.000000e+00 : f32
    %114 = vector.broadcast %cst_18 : f32 to vector<2x256xf32>
    %115 = arith.addf %114, %113 : vector<2x256xf32>
    %116 = arith.divf %114, %115 : vector<2x256xf32>
    %117 = math.tanh %111 : vector<2x256xf32>
    %118 = vector.extract_strided_slice %116 {offsets = [0, 32], sizes = [2, 32], strides = [1, 1]} : vector<2x256xf32> to vector<2x32xf32>
    %119 = arith.mulf %118, %93 : vector<2x32xf32>
    %120 = vector.extract_strided_slice %116 {offsets = [0, 0], sizes = [2, 32], strides = [1, 1]} : vector<2x256xf32> to vector<2x32xf32>
    %121 = vector.extract_strided_slice %117 {offsets = [0, 64], sizes = [2, 32], strides = [1, 1]} : vector<2x256xf32> to vector<2x32xf32>
    %122 = arith.mulf %120, %121 : vector<2x32xf32>
    %123 = arith.addf %119, %122 : vector<2x32xf32>
    %124 = vector.extract_strided_slice %116 {offsets = [0, 160], sizes = [2, 32], strides = [1, 1]} : vector<2x256xf32> to vector<2x32xf32>
    %125 = arith.mulf %124, %99 : vector<2x32xf32>
    %126 = vector.extract_strided_slice %116 {offsets = [0, 128], sizes = [2, 32], strides = [1, 1]} : vector<2x256xf32> to vector<2x32xf32>
    %127 = vector.extract_strided_slice %117 {offsets = [0, 192], sizes = [2, 32], strides = [1, 1]} : vector<2x256xf32> to vector<2x32xf32>
    %128 = arith.mulf %126, %127 : vector<2x32xf32>
    %129 = arith.addf %125, %128 : vector<2x32xf32>
    %130 = vector.extract_strided_slice %116 {offsets = [0, 96], sizes = [2, 32], strides = [1, 1]} : vector<2x256xf32> to vector<2x32xf32>
    %131 = math.tanh %123 : vector<2x32xf32>
    %132 = arith.mulf %130, %131 : vector<2x32xf32>
    %133 = vector.extract_strided_slice %116 {offsets = [0, 224], sizes = [2, 32], strides = [1, 1]} : vector<2x256xf32> to vector<2x32xf32>
    %134 = math.tanh %129 : vector<2x32xf32>
    %135 = arith.mulf %133, %134 : vector<2x32xf32>
    %136 = tpu.concatenate %132, %135 in 1 : vector<2x32xf32>, vector<2x32xf32> -> vector<2x64xf32>
    %137 = vector.extract_strided_slice %12 {offsets = [8, 0], sizes = [2, 128], strides = [1, 1]} : vector<16x256xf32> to vector<2x128xf32>
    %138 = vector.extract_strided_slice %12 {offsets = [6, 128], sizes = [2, 128], strides = [1, 1]} : vector<16x256xf32> to vector<2x128xf32>
    %139 = tpu.concatenate %137, %138 in 1 : vector<2x128xf32>, vector<2x128xf32> -> vector<2x256xf32>
    %cst_19 = arith.constant dense<0.000000e+00> : vector<2x256xf32>
    %140 = tpu.matmul %136, %13, %cst_19 {dimension_numbers = #tpu.dot_dimension_numbers<[1], [0], [0], [1], [0, 0, 1, 1], [], []>} : vector<2x64xf32>, vector<64x256xf32>, vector<2x256xf32> -> vector<2x256xf32>
    %141 = arith.addf %139, %140 : vector<2x256xf32>
    %142 = arith.negf %141 : vector<2x256xf32>
    %143 = math.exp %142 : vector<2x256xf32>
    %cst_20 = arith.constant 1.000000e+00 : f32
    %144 = vector.broadcast %cst_20 : f32 to vector<2x256xf32>
    %145 = arith.addf %144, %143 : vector<2x256xf32>
    %146 = arith.divf %144, %145 : vector<2x256xf32>
    %147 = math.tanh %141 : vector<2x256xf32>
    %148 = vector.extract_strided_slice %146 {offsets = [0, 32], sizes = [2, 32], strides = [1, 1]} : vector<2x256xf32> to vector<2x32xf32>
    %149 = arith.mulf %148, %123 : vector<2x32xf32>
    %150 = vector.extract_strided_slice %146 {offsets = [0, 0], sizes = [2, 32], strides = [1, 1]} : vector<2x256xf32> to vector<2x32xf32>
    %151 = vector.extract_strided_slice %147 {offsets = [0, 64], sizes = [2, 32], strides = [1, 1]} : vector<2x256xf32> to vector<2x32xf32>
    %152 = arith.mulf %150, %151 : vector<2x32xf32>
    %153 = arith.addf %149, %152 : vector<2x32xf32>
    %154 = vector.extract_strided_slice %146 {offsets = [0, 160], sizes = [2, 32], strides = [1, 1]} : vector<2x256xf32> to vector<2x32xf32>
    %155 = arith.mulf %154, %129 : vector<2x32xf32>
    %156 = vector.extract_strided_slice %146 {offsets = [0, 128], sizes = [2, 32], strides = [1, 1]} : vector<2x256xf32> to vector<2x32xf32>
    %157 = vector.extract_strided_slice %147 {offsets = [0, 192], sizes = [2, 32], strides = [1, 1]} : vector<2x256xf32> to vector<2x32xf32>
    %158 = arith.mulf %156, %157 : vector<2x32xf32>
    %159 = arith.addf %155, %158 : vector<2x32xf32>
    %160 = vector.extract_strided_slice %146 {offsets = [0, 96], sizes = [2, 32], strides = [1, 1]} : vector<2x256xf32> to vector<2x32xf32>
    %161 = math.tanh %153 : vector<2x32xf32>
    %162 = arith.mulf %160, %161 : vector<2x32xf32>
    %163 = vector.extract_strided_slice %146 {offsets = [0, 224], sizes = [2, 32], strides = [1, 1]} : vector<2x256xf32> to vector<2x32xf32>
    %164 = math.tanh %159 : vector<2x32xf32>
    %165 = arith.mulf %163, %164 : vector<2x32xf32>
    %166 = tpu.concatenate %162, %165 in 1 : vector<2x32xf32>, vector<2x32xf32> -> vector<2x64xf32>
    %167 = vector.extract_strided_slice %12 {offsets = [10, 0], sizes = [2, 128], strides = [1, 1]} : vector<16x256xf32> to vector<2x128xf32>
    %168 = vector.extract_strided_slice %12 {offsets = [4, 128], sizes = [2, 128], strides = [1, 1]} : vector<16x256xf32> to vector<2x128xf32>
    %169 = tpu.concatenate %167, %168 in 1 : vector<2x128xf32>, vector<2x128xf32> -> vector<2x256xf32>
    %cst_21 = arith.constant dense<0.000000e+00> : vector<2x256xf32>
    %170 = tpu.matmul %166, %13, %cst_21 {dimension_numbers = #tpu.dot_dimension_numbers<[1], [0], [0], [1], [0, 0, 1, 1], [], []>} : vector<2x64xf32>, vector<64x256xf32>, vector<2x256xf32> -> vector<2x256xf32>
    %171 = arith.addf %169, %170 : vector<2x256xf32>
    %172 = arith.negf %171 : vector<2x256xf32>
    %173 = math.exp %172 : vector<2x256xf32>
    %cst_22 = arith.constant 1.000000e+00 : f32
    %174 = vector.broadcast %cst_22 : f32 to vector<2x256xf32>
    %175 = arith.addf %174, %173 : vector<2x256xf32>
    %176 = arith.divf %174, %175 : vector<2x256xf32>
    %177 = math.tanh %171 : vector<2x256xf32>
    %178 = vector.extract_strided_slice %176 {offsets = [0, 32], sizes = [2, 32], strides = [1, 1]} : vector<2x256xf32> to vector<2x32xf32>
    %179 = arith.mulf %178, %153 : vector<2x32xf32>
    %180 = vector.extract_strided_slice %176 {offsets = [0, 0], sizes = [2, 32], strides = [1, 1]} : vector<2x256xf32> to vector<2x32xf32>
    %181 = vector.extract_strided_slice %177 {offsets = [0, 64], sizes = [2, 32], strides = [1, 1]} : vector<2x256xf32> to vector<2x32xf32>
    %182 = arith.mulf %180, %181 : vector<2x32xf32>
    %183 = arith.addf %179, %182 : vector<2x32xf32>
    %184 = vector.extract_strided_slice %176 {offsets = [0, 160], sizes = [2, 32], strides = [1, 1]} : vector<2x256xf32> to vector<2x32xf32>
    %185 = arith.mulf %184, %159 : vector<2x32xf32>
    %186 = vector.extract_strided_slice %176 {offsets = [0, 128], sizes = [2, 32], strides = [1, 1]} : vector<2x256xf32> to vector<2x32xf32>
    %187 = vector.extract_strided_slice %177 {offsets = [0, 192], sizes = [2, 32], strides = [1, 1]} : vector<2x256xf32> to vector<2x32xf32>
    %188 = arith.mulf %186, %187 : vector<2x32xf32>
    %189 = arith.addf %185, %188 : vector<2x32xf32>
    %190 = vector.extract_strided_slice %176 {offsets = [0, 96], sizes = [2, 32], strides = [1, 1]} : vector<2x256xf32> to vector<2x32xf32>
    %191 = math.tanh %183 : vector<2x32xf32>
    %192 = arith.mulf %190, %191 : vector<2x32xf32>
    %193 = vector.extract_strided_slice %176 {offsets = [0, 224], sizes = [2, 32], strides = [1, 1]} : vector<2x256xf32> to vector<2x32xf32>
    %194 = math.tanh %189 : vector<2x32xf32>
    %195 = arith.mulf %193, %194 : vector<2x32xf32>
    %196 = tpu.concatenate %192, %195 in 1 : vector<2x32xf32>, vector<2x32xf32> -> vector<2x64xf32>
    %197 = vector.extract_strided_slice %12 {offsets = [12, 0], sizes = [2, 128], strides = [1, 1]} : vector<16x256xf32> to vector<2x128xf32>
    %198 = vector.extract_strided_slice %12 {offsets = [2, 128], sizes = [2, 128], strides = [1, 1]} : vector<16x256xf32> to vector<2x128xf32>
    %199 = tpu.concatenate %197, %198 in 1 : vector<2x128xf32>, vector<2x128xf32> -> vector<2x256xf32>
    %cst_23 = arith.constant dense<0.000000e+00> : vector<2x256xf32>
    %200 = tpu.matmul %196, %13, %cst_23 {dimension_numbers = #tpu.dot_dimension_numbers<[1], [0], [0], [1], [0, 0, 1, 1], [], []>} : vector<2x64xf32>, vector<64x256xf32>, vector<2x256xf32> -> vector<2x256xf32>
    %201 = arith.addf %199, %200 : vector<2x256xf32>
    %202 = arith.negf %201 : vector<2x256xf32>
    %203 = math.exp %202 : vector<2x256xf32>
    %cst_24 = arith.constant 1.000000e+00 : f32
    %204 = vector.broadcast %cst_24 : f32 to vector<2x256xf32>
    %205 = arith.addf %204, %203 : vector<2x256xf32>
    %206 = arith.divf %204, %205 : vector<2x256xf32>
    %207 = math.tanh %201 : vector<2x256xf32>
    %208 = vector.extract_strided_slice %206 {offsets = [0, 32], sizes = [2, 32], strides = [1, 1]} : vector<2x256xf32> to vector<2x32xf32>
    %209 = arith.mulf %208, %183 : vector<2x32xf32>
    %210 = vector.extract_strided_slice %206 {offsets = [0, 0], sizes = [2, 32], strides = [1, 1]} : vector<2x256xf32> to vector<2x32xf32>
    %211 = vector.extract_strided_slice %207 {offsets = [0, 64], sizes = [2, 32], strides = [1, 1]} : vector<2x256xf32> to vector<2x32xf32>
    %212 = arith.mulf %210, %211 : vector<2x32xf32>
    %213 = arith.addf %209, %212 : vector<2x32xf32>
    %214 = vector.extract_strided_slice %206 {offsets = [0, 160], sizes = [2, 32], strides = [1, 1]} : vector<2x256xf32> to vector<2x32xf32>
    %215 = arith.mulf %214, %189 : vector<2x32xf32>
    %216 = vector.extract_strided_slice %206 {offsets = [0, 128], sizes = [2, 32], strides = [1, 1]} : vector<2x256xf32> to vector<2x32xf32>
    %217 = vector.extract_strided_slice %207 {offsets = [0, 192], sizes = [2, 32], strides = [1, 1]} : vector<2x256xf32> to vector<2x32xf32>
    %218 = arith.mulf %216, %217 : vector<2x32xf32>
    %219 = arith.addf %215, %218 : vector<2x32xf32>
    %220 = vector.extract_strided_slice %206 {offsets = [0, 96], sizes = [2, 32], strides = [1, 1]} : vector<2x256xf32> to vector<2x32xf32>
    %221 = math.tanh %213 : vector<2x32xf32>
    %222 = arith.mulf %220, %221 : vector<2x32xf32>
    %223 = vector.extract_strided_slice %206 {offsets = [0, 224], sizes = [2, 32], strides = [1, 1]} : vector<2x256xf32> to vector<2x32xf32>
    %224 = math.tanh %219 : vector<2x32xf32>
    %225 = arith.mulf %223, %224 : vector<2x32xf32>
    %226 = tpu.concatenate %222, %225 in 1 : vector<2x32xf32>, vector<2x32xf32> -> vector<2x64xf32>
    %227 = vector.extract_strided_slice %12 {offsets = [14, 0], sizes = [2, 128], strides = [1, 1]} : vector<16x256xf32> to vector<2x128xf32>
    %228 = vector.extract_strided_slice %12 {offsets = [0, 128], sizes = [2, 128], strides = [1, 1]} : vector<16x256xf32> to vector<2x128xf32>
    %229 = tpu.concatenate %227, %228 in 1 : vector<2x128xf32>, vector<2x128xf32> -> vector<2x256xf32>
    %cst_25 = arith.constant dense<0.000000e+00> : vector<2x256xf32>
    %230 = tpu.matmul %226, %13, %cst_25 {dimension_numbers = #tpu.dot_dimension_numbers<[1], [0], [0], [1], [0, 0, 1, 1], [], []>} : vector<2x64xf32>, vector<64x256xf32>, vector<2x256xf32> -> vector<2x256xf32>
    %231 = arith.addf %229, %230 : vector<2x256xf32>
    %232 = arith.negf %231 : vector<2x256xf32>
    %233 = math.exp %232 : vector<2x256xf32>
    %cst_26 = arith.constant 1.000000e+00 : f32
    %234 = vector.broadcast %cst_26 : f32 to vector<2x256xf32>
    %235 = arith.addf %234, %233 : vector<2x256xf32>
    %236 = arith.divf %234, %235 : vector<2x256xf32>
    %237 = math.tanh %231 : vector<2x256xf32>
    %238 = vector.extract_strided_slice %236 {offsets = [0, 32], sizes = [2, 32], strides = [1, 1]} : vector<2x256xf32> to vector<2x32xf32>
    %239 = arith.mulf %238, %213 : vector<2x32xf32>
    %240 = vector.extract_strided_slice %236 {offsets = [0, 0], sizes = [2, 32], strides = [1, 1]} : vector<2x256xf32> to vector<2x32xf32>
    %241 = vector.extract_strided_slice %237 {offsets = [0, 64], sizes = [2, 32], strides = [1, 1]} : vector<2x256xf32> to vector<2x32xf32>
    %242 = arith.mulf %240, %241 : vector<2x32xf32>
    %243 = arith.addf %239, %242 : vector<2x32xf32>
    %244 = vector.extract_strided_slice %236 {offsets = [0, 160], sizes = [2, 32], strides = [1, 1]} : vector<2x256xf32> to vector<2x32xf32>
    %245 = arith.mulf %244, %219 : vector<2x32xf32>
    %246 = vector.extract_strided_slice %236 {offsets = [0, 128], sizes = [2, 32], strides = [1, 1]} : vector<2x256xf32> to vector<2x32xf32>
    %247 = vector.extract_strided_slice %237 {offsets = [0, 192], sizes = [2, 32], strides = [1, 1]} : vector<2x256xf32> to vector<2x32xf32>
    %248 = arith.mulf %246, %247 : vector<2x32xf32>
    %249 = arith.addf %245, %248 : vector<2x32xf32>
    %250 = vector.extract_strided_slice %236 {offsets = [0, 96], sizes = [2, 32], strides = [1, 1]} : vector<2x256xf32> to vector<2x32xf32>
    %251 = math.tanh %243 : vector<2x32xf32>
    %252 = arith.mulf %250, %251 : vector<2x32xf32>
    %253 = vector.extract_strided_slice %236 {offsets = [0, 224], sizes = [2, 32], strides = [1, 1]} : vector<2x256xf32> to vector<2x32xf32>
    %254 = math.tanh %249 : vector<2x32xf32>
    %255 = arith.mulf %253, %254 : vector<2x32xf32>
    %256 = tpu.concatenate %252, %255 in 1 : vector<2x32xf32>, vector<2x32xf32> -> vector<2x64xf32>
    %257 = tpu.concatenate %42, %72, %102, %132, %162, %192, %222, %252 in 0 : vector<2x32xf32>, vector<2x32xf32>, vector<2x32xf32>, vector<2x32xf32>, vector<2x32xf32>, vector<2x32xf32>, vector<2x32xf32>, vector<2x32xf32> -> vector<16x32xf32>
    %258 = tpu.concatenate %255, %225, %195, %165, %135, %105, %75, %45 in 0 : vector<2x32xf32>, vector<2x32xf32>, vector<2x32xf32>, vector<2x32xf32>, vector<2x32xf32>, vector<2x32xf32>, vector<2x32xf32>, vector<2x32xf32> -> vector<16x32xf32>
    %c80 = arith.constant 80 : index
    %c0_27 = arith.constant 0 : index
    %259 = vector.load %arg2[%c80, %c0_27] : memref<210x256xf32, #tpu.memory_space<vmem>>, vector<32x256xf32>
    %cst_28 = arith.constant dense<0.000000e+00> : vector<16x256xf32>
    %260 = tpu.matmul %257, %259, %cst_28 {dimension_numbers = #tpu.dot_dimension_numbers<[1], [0], [0], [1], [0, 0, 1, 1], [], []>} : vector<16x32xf32>, vector<32x256xf32>, vector<16x256xf32> -> vector<16x256xf32>
    %c112 = arith.constant 112 : index
    %c0_29 = arith.constant 0 : index
    %261 = vector.load %arg2[%c112, %c0_29] : memref<210x256xf32, #tpu.memory_space<vmem>>, vector<32x256xf32>
    %cst_30 = arith.constant dense<0.000000e+00> : vector<16x256xf32>
    %262 = tpu.matmul %258, %261, %cst_30 {dimension_numbers = #tpu.dot_dimension_numbers<[1], [0], [0], [1], [0, 0, 1, 1], [], []>} : vector<16x32xf32>, vector<32x256xf32>, vector<16x256xf32> -> vector<16x256xf32>
    %263 = arith.addf %260, %262 : vector<16x256xf32>
    %c209 = arith.constant 209 : index
    %c0_31 = arith.constant 0 : index
    %264 = vector.load %arg2[%c209, %c0_31] : memref<210x256xf32, #tpu.memory_space<vmem>>, vector<1x256xf32>
    %265 = vector.broadcast %264 : vector<1x256xf32> to vector<16x256xf32>
    %266 = arith.addf %263, %265 : vector<16x256xf32>
    %c144 = arith.constant 144 : index
    %c0_32 = arith.constant 0 : index
    %267 = vector.load %arg2[%c144, %c0_32] : memref<210x256xf32, #tpu.memory_space<vmem>>, vector<64x256xf32>
    %cst_33 = arith.constant 0.000000e+00 : f32
    %268 = vector.broadcast %cst_33 : f32 to vector<2x64xf32>
    %cst_34 = arith.constant 0.000000e+00 : f32
    %269 = vector.broadcast %cst_34 : f32 to vector<2x32xf32>
    %cst_35 = arith.constant 0.000000e+00 : f32
    %270 = vector.broadcast %cst_35 : f32 to vector<2x32xf32>
    %271 = vector.extract_strided_slice %266 {offsets = [0, 0], sizes = [2, 128], strides = [1, 1]} : vector<16x256xf32> to vector<2x128xf32>
    %272 = vector.extract_strided_slice %266 {offsets = [14, 128], sizes = [2, 128], strides = [1, 1]} : vector<16x256xf32> to vector<2x128xf32>
    %273 = tpu.concatenate %271, %272 in 1 : vector<2x128xf32>, vector<2x128xf32> -> vector<2x256xf32>
    %cst_36 = arith.constant dense<0.000000e+00> : vector<2x256xf32>
    %274 = tpu.matmul %268, %267, %cst_36 {dimension_numbers = #tpu.dot_dimension_numbers<[1], [0], [0], [1], [0, 0, 1, 1], [], []>} : vector<2x64xf32>, vector<64x256xf32>, vector<2x256xf32> -> vector<2x256xf32>
    %275 = arith.addf %273, %274 : vector<2x256xf32>
    %276 = arith.negf %275 : vector<2x256xf32>
    %277 = math.exp %276 : vector<2x256xf32>
    %cst_37 = arith.constant 1.000000e+00 : f32
    %278 = vector.broadcast %cst_37 : f32 to vector<2x256xf32>
    %279 = arith.addf %278, %277 : vector<2x256xf32>
    %280 = arith.divf %278, %279 : vector<2x256xf32>
    %281 = math.tanh %275 : vector<2x256xf32>
    %282 = vector.extract_strided_slice %280 {offsets = [0, 32], sizes = [2, 32], strides = [1, 1]} : vector<2x256xf32> to vector<2x32xf32>
    %283 = arith.mulf %282, %269 : vector<2x32xf32>
    %284 = vector.extract_strided_slice %280 {offsets = [0, 0], sizes = [2, 32], strides = [1, 1]} : vector<2x256xf32> to vector<2x32xf32>
    %285 = vector.extract_strided_slice %281 {offsets = [0, 64], sizes = [2, 32], strides = [1, 1]} : vector<2x256xf32> to vector<2x32xf32>
    %286 = arith.mulf %284, %285 : vector<2x32xf32>
    %287 = arith.addf %283, %286 : vector<2x32xf32>
    %288 = vector.extract_strided_slice %280 {offsets = [0, 160], sizes = [2, 32], strides = [1, 1]} : vector<2x256xf32> to vector<2x32xf32>
    %289 = arith.mulf %288, %270 : vector<2x32xf32>
    %290 = vector.extract_strided_slice %280 {offsets = [0, 128], sizes = [2, 32], strides = [1, 1]} : vector<2x256xf32> to vector<2x32xf32>
    %291 = vector.extract_strided_slice %281 {offsets = [0, 192], sizes = [2, 32], strides = [1, 1]} : vector<2x256xf32> to vector<2x32xf32>
    %292 = arith.mulf %290, %291 : vector<2x32xf32>
    %293 = arith.addf %289, %292 : vector<2x32xf32>
    %294 = vector.extract_strided_slice %280 {offsets = [0, 96], sizes = [2, 32], strides = [1, 1]} : vector<2x256xf32> to vector<2x32xf32>
    %295 = math.tanh %287 : vector<2x32xf32>
    %296 = arith.mulf %294, %295 : vector<2x32xf32>
    %297 = vector.extract_strided_slice %280 {offsets = [0, 224], sizes = [2, 32], strides = [1, 1]} : vector<2x256xf32> to vector<2x32xf32>
    %298 = math.tanh %293 : vector<2x32xf32>
    %299 = arith.mulf %297, %298 : vector<2x32xf32>
    %300 = tpu.concatenate %296, %299 in 1 : vector<2x32xf32>, vector<2x32xf32> -> vector<2x64xf32>
    %301 = vector.extract_strided_slice %266 {offsets = [2, 0], sizes = [2, 128], strides = [1, 1]} : vector<16x256xf32> to vector<2x128xf32>
    %302 = vector.extract_strided_slice %266 {offsets = [12, 128], sizes = [2, 128], strides = [1, 1]} : vector<16x256xf32> to vector<2x128xf32>
    %303 = tpu.concatenate %301, %302 in 1 : vector<2x128xf32>, vector<2x128xf32> -> vector<2x256xf32>
    %cst_38 = arith.constant dense<0.000000e+00> : vector<2x256xf32>
    %304 = tpu.matmul %300, %267, %cst_38 {dimension_numbers = #tpu.dot_dimension_numbers<[1], [0], [0], [1], [0, 0, 1, 1], [], []>} : vector<2x64xf32>, vector<64x256xf32>, vector<2x256xf32> -> vector<2x256xf32>
    %305 = arith.addf %303, %304 : vector<2x256xf32>
    %306 = arith.negf %305 : vector<2x256xf32>
    %307 = math.exp %306 : vector<2x256xf32>
    %cst_39 = arith.constant 1.000000e+00 : f32
    %308 = vector.broadcast %cst_39 : f32 to vector<2x256xf32>
    %309 = arith.addf %308, %307 : vector<2x256xf32>
    %310 = arith.divf %308, %309 : vector<2x256xf32>
    %311 = math.tanh %305 : vector<2x256xf32>
    %312 = vector.extract_strided_slice %310 {offsets = [0, 32], sizes = [2, 32], strides = [1, 1]} : vector<2x256xf32> to vector<2x32xf32>
    %313 = arith.mulf %312, %287 : vector<2x32xf32>
    %314 = vector.extract_strided_slice %310 {offsets = [0, 0], sizes = [2, 32], strides = [1, 1]} : vector<2x256xf32> to vector<2x32xf32>
    %315 = vector.extract_strided_slice %311 {offsets = [0, 64], sizes = [2, 32], strides = [1, 1]} : vector<2x256xf32> to vector<2x32xf32>
    %316 = arith.mulf %314, %315 : vector<2x32xf32>
    %317 = arith.addf %313, %316 : vector<2x32xf32>
    %318 = vector.extract_strided_slice %310 {offsets = [0, 160], sizes = [2, 32], strides = [1, 1]} : vector<2x256xf32> to vector<2x32xf32>
    %319 = arith.mulf %318, %293 : vector<2x32xf32>
    %320 = vector.extract_strided_slice %310 {offsets = [0, 128], sizes = [2, 32], strides = [1, 1]} : vector<2x256xf32> to vector<2x32xf32>
    %321 = vector.extract_strided_slice %311 {offsets = [0, 192], sizes = [2, 32], strides = [1, 1]} : vector<2x256xf32> to vector<2x32xf32>
    %322 = arith.mulf %320, %321 : vector<2x32xf32>
    %323 = arith.addf %319, %322 : vector<2x32xf32>
    %324 = vector.extract_strided_slice %310 {offsets = [0, 96], sizes = [2, 32], strides = [1, 1]} : vector<2x256xf32> to vector<2x32xf32>
    %325 = math.tanh %317 : vector<2x32xf32>
    %326 = arith.mulf %324, %325 : vector<2x32xf32>
    %327 = vector.extract_strided_slice %310 {offsets = [0, 224], sizes = [2, 32], strides = [1, 1]} : vector<2x256xf32> to vector<2x32xf32>
    %328 = math.tanh %323 : vector<2x32xf32>
    %329 = arith.mulf %327, %328 : vector<2x32xf32>
    %330 = tpu.concatenate %326, %329 in 1 : vector<2x32xf32>, vector<2x32xf32> -> vector<2x64xf32>
    %331 = vector.extract_strided_slice %266 {offsets = [4, 0], sizes = [2, 128], strides = [1, 1]} : vector<16x256xf32> to vector<2x128xf32>
    %332 = vector.extract_strided_slice %266 {offsets = [10, 128], sizes = [2, 128], strides = [1, 1]} : vector<16x256xf32> to vector<2x128xf32>
    %333 = tpu.concatenate %331, %332 in 1 : vector<2x128xf32>, vector<2x128xf32> -> vector<2x256xf32>
    %cst_40 = arith.constant dense<0.000000e+00> : vector<2x256xf32>
    %334 = tpu.matmul %330, %267, %cst_40 {dimension_numbers = #tpu.dot_dimension_numbers<[1], [0], [0], [1], [0, 0, 1, 1], [], []>} : vector<2x64xf32>, vector<64x256xf32>, vector<2x256xf32> -> vector<2x256xf32>
    %335 = arith.addf %333, %334 : vector<2x256xf32>
    %336 = arith.negf %335 : vector<2x256xf32>
    %337 = math.exp %336 : vector<2x256xf32>
    %cst_41 = arith.constant 1.000000e+00 : f32
    %338 = vector.broadcast %cst_41 : f32 to vector<2x256xf32>
    %339 = arith.addf %338, %337 : vector<2x256xf32>
    %340 = arith.divf %338, %339 : vector<2x256xf32>
    %341 = math.tanh %335 : vector<2x256xf32>
    %342 = vector.extract_strided_slice %340 {offsets = [0, 32], sizes = [2, 32], strides = [1, 1]} : vector<2x256xf32> to vector<2x32xf32>
    %343 = arith.mulf %342, %317 : vector<2x32xf32>
    %344 = vector.extract_strided_slice %340 {offsets = [0, 0], sizes = [2, 32], strides = [1, 1]} : vector<2x256xf32> to vector<2x32xf32>
    %345 = vector.extract_strided_slice %341 {offsets = [0, 64], sizes = [2, 32], strides = [1, 1]} : vector<2x256xf32> to vector<2x32xf32>
    %346 = arith.mulf %344, %345 : vector<2x32xf32>
    %347 = arith.addf %343, %346 : vector<2x32xf32>
    %348 = vector.extract_strided_slice %340 {offsets = [0, 160], sizes = [2, 32], strides = [1, 1]} : vector<2x256xf32> to vector<2x32xf32>
    %349 = arith.mulf %348, %323 : vector<2x32xf32>
    %350 = vector.extract_strided_slice %340 {offsets = [0, 128], sizes = [2, 32], strides = [1, 1]} : vector<2x256xf32> to vector<2x32xf32>
    %351 = vector.extract_strided_slice %341 {offsets = [0, 192], sizes = [2, 32], strides = [1, 1]} : vector<2x256xf32> to vector<2x32xf32>
    %352 = arith.mulf %350, %351 : vector<2x32xf32>
    %353 = arith.addf %349, %352 : vector<2x32xf32>
    %354 = vector.extract_strided_slice %340 {offsets = [0, 96], sizes = [2, 32], strides = [1, 1]} : vector<2x256xf32> to vector<2x32xf32>
    %355 = math.tanh %347 : vector<2x32xf32>
    %356 = arith.mulf %354, %355 : vector<2x32xf32>
    %357 = vector.extract_strided_slice %340 {offsets = [0, 224], sizes = [2, 32], strides = [1, 1]} : vector<2x256xf32> to vector<2x32xf32>
    %358 = math.tanh %353 : vector<2x32xf32>
    %359 = arith.mulf %357, %358 : vector<2x32xf32>
    %360 = tpu.concatenate %356, %359 in 1 : vector<2x32xf32>, vector<2x32xf32> -> vector<2x64xf32>
    %361 = vector.extract_strided_slice %266 {offsets = [6, 0], sizes = [2, 128], strides = [1, 1]} : vector<16x256xf32> to vector<2x128xf32>
    %362 = vector.extract_strided_slice %266 {offsets = [8, 128], sizes = [2, 128], strides = [1, 1]} : vector<16x256xf32> to vector<2x128xf32>
    %363 = tpu.concatenate %361, %362 in 1 : vector<2x128xf32>, vector<2x128xf32> -> vector<2x256xf32>
    %cst_42 = arith.constant dense<0.000000e+00> : vector<2x256xf32>
    %364 = tpu.matmul %360, %267, %cst_42 {dimension_numbers = #tpu.dot_dimension_numbers<[1], [0], [0], [1], [0, 0, 1, 1], [], []>} : vector<2x64xf32>, vector<64x256xf32>, vector<2x256xf32> -> vector<2x256xf32>
    %365 = arith.addf %363, %364 : vector<2x256xf32>
    %366 = arith.negf %365 : vector<2x256xf32>
    %367 = math.exp %366 : vector<2x256xf32>
    %cst_43 = arith.constant 1.000000e+00 : f32
    %368 = vector.broadcast %cst_43 : f32 to vector<2x256xf32>
    %369 = arith.addf %368, %367 : vector<2x256xf32>
    %370 = arith.divf %368, %369 : vector<2x256xf32>
    %371 = math.tanh %365 : vector<2x256xf32>
    %372 = vector.extract_strided_slice %370 {offsets = [0, 32], sizes = [2, 32], strides = [1, 1]} : vector<2x256xf32> to vector<2x32xf32>
    %373 = arith.mulf %372, %347 : vector<2x32xf32>
    %374 = vector.extract_strided_slice %370 {offsets = [0, 0], sizes = [2, 32], strides = [1, 1]} : vector<2x256xf32> to vector<2x32xf32>
    %375 = vector.extract_strided_slice %371 {offsets = [0, 64], sizes = [2, 32], strides = [1, 1]} : vector<2x256xf32> to vector<2x32xf32>
    %376 = arith.mulf %374, %375 : vector<2x32xf32>
    %377 = arith.addf %373, %376 : vector<2x32xf32>
    %378 = vector.extract_strided_slice %370 {offsets = [0, 160], sizes = [2, 32], strides = [1, 1]} : vector<2x256xf32> to vector<2x32xf32>
    %379 = arith.mulf %378, %353 : vector<2x32xf32>
    %380 = vector.extract_strided_slice %370 {offsets = [0, 128], sizes = [2, 32], strides = [1, 1]} : vector<2x256xf32> to vector<2x32xf32>
    %381 = vector.extract_strided_slice %371 {offsets = [0, 192], sizes = [2, 32], strides = [1, 1]} : vector<2x256xf32> to vector<2x32xf32>
    %382 = arith.mulf %380, %381 : vector<2x32xf32>
    %383 = arith.addf %379, %382 : vector<2x32xf32>
    %384 = vector.extract_strided_slice %370 {offsets = [0, 96], sizes = [2, 32], strides = [1, 1]} : vector<2x256xf32> to vector<2x32xf32>
    %385 = math.tanh %377 : vector<2x32xf32>
    %386 = arith.mulf %384, %385 : vector<2x32xf32>
    %387 = vector.extract_strided_slice %370 {offsets = [0, 224], sizes = [2, 32], strides = [1, 1]} : vector<2x256xf32> to vector<2x32xf32>
    %388 = math.tanh %383 : vector<2x32xf32>
    %389 = arith.mulf %387, %388 : vector<2x32xf32>
    %390 = tpu.concatenate %386, %389 in 1 : vector<2x32xf32>, vector<2x32xf32> -> vector<2x64xf32>
    %391 = vector.extract_strided_slice %266 {offsets = [8, 0], sizes = [2, 128], strides = [1, 1]} : vector<16x256xf32> to vector<2x128xf32>
    %392 = vector.extract_strided_slice %266 {offsets = [6, 128], sizes = [2, 128], strides = [1, 1]} : vector<16x256xf32> to vector<2x128xf32>
    %393 = tpu.concatenate %391, %392 in 1 : vector<2x128xf32>, vector<2x128xf32> -> vector<2x256xf32>
    %cst_44 = arith.constant dense<0.000000e+00> : vector<2x256xf32>
    %394 = tpu.matmul %390, %267, %cst_44 {dimension_numbers = #tpu.dot_dimension_numbers<[1], [0], [0], [1], [0, 0, 1, 1], [], []>} : vector<2x64xf32>, vector<64x256xf32>, vector<2x256xf32> -> vector<2x256xf32>
    %395 = arith.addf %393, %394 : vector<2x256xf32>
    %396 = arith.negf %395 : vector<2x256xf32>
    %397 = math.exp %396 : vector<2x256xf32>
    %cst_45 = arith.constant 1.000000e+00 : f32
    %398 = vector.broadcast %cst_45 : f32 to vector<2x256xf32>
    %399 = arith.addf %398, %397 : vector<2x256xf32>
    %400 = arith.divf %398, %399 : vector<2x256xf32>
    %401 = math.tanh %395 : vector<2x256xf32>
    %402 = vector.extract_strided_slice %400 {offsets = [0, 32], sizes = [2, 32], strides = [1, 1]} : vector<2x256xf32> to vector<2x32xf32>
    %403 = arith.mulf %402, %377 : vector<2x32xf32>
    %404 = vector.extract_strided_slice %400 {offsets = [0, 0], sizes = [2, 32], strides = [1, 1]} : vector<2x256xf32> to vector<2x32xf32>
    %405 = vector.extract_strided_slice %401 {offsets = [0, 64], sizes = [2, 32], strides = [1, 1]} : vector<2x256xf32> to vector<2x32xf32>
    %406 = arith.mulf %404, %405 : vector<2x32xf32>
    %407 = arith.addf %403, %406 : vector<2x32xf32>
    %408 = vector.extract_strided_slice %400 {offsets = [0, 160], sizes = [2, 32], strides = [1, 1]} : vector<2x256xf32> to vector<2x32xf32>
    %409 = arith.mulf %408, %383 : vector<2x32xf32>
    %410 = vector.extract_strided_slice %400 {offsets = [0, 128], sizes = [2, 32], strides = [1, 1]} : vector<2x256xf32> to vector<2x32xf32>
    %411 = vector.extract_strided_slice %401 {offsets = [0, 192], sizes = [2, 32], strides = [1, 1]} : vector<2x256xf32> to vector<2x32xf32>
    %412 = arith.mulf %410, %411 : vector<2x32xf32>
    %413 = arith.addf %409, %412 : vector<2x32xf32>
    %414 = vector.extract_strided_slice %400 {offsets = [0, 96], sizes = [2, 32], strides = [1, 1]} : vector<2x256xf32> to vector<2x32xf32>
    %415 = math.tanh %407 : vector<2x32xf32>
    %416 = arith.mulf %414, %415 : vector<2x32xf32>
    %417 = vector.extract_strided_slice %400 {offsets = [0, 224], sizes = [2, 32], strides = [1, 1]} : vector<2x256xf32> to vector<2x32xf32>
    %418 = math.tanh %413 : vector<2x32xf32>
    %419 = arith.mulf %417, %418 : vector<2x32xf32>
    %420 = tpu.concatenate %416, %419 in 1 : vector<2x32xf32>, vector<2x32xf32> -> vector<2x64xf32>
    %421 = vector.extract_strided_slice %266 {offsets = [10, 0], sizes = [2, 128], strides = [1, 1]} : vector<16x256xf32> to vector<2x128xf32>
    %422 = vector.extract_strided_slice %266 {offsets = [4, 128], sizes = [2, 128], strides = [1, 1]} : vector<16x256xf32> to vector<2x128xf32>
    %423 = tpu.concatenate %421, %422 in 1 : vector<2x128xf32>, vector<2x128xf32> -> vector<2x256xf32>
    %cst_46 = arith.constant dense<0.000000e+00> : vector<2x256xf32>
    %424 = tpu.matmul %420, %267, %cst_46 {dimension_numbers = #tpu.dot_dimension_numbers<[1], [0], [0], [1], [0, 0, 1, 1], [], []>} : vector<2x64xf32>, vector<64x256xf32>, vector<2x256xf32> -> vector<2x256xf32>
    %425 = arith.addf %423, %424 : vector<2x256xf32>
    %426 = arith.negf %425 : vector<2x256xf32>
    %427 = math.exp %426 : vector<2x256xf32>
    %cst_47 = arith.constant 1.000000e+00 : f32
    %428 = vector.broadcast %cst_47 : f32 to vector<2x256xf32>
    %429 = arith.addf %428, %427 : vector<2x256xf32>
    %430 = arith.divf %428, %429 : vector<2x256xf32>
    %431 = math.tanh %425 : vector<2x256xf32>
    %432 = vector.extract_strided_slice %430 {offsets = [0, 32], sizes = [2, 32], strides = [1, 1]} : vector<2x256xf32> to vector<2x32xf32>
    %433 = arith.mulf %432, %407 : vector<2x32xf32>
    %434 = vector.extract_strided_slice %430 {offsets = [0, 0], sizes = [2, 32], strides = [1, 1]} : vector<2x256xf32> to vector<2x32xf32>
    %435 = vector.extract_strided_slice %431 {offsets = [0, 64], sizes = [2, 32], strides = [1, 1]} : vector<2x256xf32> to vector<2x32xf32>
    %436 = arith.mulf %434, %435 : vector<2x32xf32>
    %437 = arith.addf %433, %436 : vector<2x32xf32>
    %438 = vector.extract_strided_slice %430 {offsets = [0, 160], sizes = [2, 32], strides = [1, 1]} : vector<2x256xf32> to vector<2x32xf32>
    %439 = arith.mulf %438, %413 : vector<2x32xf32>
    %440 = vector.extract_strided_slice %430 {offsets = [0, 128], sizes = [2, 32], strides = [1, 1]} : vector<2x256xf32> to vector<2x32xf32>
    %441 = vector.extract_strided_slice %431 {offsets = [0, 192], sizes = [2, 32], strides = [1, 1]} : vector<2x256xf32> to vector<2x32xf32>
    %442 = arith.mulf %440, %441 : vector<2x32xf32>
    %443 = arith.addf %439, %442 : vector<2x32xf32>
    %444 = vector.extract_strided_slice %430 {offsets = [0, 96], sizes = [2, 32], strides = [1, 1]} : vector<2x256xf32> to vector<2x32xf32>
    %445 = math.tanh %437 : vector<2x32xf32>
    %446 = arith.mulf %444, %445 : vector<2x32xf32>
    %447 = vector.extract_strided_slice %430 {offsets = [0, 224], sizes = [2, 32], strides = [1, 1]} : vector<2x256xf32> to vector<2x32xf32>
    %448 = math.tanh %443 : vector<2x32xf32>
    %449 = arith.mulf %447, %448 : vector<2x32xf32>
    %450 = tpu.concatenate %446, %449 in 1 : vector<2x32xf32>, vector<2x32xf32> -> vector<2x64xf32>
    %451 = vector.extract_strided_slice %266 {offsets = [12, 0], sizes = [2, 128], strides = [1, 1]} : vector<16x256xf32> to vector<2x128xf32>
    %452 = vector.extract_strided_slice %266 {offsets = [2, 128], sizes = [2, 128], strides = [1, 1]} : vector<16x256xf32> to vector<2x128xf32>
    %453 = tpu.concatenate %451, %452 in 1 : vector<2x128xf32>, vector<2x128xf32> -> vector<2x256xf32>
    %cst_48 = arith.constant dense<0.000000e+00> : vector<2x256xf32>
    %454 = tpu.matmul %450, %267, %cst_48 {dimension_numbers = #tpu.dot_dimension_numbers<[1], [0], [0], [1], [0, 0, 1, 1], [], []>} : vector<2x64xf32>, vector<64x256xf32>, vector<2x256xf32> -> vector<2x256xf32>
    %455 = arith.addf %453, %454 : vector<2x256xf32>
    %456 = arith.negf %455 : vector<2x256xf32>
    %457 = math.exp %456 : vector<2x256xf32>
    %cst_49 = arith.constant 1.000000e+00 : f32
    %458 = vector.broadcast %cst_49 : f32 to vector<2x256xf32>
    %459 = arith.addf %458, %457 : vector<2x256xf32>
    %460 = arith.divf %458, %459 : vector<2x256xf32>
    %461 = math.tanh %455 : vector<2x256xf32>
    %462 = vector.extract_strided_slice %460 {offsets = [0, 32], sizes = [2, 32], strides = [1, 1]} : vector<2x256xf32> to vector<2x32xf32>
    %463 = arith.mulf %462, %437 : vector<2x32xf32>
    %464 = vector.extract_strided_slice %460 {offsets = [0, 0], sizes = [2, 32], strides = [1, 1]} : vector<2x256xf32> to vector<2x32xf32>
    %465 = vector.extract_strided_slice %461 {offsets = [0, 64], sizes = [2, 32], strides = [1, 1]} : vector<2x256xf32> to vector<2x32xf32>
    %466 = arith.mulf %464, %465 : vector<2x32xf32>
    %467 = arith.addf %463, %466 : vector<2x32xf32>
    %468 = vector.extract_strided_slice %460 {offsets = [0, 160], sizes = [2, 32], strides = [1, 1]} : vector<2x256xf32> to vector<2x32xf32>
    %469 = arith.mulf %468, %443 : vector<2x32xf32>
    %470 = vector.extract_strided_slice %460 {offsets = [0, 128], sizes = [2, 32], strides = [1, 1]} : vector<2x256xf32> to vector<2x32xf32>
    %471 = vector.extract_strided_slice %461 {offsets = [0, 192], sizes = [2, 32], strides = [1, 1]} : vector<2x256xf32> to vector<2x32xf32>
    %472 = arith.mulf %470, %471 : vector<2x32xf32>
    %473 = arith.addf %469, %472 : vector<2x32xf32>
    %474 = vector.extract_strided_slice %460 {offsets = [0, 96], sizes = [2, 32], strides = [1, 1]} : vector<2x256xf32> to vector<2x32xf32>
    %475 = math.tanh %467 : vector<2x32xf32>
    %476 = arith.mulf %474, %475 : vector<2x32xf32>
    %477 = vector.extract_strided_slice %460 {offsets = [0, 224], sizes = [2, 32], strides = [1, 1]} : vector<2x256xf32> to vector<2x32xf32>
    %478 = math.tanh %473 : vector<2x32xf32>
    %479 = arith.mulf %477, %478 : vector<2x32xf32>
    %480 = tpu.concatenate %476, %479 in 1 : vector<2x32xf32>, vector<2x32xf32> -> vector<2x64xf32>
    %481 = vector.extract_strided_slice %266 {offsets = [14, 0], sizes = [2, 128], strides = [1, 1]} : vector<16x256xf32> to vector<2x128xf32>
    %482 = vector.extract_strided_slice %266 {offsets = [0, 128], sizes = [2, 128], strides = [1, 1]} : vector<16x256xf32> to vector<2x128xf32>
    %483 = tpu.concatenate %481, %482 in 1 : vector<2x128xf32>, vector<2x128xf32> -> vector<2x256xf32>
    %cst_50 = arith.constant dense<0.000000e+00> : vector<2x256xf32>
    %484 = tpu.matmul %480, %267, %cst_50 {dimension_numbers = #tpu.dot_dimension_numbers<[1], [0], [0], [1], [0, 0, 1, 1], [], []>} : vector<2x64xf32>, vector<64x256xf32>, vector<2x256xf32> -> vector<2x256xf32>
    %485 = arith.addf %483, %484 : vector<2x256xf32>
    %486 = arith.negf %485 : vector<2x256xf32>
    %487 = math.exp %486 : vector<2x256xf32>
    %cst_51 = arith.constant 1.000000e+00 : f32
    %488 = vector.broadcast %cst_51 : f32 to vector<2x256xf32>
    %489 = arith.addf %488, %487 : vector<2x256xf32>
    %490 = arith.divf %488, %489 : vector<2x256xf32>
    %491 = math.tanh %485 : vector<2x256xf32>
    %492 = vector.extract_strided_slice %490 {offsets = [0, 32], sizes = [2, 32], strides = [1, 1]} : vector<2x256xf32> to vector<2x32xf32>
    %493 = arith.mulf %492, %467 : vector<2x32xf32>
    %494 = vector.extract_strided_slice %490 {offsets = [0, 0], sizes = [2, 32], strides = [1, 1]} : vector<2x256xf32> to vector<2x32xf32>
    %495 = vector.extract_strided_slice %491 {offsets = [0, 64], sizes = [2, 32], strides = [1, 1]} : vector<2x256xf32> to vector<2x32xf32>
    %496 = arith.mulf %494, %495 : vector<2x32xf32>
    %497 = arith.addf %493, %496 : vector<2x32xf32>
    %498 = vector.extract_strided_slice %490 {offsets = [0, 160], sizes = [2, 32], strides = [1, 1]} : vector<2x256xf32> to vector<2x32xf32>
    %499 = arith.mulf %498, %473 : vector<2x32xf32>
    %500 = vector.extract_strided_slice %490 {offsets = [0, 128], sizes = [2, 32], strides = [1, 1]} : vector<2x256xf32> to vector<2x32xf32>
    %501 = vector.extract_strided_slice %491 {offsets = [0, 192], sizes = [2, 32], strides = [1, 1]} : vector<2x256xf32> to vector<2x32xf32>
    %502 = arith.mulf %500, %501 : vector<2x32xf32>
    %503 = arith.addf %499, %502 : vector<2x32xf32>
    %504 = vector.extract_strided_slice %490 {offsets = [0, 96], sizes = [2, 32], strides = [1, 1]} : vector<2x256xf32> to vector<2x32xf32>
    %505 = math.tanh %497 : vector<2x32xf32>
    %506 = arith.mulf %504, %505 : vector<2x32xf32>
    %507 = vector.extract_strided_slice %490 {offsets = [0, 224], sizes = [2, 32], strides = [1, 1]} : vector<2x256xf32> to vector<2x32xf32>
    %508 = math.tanh %503 : vector<2x32xf32>
    %509 = arith.mulf %507, %508 : vector<2x32xf32>
    %510 = tpu.concatenate %506, %509 in 1 : vector<2x32xf32>, vector<2x32xf32> -> vector<2x64xf32>
    %511 = arith.maximumf %256, %510 : vector<2x64xf32>
    %512 = vector.extract_strided_slice %511 {offsets = [0, 0], sizes = [2, 32], strides = [1, 1]} : vector<2x64xf32> to vector<2x32xf32>
    %513 = vector.extract_strided_slice %511 {offsets = [0, 32], sizes = [2, 32], strides = [1, 1]} : vector<2x64xf32> to vector<2x32xf32>
    %514 = arith.maximumf %512, %513 : vector<2x32xf32>
    %515 = arith.addf %256, %510 : vector<2x64xf32>
    %516 = vector.extract_strided_slice %515 {offsets = [0, 0], sizes = [2, 32], strides = [1, 1]} : vector<2x64xf32> to vector<2x32xf32>
    %517 = vector.extract_strided_slice %515 {offsets = [0, 32], sizes = [2, 32], strides = [1, 1]} : vector<2x64xf32> to vector<2x32xf32>
    %518 = arith.addf %516, %517 : vector<2x32xf32>
    %cst_52 = arith.constant 2.500000e-01 : f32
    %519 = vector.broadcast %cst_52 : f32 to vector<2x32xf32>
    %520 = arith.mulf %518, %519 : vector<2x32xf32>
    %521 = tpu.concatenate %514, %520 in 1 : vector<2x32xf32>, vector<2x32xf32> -> vector<2x64xf32>
    %cst_53 = arith.constant dense<0.000000e+00> : vector<2xf32>
    %522 = vector.multi_reduction <add>, %521, %cst_53 [1] : vector<2x64xf32> to vector<2xf32>
    %523 = vector.shape_cast %522 : vector<2xf32> to vector<2x1xf32>
    %cst_54 = arith.constant 6.400000e+01 : f32
    %524 = vector.broadcast %cst_54 : f32 to vector<2x1xf32>
    %525 = arith.divf %523, %524 : vector<2x1xf32>
    %526 = vector.broadcast %525 : vector<2x1xf32> to vector<2x64xf32>
    %527 = arith.subf %521, %526 : vector<2x64xf32>
    %528 = arith.mulf %527, %527 : vector<2x64xf32>
    %cst_55 = arith.constant dense<0.000000e+00> : vector<2xf32>
    %529 = vector.multi_reduction <add>, %528, %cst_55 [1] : vector<2x64xf32> to vector<2xf32>
    %530 = vector.shape_cast %529 : vector<2xf32> to vector<2x1xf32>
    %cst_56 = arith.constant 6.400000e+01 : f32
    %531 = vector.broadcast %cst_56 : f32 to vector<2x1xf32>
    %532 = arith.divf %530, %531 : vector<2x1xf32>
    %533 = vector.broadcast %525 : vector<2x1xf32> to vector<2x64xf32>
    %534 = arith.subf %521, %533 : vector<2x64xf32>
    %cst_57 = arith.constant 9.99999974E-6 : f32
    %535 = vector.broadcast %cst_57 : f32 to vector<2x1xf32>
    %536 = arith.addf %532, %535 : vector<2x1xf32>
    %537 = math.rsqrt %536 : vector<2x1xf32>
    %538 = vector.broadcast %537 : vector<2x1xf32> to vector<2x64xf32>
    %539 = arith.mulf %534, %538 : vector<2x64xf32>
    %c0_58 = arith.constant 0 : index
    %c0_59 = arith.constant 0 : index
    %540 = vector.load %arg3[%c0_58, %c0_59] : memref<100x64xf32, #tpu.memory_space<vmem>>, vector<1x64xf32>
    %541 = vector.broadcast %540 : vector<1x64xf32> to vector<2x64xf32>
    %542 = arith.mulf %539, %541 : vector<2x64xf32>
    %c1 = arith.constant 1 : index
    %c0_60 = arith.constant 0 : index
    %543 = vector.load %arg3[%c1, %c0_60] : memref<100x64xf32, #tpu.memory_space<vmem>>, vector<1x64xf32>
    %544 = vector.broadcast %543 : vector<1x64xf32> to vector<2x64xf32>
    %545 = arith.addf %542, %544 : vector<2x64xf32>
    %c2 = arith.constant 2 : index
    %c0_61 = arith.constant 0 : index
    %546 = vector.load %arg3[%c2, %c0_61] : memref<100x64xf32, #tpu.memory_space<vmem>>, vector<64x32xf32>
    %cst_62 = arith.constant dense<0.000000e+00> : vector<2x32xf32>
    %547 = tpu.matmul %545, %546, %cst_62 {dimension_numbers = #tpu.dot_dimension_numbers<[1], [0], [0], [1], [0, 0, 1, 1], [], []>} : vector<2x64xf32>, vector<64x32xf32>, vector<2x32xf32> -> vector<2x32xf32>
    %c66 = arith.constant 66 : index
    %c0_63 = arith.constant 0 : index
    %548 = vector.load %arg3[%c66, %c0_63] : memref<100x64xf32, #tpu.memory_space<vmem>>, vector<1x32xf32>
    %549 = vector.broadcast %548 : vector<1x32xf32> to vector<2x32xf32>
    %550 = arith.addf %547, %549 : vector<2x32xf32>
    %551 = math.tanh %550 : vector<2x32xf32>
    %c67 = arith.constant 67 : index
    %c0_64 = arith.constant 0 : index
    %552 = vector.load %arg3[%c67, %c0_64] : memref<100x64xf32, #tpu.memory_space<vmem>>, vector<32x4xf32>
    %cst_65 = arith.constant dense<0.000000e+00> : vector<2x4xf32>
    %553 = tpu.matmul %551, %552, %cst_65 {dimension_numbers = #tpu.dot_dimension_numbers<[1], [0], [0], [1], [0, 0, 1, 1], [], []>} : vector<2x32xf32>, vector<32x4xf32>, vector<2x4xf32> -> vector<2x4xf32>
    %c99 = arith.constant 99 : index
    %c0_66 = arith.constant 0 : index
    %554 = vector.load %arg3[%c99, %c0_66] : memref<100x64xf32, #tpu.memory_space<vmem>>, vector<1x4xf32>
    %555 = vector.broadcast %554 : vector<1x4xf32> to vector<2x4xf32>
    %556 = arith.addf %553, %555 : vector<2x4xf32>
    %c0_67 = arith.constant 0 : index
    %c0_68 = arith.constant 0 : index
    %557 = vector.load %arg4[%c0_67, %c0_68] : memref<2x4xf32, #tpu.memory_space<vmem>>, vector<2x4xf32>
    tpu.vector_store %arg4[%c0_67, %c0_68], %556 {strides = array<i32>} : memref<2x4xf32, #tpu.memory_space<vmem>>, vector<2x4xf32>,
    return
  }
}

</mosaic_0001>

<bundles_post_ra>
// kernel: tpu_custom_call.1
= control target key start
LH: loop header
LB: loop body
LE: loop exit
PB: predicated region body
PF: predicated region fallthrough
CT: control target
= control target key end

     0   :  { %9 = vsyncpa [#allocation3], 0  ;;  %s4506_s0 = inlined_call_operand.vmem [shape: s32[16,1], index: 0, kind: input, shape index: {}]   ;;  %s4507_s1 = inlined_call_operand.vmem [shape: f32[50,16], index: 1, kind: input, shape index: {}]   ;;  %s4508_s2 = inlined_call_operand.hbm [shape: f32[210,256], index: 2, kind: input, shape index: {}]   ;;  %s4509_s3 = inlined_call_operand.vmem [shape: f32[100,64], index: 3, kind: input, shape index: {}]   ;;  %s4510_s4 = inlined_call_operand.hbm [shape: f32[2,4], index: 4, kind: output, shape index: {}]  }
   0x1   :  { %10 = vsyncpa [#allocation4], 0  ;;  %s3819_s15 = smov [#allocation2]   ;;  %s3771_s19 = scalar_lea.hbm %s4508_s2, 6912 }
   0x2   :  { %s20_s16 = sshll.u32 %s3819_s15, 4  ;;  %p3772_p0 = scmp.ne.s32.totalorder %s4508_s2, %s3771_s19  ;;  %s21_s16 = int_to_ptr.vmem [resolvable:$true] %s20_s16 }
   0x3   :  { %p3775_p1 = scmp.lt.u32.totalorder %s3771_s19, %s4508_s2 }
   0x5   :  { %p3777_p2 = pnand %p3775_p1, %p3772_p0 }
   0x7   :  { %3780 = shalt.err (!%p3777_p2)
}
   0x8   :  { %s3781_s24 = scalar_lea.vmem %s21_s16, 6912  ;;  %p3786_p4 = scmp.lt.s32.totalorder %s21_s16, %s21_s16 }
   0x9   :  { %p3782_p3 = scmp.ne.s32.totalorder %s21_s16, %s3781_s24  ;;  %p3787_p5 = scmp.lt.s32.totalorder %s3781_s24, %s3781_s24 }
   0xb   :  { %p3788_p6 = por %p3787_p5, %p3786_p4 }
   0xd   :  { %p3789_p7 = pnand %p3788_p6, %p3782_p3 }
   0xf   :  { %3792 = shalt.err (!%p3789_p7)
}
  0x10   :  { %s3820_s25 = smov 256   ;;  %s3821_s26 = smov 16  }
  0x11   :  { %26 = dma.hbm_to_vmem [thread:$0]  %s4508_s2, 6912, %s21_s16, [#allocation3], %s3820_s25, %s3820_s25, %s3821_s26  }
  0x12   :  { %3815 = dma.done.wait [#allocation3], 6912  }
  0x13   :  { %3816 = vsyncadd [#allocation3], 4294960384  ;;  %v3822_v0 = vmov 0   ;;  %v32_v1 = vld [vmem:[%s4506_s0] sm:$0xff]  ;;  %v49_v3 = vld [vmem:[%s4507_s1 + $0x8] sm:$0xff]  ;;  %v3823_v9 = vmov 0.0   ;;  %v34_v20 = vlaneseq }
  0x14   :  { %3510 = vset.pattern.permute.xlu0 %v3822_v0  ;;  %v48_v2 = vld [vmem:[%s4507_s1] sm:$0xff]  ;;  %v50_v4 = vld [vmem:[%s4507_s1 + $0x10] sm:$0xff]  ;;  %v51_v5 = vld [vmem:[%s4507_s1 + $0x18] sm:$0xff]  ;;  %229 = vmatprep.mubr.f32.mxu1 %v3823_v9  ;;  %vm62_vm0 = vcmask 1041408   ;;  %vm55_vm1 = vcmask 408576   ;;  %vm158_vm4 = vcmask 130048  }
  0x15   :  { %37 = vperm.xlu0 %3510, %v32_v1   ;;  %v33_v6 = vld [vmem:[%s4506_s0 + $0x8] sm:$0xff]  ;;  %v3189_v7 = vpack.c.bf16 %v49_v3, %v48_v2  ;;  %v3193_v8 = vpack.c.bf16 %v51_v5, %v50_v4  ;;  %v52_v10 = vld [vmem:[%s4507_s1 + $0x20] sm:$0xff]  ;;  %v144_v14 = vld [vmem:[#allocation2 + $0x18] sm:$0xff]  ;;  %v35_v21 = vand.u32 127, %v34_v20  ;;  %v3948_v52 = vshrl.u32 %v34_v20, 7  ;;  %s3825_s19 = smov 32  }
  0x16   :  { %v53_v11 = vld [vmem:[%s4507_s1 + $0x28] sm:$0xff]  ;;  %v141_v15 = vld [vmem:[#allocation2] sm:$0xff]  ;;  %v143_v17 = vld [vmem:[#allocation2 + $0x10] sm:$0xff]  ;;  %vm394_vm5 = vcmask 261120   ;;  %vm261_vm6 = vcmask 523264   ;;  %vm1418_vm7 = vcmask 1043456  }
  0x17   :  { %3190 = vmatprep.subr.bf16.mxu0 %v3189_v7  ;;  %v3197_v12 = vpack.c.bf16 %v53_v11, %v52_v10  ;;  %v142_v13 = vld [vmem:[#allocation2 + $0x8] sm:$0xff]  ;;  %v3203_v18 = vpack.c.bf16 %v143_v17, %v141_v15  ;;  %v54_v19 = vld [vmem:[%s4507_s1 + $0x30] sm:$0x3]  ;;  %v245_v27 = vld [vmem:[#allocation2 + $0x38] sm:$0xff]  ;;  %v154_v53 = vsub.s32 1, %v3948_v52  ;;  %v150_v56 = vsub.s32 0, %v3948_v52 }
  0x18   :  { %3192 = vmatpush3.bf16.msra.mxu0 %v3189_v7  ;;  %v3201_v16 = vpack.c.bf16 %v144_v14, %v142_v13  ;;  %v243_v26 = vld [vmem:[#allocation2 + $0x28] sm:$0xff]  ;;  %v242_v29 = vld [vmem:[#allocation2 + $0x20] sm:$0xff]  ;;  %v244_v30 = vld [vmem:[#allocation2 + $0x30] sm:$0xff]  ;;  %s3824_s1 = smov 64   ;;  %vm1420_vm8 = vcmask 1045504   ;;  %s3826_s20 = smov 96  }
  0x19   :  { %40 = vperm.xlu0 %3510, %v33_v6   ;;  %3194 = vmatprep.subr.bf16.mxu0 %v3193_v8  ;;  %v3901_v28 = vpack.c.bf16 %v245_v27, %v243_v26  ;;  %v3903_v31 = vpack.c.bf16 %v244_v30, %v242_v29  ;;  %v247_v32 = vld [vmem:[#allocation2 + $0x48] sm:$0xff]  ;;  %v249_v33 = vld [vmem:[#allocation2 + $0x58] sm:$0xff]  ;;  %v246_v35 = vld [vmem:[#allocation2 + $0x40] sm:$0xff]  ;;  %vm2842_vm9 = vcmask 523270   ;;  %vm3828_vm10 = vmmov 0   ;;  %s3829_s24 = smov [#allocation5]  }
  0x1a   :  { %3202 = vmatprep.subr.bf16.mxu1 %v3201_v16  ;;  %v3908_v34 = vpack.c.bf16 %v249_v33, %v247_v32  ;;  %v248_v36 = vld [vmem:[#allocation2 + $0x50] sm:$0xff]  ;;  %v251_v38 = vld [vmem:[#allocation2 + $0x68] sm:$0xff]  ;;  %v253_v39 = vld [vmem:[#allocation2 + $0x78] sm:$0xff]  ;;  %s3047_s25 = sshll.u32 %s3829_s24, 4  ;;  %vm3039_vm11 = vcmask 25600   ;;  %s3048_s25 = int_to_ptr.vmem [resolvable:$true] %s3047_s25 }
  0x1b   :  { %3204 = vmatpush1.bf16.msra.mxu1 %v3203_v18  ;;  %v3910_v37 = vpack.c.bf16 %v248_v36, %v246_v35  ;;  %v3914_v40 = vpack.c.bf16 %v253_v39, %v251_v38  ;;  %v250_v41 = vld [vmem:[#allocation2 + $0x60] sm:$0xff]  ;;  %v252_v42 = vld [vmem:[#allocation2 + $0x70] sm:$0xff]  ;;  %v255_v44 = vld [vmem:[#allocation2 + $0x88] sm:$0xff]  ;;  %s3793_s26 = scalar_lea.vmem %s3048_s25, 32  ;;  %p3798_p9 = scmp.lt.s32.totalorder %s3048_s25, %s3048_s25 }
  0x1c   :  { %3196 = vmatpush3.bf16.msra.mxu0 %v3193_v8  ;;  %3206 = vmatprep.subr.bf16.mxu1 %v3901_v28  ;;  %v3916_v43 = vpack.c.bf16 %v252_v42, %v250_v41  ;;  %v257_v45 = vld [vmem:[#allocation2 + $0x98] sm:$0xff]  ;;  %v254_v47 = vld [vmem:[#allocation2 + $0x80] sm:$0xff]  ;;  %v256_v48 = vld [vmem:[#allocation2 + $0x90] sm:$0xff]  ;;  %p3794_p8 = scmp.ne.s32.totalorder %s3048_s25, %s3793_s26  ;;  %p3799_p10 = scmp.lt.s32.totalorder %s3793_s26, %s3793_s26 }
  0x1d   :  { %3198 = vmatprep.subr.bf16.mxu0 %v3197_v12  ;;  %v3920_v46 = vpack.c.bf16 %v257_v45, %v255_v44  ;;  %v3922_v49 = vpack.c.bf16 %v256_v48, %v254_v47  ;;  %v146_v54 = vld [vmem:[#allocation2 + $0x1a0] ss:$8 sm:$0x3] }
  0x1e   :  { %v155_v55 = vrot.slane %v146_v54, %v154_v53  ;;  %v151_v60 = vrot.slane %v146_v54, %v150_v56  ;;  %p3800_p11 = por %p3799_p10, %p3798_p9 }
  0x20   :  { %3200 = vmatpush3.bf16.msra.mxu0 %v3197_v12  ;;  %p3801_p12 = pnand %p3800_p11, %p3794_p8 }
  0x21   :  { %3154 = vmatprep.subr.msk.mxu0 %vm62_vm0, %v54_v19 }
  0x24   :  { %3155 = vmatpush3.msk.msra.mxu0 %vm62_vm0, %v54_v19 }
  0x25   :  { %3222 = vmatprep.subr.bf16.mxu0 %v3901_v28 }
  0x94   :  { %v38_v22 = vpop.permute.xlu0 %37 }
  0x95   :  { %vm42_vm2 = vcmp.eq.s32.totalorder %v38_v22, %v35_v21 }
  0x96   :  { %v3056_v23 = vsel %vm42_vm2, 1.0, %v3823_v9 }
  0x97   :  { %3156 = vmatprep.mubr.msk.f32.mxu0 %vm55_vm1, %v3056_v23 }
  0x98   :  { %v41_v24 = vpop.permute.xlu0 %40 }
  0x99   :  { %vm43_vm3 = vcmp.eq.s32.totalorder %v41_v24, %v35_v21 }
  0x9a   :  { %v3057_v25 = vsel %vm43_vm3, 1.0, %v3823_v9 }
  0x9b   :  { %3157 = vmatmul.mubr.msk.f32.vlgmr.msra.gmra.mrb[0].mxu0 %vm55_vm1, %v3057_v25 }
  0x9c   :  { %465 = vmatprep.mubr.f32.mxu0 %v3823_v9  ;;  %3224 = vmatpush1.bf16.msra.mxu0 %v3903_v31 }
  0x9d   :  { %3226 = vmatprep.subr.bf16.mxu0 %v3908_v34 }
  0xa0   :  { %3228 = vmatpush1.bf16.msra.mxu0 %v3910_v37 }
  0xa1   :  { %3230 = vmatprep.subr.bf16.mxu0 %v3914_v40 }
  0xa4   :  { %3232 = vmatpush1.bf16.msra.mxu0 %v3916_v43 }
  0xa5   :  { %3234 = vmatprep.subr.bf16.mxu0 %v3920_v46 }
  0xa8   :  { %3236 = vmatpush1.bf16.msra.mxu0 %v3922_v49 }
  0xa9   :  { %3254 = vmatprep.subr.bf16.mxu0 %v3901_v28 }
 0x16e   :  { %v3158_v50 = vpop.f32.mrb[0].mxu0 }
 0x16f   :  { %v132_v51 = vpop.f32.mrb[1].mxu0 }
 0x170   :  { %3061 = vmatmul.mubr.msk.f32.vlgmr.msra.gmra.mrb[0].mxu1 %vm158_vm4, %v132_v51 }
 0x171   :  { %3208 = vmatpush1.bf16.msra.mxu1 %v3903_v31  ;;  %235 = vmatprep.mubr.f32.mxu1 %v3823_v9 }
 0x172   :  { %3210 = vmatprep.subr.bf16.mxu1 %v3908_v34 }
 0x174   :  { %3062 = vmatmul.mubr.msk.f32.gmra.mrb[2].mxu1 %vm158_vm4, %v3158_v50 }
 0x175   :  { %3212 = vmatpush1.bf16.msra.mxu1 %v3910_v37  ;;  %329 = vmatprep.mubr.f32.mxu1 %v3823_v9 }
 0x176   :  { %3214 = vmatprep.subr.bf16.mxu1 %v3914_v40 }
 0x179   :  { %3216 = vmatpush1.bf16.msra.mxu1 %v3916_v43 }
 0x17a   :  { %3218 = vmatprep.subr.bf16.mxu1 %v3920_v46 }
 0x17d   :  { %3220 = vmatpush1.bf16.msra.mxu1 %v3922_v49 }
 0x17e   :  { %3238 = vmatprep.subr.bf16.mxu1 %v3901_v28 }
 0x180   :  { %330 = vmatmul.mubr.f32.vlgmr.msra.gmra.mrb[4].mxu1 %v3823_v9 }
 0x181   :  { %3240 = vmatpush1.bf16.msra.mxu1 %v3903_v31  ;;  %611 = vmatprep.mubr.f32.mxu1 %v3823_v9 }
 0x182   :  { %3242 = vmatprep.subr.bf16.mxu1 %v3908_v34 }
 0x185   :  { %3244 = vmatpush1.bf16.msra.mxu1 %v3910_v37 }
 0x186   :  { %3246 = vmatprep.subr.bf16.mxu1 %v3914_v40 }
 0x189   :  { %3248 = vmatpush1.bf16.msra.mxu1 %v3916_v43 }
 0x18a   :  { %3250 = vmatprep.subr.bf16.mxu1 %v3920_v46 }
 0x18d   :  { %3252 = vmatpush1.bf16.msra.mxu1 %v3922_v49 }
 0x18e   :  { %3270 = vmatprep.subr.bf16.mxu1 %v3901_v28 }
 0x243   :  { %v231_v57 = vpop.f32.mrb[0].mxu1 }
 0x244   :  { %v233_v58 = vpop.f32.mrb[1].mxu1  ;;  %v3962_v1 = vadd.f32 %v231_v57, %v151_v60 }
 0x245   :  { %v3954_v59 = vadd.f32 %v233_v58, %v155_v55 }
 0x247   :  { %v237_v61 = vpop.f32.mrb[2].mxu1 }
 0x248   :  { %v3958_v62 = vadd.f32 %v237_v61, %v151_v60  ;;  %v239_v63 = vpop.f32.mrb[3].mxu1 }
 0x249   :  { %v3960_v0 = vadd.f32 %v239_v63, %v155_v55 }
 0x24b   :  { %v259_v4 = vrot.slane %v3960_v0, 6  ;;  %v396_v47 = vrot.slane %v3960_v0, 2 }
 0x253   :  { %v331_v2 = vpop.f32.mrb[4].mxu1 }
 0x254   :  { %v336_v3 = vadd.f32 %v331_v2, %v3962_v1  ;;  %v333_v5 = vpop.f32.mrb[5].mxu1 }
 0x255   :  { %v337_v6 = vadd.f32 %v333_v5, %v259_v4 }
 0x256   :  { %3511 = vtanh.f32 %v336_v3  ;;  %v3063_v10 = vmul.f32 -1.442695, %v336_v3 }
 0x257   :  { %3513 = vtanh.f32 %v337_v6  ;;  %v3064_v11 = vmul.f32 -1.442695, %v337_v6 }
 0x258   :  { %3515 = vpow2.f32 %v3063_v10 }
 0x259   :  { %3517 = vpow2.f32 %v3064_v11 }
 0x260   :  { %v3512_v7 = vpop.eup %3511 }
 0x261   :  { %354 = vrot.lane.b32.xlu1 %v3512_v7, %s3824_s1  ;;  %v3514_v8 = vpop.eup %3513 }
 0x262   :  { %v3516_v12 = vpop.eup %3515 }
 0x263   :  { %v344_v13 = vadd.f32 1.0, %v3516_v12  ;;  %v3518_v14 = vpop.eup %3517 }
 0x264   :  { %v345_v15 = vadd.f32 1.0, %v3518_v14 }
 0x265   :  { %365 = vrot.lane.b32.xlu1 %v3514_v8, %s3824_s1  ;;  %3519 = vrcp.f32 %v344_v13 }
 0x266   :  { %3521 = vrcp.f32 %v345_v15 }
 0x26f   :  { %v3520_v16 = vpop.eup %3519 }
 0x270   :  { %v3522_v19 = vpop.eup %3521  ;;  %v352_v22 = vmul.f32 0.0, %v3520_v16 }
 0x271   :  { %v363_v25 = vmul.f32 0.0, %v3522_v19 }
 0x2d3   :  { %v355_v17 = vpop.permute.xlu1 %354 }
 0x2d4   :  { %v357_v18 = vmul.f32 %v3520_v16, %v355_v17 }
 0x2d6   :  { %359 = vrot.lane.b32.xlu0 %v357_v18, %s3825_s19 }
 0x2d7   :  { %v366_v20 = vpop.permute.xlu1 %365 }
 0x2d8   :  { %v368_v21 = vmul.f32 %v3522_v19, %v366_v20 }
 0x2da   :  { %370 = vrot.lane.b32.xlu1 %v368_v21, %s3825_s19 }
 0x348   :  { %v360_v23 = vpop.permute.xlu0 %359 }
 0x349   :  { %v3972_v24 = vadd.f32 %v360_v23, %v352_v22 }
 0x34b   :  { %3523 = vtanh.f32 %v3972_v24  ;;  %v495_v11 = vrot.slane %v3972_v24, 6 }
 0x34c   :  { %v371_v26 = vpop.permute.xlu1 %370 }
 0x34d   :  { %v3975_v27 = vadd.f32 %v371_v26, %v363_v25 }
 0x34f   :  { %3525 = vtanh.f32 %v3975_v27  ;;  %v509_v12 = vrot.slane %v3975_v27, 6 }
 0x355   :  { %v3524_v29 = vpop.eup %3523 }
 0x356   :  { %376 = vrot.lane.b32.xlu0 %v3524_v29, %s3824_s1 }
 0x359   :  { %v3526_v30 = vpop.eup %3525 }
 0x35a   :  { %382 = vrot.lane.b32.xlu1 %v3526_v30, %s3824_s1 }
 0x3c8   :  { %v377_v32 = vpop.permute.xlu0 %376 }
 0x3c9   :  { %v3980_v33 = vmul.f32 %v3520_v16, %v377_v32 }
 0x3cb   :  { %387 = vrot.lane.b32.xlu0 %v3980_v33, %s3825_s19 }
 0x3cc   :  { %v383_v35 = vpop.permute.xlu1 %382 }
 0x3cd   :  { %v3984_v36 = vmul.f32 %v3522_v19, %v383_v35 }
 0x3cf   :  { %391 = vrot.lane.b32.xlu1 %v3984_v36, %s3824_s1 }
 0x43d   :  { %v388_v38 = vpop.permute.xlu0 %387 }
 0x441   :  { %v392_v39 = vpop.permute.xlu1 %391 }
 0x442   :  { %v395_v41 = vsel %vm394_vm5, %v388_v38, %v392_v39 }
 0x443   :  { %3065 = vmatmul.mubr.msk.f32.vlgmr.msra.gmra.mrb[2].mxu0 %vm261_vm6, %v395_v41 }
 0x444   :  { %3256 = vmatpush1.bf16.msra.mxu0 %v3903_v31  ;;  %757 = vmatprep.mubr.f32.mxu0 %v3823_v9 }
 0x445   :  { %3258 = vmatprep.subr.bf16.mxu0 %v3908_v34 }
 0x448   :  { %3260 = vmatpush1.bf16.msra.mxu0 %v3910_v37 }
 0x449   :  { %3262 = vmatprep.subr.bf16.mxu0 %v3914_v40 }
 0x44c   :  { %3264 = vmatpush1.bf16.msra.mxu0 %v3916_v43 }
 0x44d   :  { %3266 = vmatprep.subr.bf16.mxu0 %v3920_v46 }
 0x450   :  { %3268 = vmatpush1.bf16.msra.mxu0 %v3922_v49 }
 0x451   :  { %3286 = vmatprep.subr.bf16.mxu0 %v3901_v28 }
 0x516   :  { %v467_v42 = vpop.f32.mrb[2].mxu0 }
 0x517   :  { %v474_v44 = vrot.slane %v467_v42, 6  ;;  %v469_v45 = vpop.f32.mrb[3].mxu0 }
 0x518   :  { %v475_v48 = vrot.slane %v469_v45, 6 }
 0x519   :  { %v478_v50 = vadd.f32 %v474_v44, %v3962_v1 }
 0x51a   :  { %v479_v51 = vadd.f32 %v475_v48, %v396_v47 }
 0x51b   :  { %3527 = vtanh.f32 %v478_v50  ;;  %v3066_v57 = vmul.f32 -1.442695, %v478_v50 }
 0x51c   :  { %3529 = vtanh.f32 %v479_v51  ;;  %v3067_v58 = vmul.f32 -1.442695, %v479_v51 }
 0x51d   :  { %3531 = vpow2.f32 %v3066_v57 }
 0x51e   :  { %3533 = vpow2.f32 %v3067_v58 }
 0x525   :  { %v3528_v54 = vpop.eup %3527 }
 0x526   :  { %v3530_v55 = vpop.eup %3529  ;;  %499 = vrot.lane.b32.xlu0 %v3528_v54, %s3824_s1 }
 0x527   :  { %513 = vrot.lane.b32.xlu1 %v3530_v55, %s3824_s1  ;;  %v3532_v60 = vpop.eup %3531 }
 0x528   :  { %v3534_v61 = vpop.eup %3533  ;;  %v486_v63 = vadd.f32 1.0, %v3532_v60 }
 0x529   :  { %v487_v2 = vadd.f32 1.0, %v3534_v61 }
 0x52a   :  { %3535 = vrcp.f32 %v486_v63 }
 0x52b   :  { %3537 = vrcp.f32 %v487_v2 }
 0x534   :  { %v3536_v3 = vpop.eup %3535 }
 0x535   :  { %v3538_v6 = vpop.eup %3537  ;;  %v497_v13 = vmul.f32 %v3536_v3, %v495_v11 }
 0x536   :  { %v511_v15 = vmul.f32 %v3538_v6, %v509_v12 }
 0x598   :  { %v500_v5 = vpop.permute.xlu0 %499 }
 0x599   :  { %v502_v7 = vmul.f32 %v3536_v3, %v500_v5  ;;  %v514_v8 = vpop.permute.xlu1 %513 }
 0x59a   :  { %v516_v10 = vmul.f32 %v3538_v6, %v514_v8 }
 0x59b   :  { %504 = vrot.lane.b32.xlu0 %v502_v7, %s3825_s19 }
 0x59c   :  { %518 = vrot.lane.b32.xlu1 %v516_v10, %s3825_s19 }
 0x60d   :  { %v505_v14 = vpop.permute.xlu0 %504 }
 0x60e   :  { %v507_v16 = vadd.f32 %v505_v14, %v497_v13  ;;  %v519_v17 = vpop.permute.xlu1 %518 }
 0x60f   :  { %v521_v18 = vadd.f32 %v519_v17, %v511_v15 }
 0x610   :  { %3539 = vtanh.f32 %v507_v16  ;;  %v641_v2 = vrot.slane %v507_v16, 6 }
 0x611   :  { %3541 = vtanh.f32 %v521_v18 }
 0x61a   :  { %v3540_v19 = vpop.eup %3539 }
 0x61b   :  { %v3542_v20 = vpop.eup %3541  ;;  %524 = vrot.lane.b32.xlu0 %v3540_v19, %s3824_s1 }
 0x61c   :  { %530 = vrot.lane.b32.xlu1 %v3542_v20, %s3824_s1 }
 0x68d   :  { %v525_v21 = vpop.permute.xlu0 %524 }
 0x68e   :  { %v4011_v22 = vmul.f32 %v3536_v3, %v525_v21  ;;  %v531_v23 = vpop.permute.xlu1 %530  ;;  %v655_v3 = vrot.slane %v521_v18, 6 }
 0x68f   :  { %v4013_v24 = vmul.f32 %v3538_v6, %v531_v23 }
 0x690   :  { %535 = vrot.lane.b32.xlu0 %v4011_v22, %s3825_s19  ;;  %v1417_v18 = vsel %vm62_vm0, %v3980_v33, %v4011_v22 }
 0x691   :  { %539 = vrot.lane.b32.xlu1 %v4013_v24, %s3824_s1 }
 0x702   :  { %v536_v25 = vpop.permute.xlu0 %535 }
 0x703   :  { %v540_v26 = vpop.permute.xlu1 %539 }
 0x704   :  { %v542_v27 = vsel %vm394_vm5, %v536_v25, %v540_v26 }
 0x705   :  { %v544_v29 = vrot.slane %v542_v27, 2 }
 0x707   :  { %3068 = vmatmul.mubr.msk.f32.vlgmr.msra.gmra.mrb[6].mxu1 %vm261_vm6, %v544_v29 }
 0x708   :  { %3272 = vmatpush1.bf16.msra.mxu1 %v3903_v31  ;;  %906 = vmatprep.mubr.f32.mxu1 %v3823_v9 }
 0x709   :  { %3274 = vmatprep.subr.bf16.mxu1 %v3908_v34 }
 0x70c   :  { %3276 = vmatpush1.bf16.msra.mxu1 %v3910_v37 }
 0x70d   :  { %3278 = vmatprep.subr.bf16.mxu1 %v3914_v40 }
 0x710   :  { %3280 = vmatpush1.bf16.msra.mxu1 %v3916_v43 }
 0x711   :  { %3282 = vmatprep.subr.bf16.mxu1 %v3920_v46 }
 0x714   :  { %3284 = vmatpush1.bf16.msra.mxu1 %v3922_v49 }
 0x715   :  { %3302 = vmatprep.subr.bf16.mxu1 %v3901_v28 }
 0x7da   :  { %v613_v30 = vpop.f32.mrb[6].mxu1 }
 0x7db   :  { %v620_v32 = vrot.slane %v613_v30, 4  ;;  %v615_v35 = vpop.f32.mrb[7].mxu1 }
 0x7dc   :  { %v621_v38 = vrot.slane %v615_v35, 4 }
 0x7dd   :  { %v624_v39 = vadd.f32 %v620_v32, %v3962_v1 }
 0x7de   :  { %v625_v41 = vadd.f32 %v621_v38, %v259_v4 }
 0x7df   :  { %3543 = vtanh.f32 %v624_v39  ;;  %v3069_v45 = vmul.f32 -1.442695, %v624_v39 }
 0x7e0   :  { %3545 = vtanh.f32 %v625_v41  ;;  %v3070_v48 = vmul.f32 -1.442695, %v625_v41 }
 0x7e1   :  { %3547 = vpow2.f32 %v3069_v45 }
 0x7e2   :  { %3549 = vpow2.f32 %v3070_v48 }
 0x7e9   :  { %v3544_v42 = vpop.eup %3543 }
 0x7ea   :  { %v3546_v44 = vpop.eup %3545  ;;  %645 = vrot.lane.b32.xlu0 %v3544_v42, %s3824_s1 }
 0x7eb   :  { %659 = vrot.lane.b32.xlu1 %v3546_v44, %s3824_s1  ;;  %v3548_v50 = vpop.eup %3547 }
 0x7ec   :  { %v3550_v51 = vpop.eup %3549  ;;  %v632_v54 = vadd.f32 1.0, %v3548_v50 }
 0x7ed   :  { %v633_v55 = vadd.f32 1.0, %v3550_v51 }
 0x7ee   :  { %3551 = vrcp.f32 %v632_v54 }
 0x7ef   :  { %3553 = vrcp.f32 %v633_v55 }
 0x7f8   :  { %v3552_v57 = vpop.eup %3551 }
 0x7f9   :  { %v3554_v58 = vpop.eup %3553  ;;  %v643_v5 = vmul.f32 %v3552_v57, %v641_v2 }
 0x7fa   :  { %v657_v7 = vmul.f32 %v3554_v58, %v655_v3 }
 0x85c   :  { %v646_v4 = vpop.permute.xlu0 %645 }
 0x85d   :  { %v648_v60 = vmul.f32 %v3552_v57, %v646_v4  ;;  %v660_v61 = vpop.permute.xlu1 %659 }
 0x85e   :  { %v662_v63 = vmul.f32 %v3554_v58, %v660_v61 }
 0x85f   :  { %650 = vrot.lane.b32.xlu0 %v648_v60, %s3825_s19 }
 0x860   :  { %664 = vrot.lane.b32.xlu1 %v662_v63, %s3825_s19 }
 0x8d1   :  { %v651_v6 = vpop.permute.xlu0 %650 }
 0x8d2   :  { %v4037_v8 = vadd.f32 %v651_v6, %v643_v5  ;;  %v665_v10 = vpop.permute.xlu1 %664 }
 0x8d3   :  { %v4039_v11 = vadd.f32 %v665_v10, %v657_v7 }
 0x8d4   :  { %3555 = vtanh.f32 %v4037_v8  ;;  %v787_v51 = vrot.slane %v4037_v8, 6 }
 0x8d5   :  { %3557 = vtanh.f32 %v4039_v11  ;;  %v801_v54 = vrot.slane %v4039_v11, 6 }
 0x8de   :  { %v3556_v12 = vpop.eup %3555 }
 0x8df   :  { %v3558_v13 = vpop.eup %3557  ;;  %670 = vrot.lane.b32.xlu0 %v3556_v12, %s3824_s1  ;;  %v1437_v12 = vrot.slane %v4013_v24, 6  ;;  %v836_v24 = vrot.slane %v3954_v59, 6 }
 0x8e0   :  { %676 = vrot.lane.b32.xlu1 %v3558_v13, %s3824_s1  ;;  %v1439_v13 = vrot.slane %v3984_v36, 2 }
 0x951   :  { %v671_v14 = vpop.permute.xlu0 %670 }
 0x952   :  { %v673_v15 = vmul.f32 %v3552_v57, %v671_v14  ;;  %v677_v16 = vpop.permute.xlu1 %676 }
 0x953   :  { %v4045_v17 = vmul.f32 %v3554_v58, %v677_v16 }
 0x954   :  { %681 = vrot.lane.b32.xlu0 %v673_v15, %s3825_s19  ;;  %v4052_v19 = vsel %vm1418_vm7, %v1417_v18, %v673_v15 }
 0x955   :  { %685 = vrot.lane.b32.xlu1 %v4045_v17, %s3824_s1  ;;  %v1435_v10 = vrot.slane %v4045_v17, 2 }
 0x9c6   :  { %v682_v20 = vpop.permute.xlu0 %681 }
 0x9c7   :  { %v686_v21 = vpop.permute.xlu1 %685 }
 0x9c8   :  { %v688_v23 = vsel %vm394_vm5, %v682_v20, %v686_v21 }
 0x9c9   :  { %v690_v25 = vrot.slane %v688_v23, 4 }
 0x9cb   :  { %3071 = vmatmul.mubr.msk.f32.vlgmr.msra.gmra.mrb[4].mxu0 %vm261_vm6, %v690_v25 }
 0x9cc   :  { %3288 = vmatpush1.bf16.msra.mxu0 %v3903_v31  ;;  %1047 = vmatprep.mubr.f32.mxu0 %v3823_v9 }
 0x9cd   :  { %3290 = vmatprep.subr.bf16.mxu0 %v3908_v34 }
 0x9d0   :  { %3292 = vmatpush1.bf16.msra.mxu0 %v3910_v37 }
 0x9d1   :  { %3294 = vmatprep.subr.bf16.mxu0 %v3914_v40 }
 0x9d4   :  { %3296 = vmatpush1.bf16.msra.mxu0 %v3916_v43 }
 0x9d5   :  { %3298 = vmatprep.subr.bf16.mxu0 %v3920_v46 }
 0x9d8   :  { %3300 = vmatpush1.bf16.msra.mxu0 %v3922_v49 }
 0x9d9   :  { %3318 = vmatprep.subr.bf16.mxu0 %v3901_v28 }
 0xa9e   :  { %v759_v33 = vpop.f32.mrb[4].mxu0 }
 0xa9f   :  { %v766_v22 = vrot.slane %v759_v33, 2  ;;  %v761_v26 = vpop.f32.mrb[5].mxu0 }
 0xaa0   :  { %v767_v27 = vrot.slane %v761_v26, 2 }
 0xaa1   :  { %v770_v29 = vadd.f32 %v766_v22, %v3962_v1 }
 0xaa2   :  { %v771_v30 = vadd.f32 %v767_v27, %v396_v47 }
 0xaa3   :  { %3559 = vtanh.f32 %v770_v29  ;;  %v3072_v38 = vmul.f32 -1.442695, %v770_v29 }
 0xaa4   :  { %3561 = vtanh.f32 %v771_v30  ;;  %v3073_v39 = vmul.f32 -1.442695, %v771_v30 }
 0xaa5   :  { %3563 = vpow2.f32 %v3072_v38 }
 0xaa6   :  { %3565 = vpow2.f32 %v3073_v39 }
 0xaad   :  { %v3560_v32 = vpop.eup %3559 }
 0xaae   :  { %v3562_v35 = vpop.eup %3561  ;;  %791 = vrot.lane.b32.xlu0 %v3560_v32, %s3824_s1 }
 0xaaf   :  { %805 = vrot.lane.b32.xlu1 %v3562_v35, %s3824_s1  ;;  %v3564_v28 = vpop.eup %3563 }
 0xab0   :  { %v3566_v41 = vpop.eup %3565  ;;  %v778_v42 = vadd.f32 1.0, %v3564_v28 }
 0xab1   :  { %v779_v44 = vadd.f32 1.0, %v3566_v41 }
 0xab2   :  { %3567 = vrcp.f32 %v778_v42 }
 0xab3   :  { %3569 = vrcp.f32 %v779_v44 }
 0xabc   :  { %v3568_v0 = vpop.eup %3567 }
 0xabd   :  { %v3570_v47 = vpop.eup %3569  ;;  %v789_v55 = vmul.f32 %v3568_v0, %v787_v51 }
 0xabe   :  { %v803_v4 = vmul.f32 %v3570_v47, %v801_v54 }
 0xb20   :  { %v792_v1 = vpop.permute.xlu0 %791 }
 0xb21   :  { %v794_v45 = vmul.f32 %v3568_v0, %v792_v1  ;;  %v806_v48 = vpop.permute.xlu1 %805 }
 0xb22   :  { %v808_v50 = vmul.f32 %v3570_v47, %v806_v48 }
 0xb23   :  { %796 = vrot.lane.b32.xlu0 %v794_v45, %s3825_s19 }
 0xb24   :  { %810 = vrot.lane.b32.xlu1 %v808_v50, %s3825_s19 }
 0xb95   :  { %v797_v57 = vpop.permute.xlu0 %796 }
 0xb96   :  { %v4076_v58 = vadd.f32 %v797_v57, %v789_v55  ;;  %v811_v60 = vpop.permute.xlu1 %810 }
 0xb97   :  { %v4078_v61 = vadd.f32 %v811_v60, %v803_v4 }
 0xb98   :  { %3571 = vtanh.f32 %v4076_v58 }
 0xb99   :  { %3573 = vtanh.f32 %v4078_v61  ;;  %v944_v1 = vrot.slane %v4078_v61, 6 }
 0xba2   :  { %v3572_v63 = vpop.eup %3571 }
 0xba3   :  { %v3574_v2 = vpop.eup %3573  ;;  %816 = vrot.lane.b32.xlu0 %v3572_v63, %s3824_s1 }
 0xba4   :  { %822 = vrot.lane.b32.xlu1 %v3574_v2, %s3824_s1 }
 0xc15   :  { %v817_v3 = vpop.permute.xlu0 %816 }
 0xc16   :  { %v819_v5 = vmul.f32 %v3568_v0, %v817_v3  ;;  %v823_v6 = vpop.permute.xlu1 %822  ;;  %v930_v0 = vrot.slane %v4076_v58, 6 }
 0xc17   :  { %v825_v7 = vmul.f32 %v3570_v47, %v823_v6 }
 0xc18   :  { %827 = vrot.lane.b32.xlu0 %v819_v5, %s3825_s19  ;;  %v4087_v8 = vsel %vm1420_vm8, %v4052_v19, %v819_v5 }
 0xc19   :  { %v1433_v11 = vrot.slane %v825_v7, 6  ;;  %831 = vrot.lane.b32.xlu1 %v825_v7, %s3824_s1 }
 0xc1b   :  { %v1444_v14 = vsel %vm62_vm0, %v1433_v11, %v1435_v10  ;;  %v978_v10 = vrot.slane %v3954_v59, 2 }
 0xc1c   :  { %v1445_v15 = vsel %vm1418_vm7, %v1444_v14, %v1437_v12 }
 0xc1d   :  { %v4096_v16 = vsel %vm1420_vm8, %v1445_v15, %v1439_v13 }
 0xc8a   :  { %v828_v18 = vpop.permute.xlu0 %827 }
 0xc8b   :  { %v832_v20 = vpop.permute.xlu1 %831 }
 0xc8c   :  { %v834_v19 = vsel %vm394_vm5, %v828_v18, %v832_v20 }
 0xc8d   :  { %v839_v21 = vrot.slane %v834_v19, 6 }
 0xc8f   :  { %3074 = vmatmul.mubr.msk.f32.vlgmr.msra.gmra.mrb[8].mxu1 %vm261_vm6, %v839_v21 }
 0xc90   :  { %3304 = vmatpush1.bf16.msra.mxu1 %v3903_v31  ;;  %1193 = vmatprep.mubr.f32.mxu1 %v3823_v9 }
 0xc91   :  { %3306 = vmatprep.subr.bf16.mxu1 %v3908_v34 }
 0xc94   :  { %3308 = vmatpush1.bf16.msra.mxu1 %v3910_v37 }
 0xc95   :  { %3310 = vmatprep.subr.bf16.mxu1 %v3914_v40 }
 0xc98   :  { %3312 = vmatpush1.bf16.msra.mxu1 %v3916_v43 }
 0xc99   :  { %3314 = vmatprep.subr.bf16.mxu1 %v3920_v46 }
 0xc9c   :  { %3316 = vmatpush1.bf16.msra.mxu1 %v3922_v49 }
 0xd62   :  { %v908_v36 = vpop.f32.mrb[8].mxu1 }
 0xd63   :  { %v913_v17 = vadd.f32 %v908_v36, %v3958_v62  ;;  %v910_v23 = vpop.f32.mrb[9].mxu1 }
 0xd64   :  { %v914_v25 = vadd.f32 %v910_v23, %v836_v24 }
 0xd65   :  { %3575 = vtanh.f32 %v913_v17  ;;  %v3075_v26 = vmul.f32 -1.442695, %v913_v17 }
 0xd66   :  { %3577 = vtanh.f32 %v914_v25  ;;  %v3076_v27 = vmul.f32 -1.442695, %v914_v25 }
 0xd67   :  { %3579 = vpow2.f32 %v3075_v26 }
 0xd68   :  { %3581 = vpow2.f32 %v3076_v27 }
 0xd6f   :  { %v3576_v33 = vpop.eup %3575 }
 0xd70   :  { %v3578_v22 = vpop.eup %3577  ;;  %934 = vrot.lane.b32.xlu0 %v3576_v33, %s3824_s1 }
 0xd71   :  { %948 = vrot.lane.b32.xlu1 %v3578_v22, %s3824_s1  ;;  %v3580_v29 = vpop.eup %3579 }
 0xd72   :  { %v3582_v30 = vpop.eup %3581  ;;  %v921_v32 = vadd.f32 1.0, %v3580_v29 }
 0xd73   :  { %v922_v35 = vadd.f32 1.0, %v3582_v30 }
 0xd74   :  { %3583 = vrcp.f32 %v921_v32 }
 0xd75   :  { %3585 = vrcp.f32 %v922_v35 }
 0xd7e   :  { %v3584_v38 = vpop.eup %3583 }
 0xd7f   :  { %v3586_v28 = vpop.eup %3585  ;;  %v932_v47 = vmul.f32 %v3584_v38, %v930_v0 }
 0xd80   :  { %v946_v48 = vmul.f32 %v3586_v28, %v944_v1 }
 0xde2   :  { %v935_v39 = vpop.permute.xlu0 %934 }
 0xde3   :  { %v937_v41 = vmul.f32 %v3584_v38, %v935_v39  ;;  %v949_v42 = vpop.permute.xlu1 %948 }
 0xde4   :  { %v951_v44 = vmul.f32 %v3586_v28, %v949_v42 }
 0xde5   :  { %939 = vrot.lane.b32.xlu0 %v937_v41, %s3825_s19 }
 0xde6   :  { %953 = vrot.lane.b32.xlu1 %v951_v44, %s3825_s19 }
 0xe57   :  { %v940_v45 = vpop.permute.xlu0 %939 }
 0xe58   :  { %v942_v50 = vadd.f32 %v940_v45, %v932_v47  ;;  %v954_v51 = vpop.permute.xlu1 %953 }
 0xe59   :  { %v956_v54 = vadd.f32 %v954_v51, %v946_v48 }
 0xe5a   :  { %3587 = vtanh.f32 %v942_v50  ;;  %v1077_v17 = vrot.slane %v942_v50, 6 }
 0xe5b   :  { %3589 = vtanh.f32 %v956_v54  ;;  %v1091_v23 = vrot.slane %v956_v54, 6 }
 0xe64   :  { %v3588_v55 = vpop.eup %3587 }
 0xe65   :  { %v3590_v57 = vpop.eup %3589  ;;  %959 = vrot.lane.b32.xlu0 %v3588_v55, %s3824_s1 }
 0xe66   :  { %965 = vrot.lane.b32.xlu1 %v3590_v57, %s3824_s1 }
 0xed7   :  { %v960_v4 = vpop.permute.xlu0 %959 }
 0xed8   :  { %v4120_v60 = vmul.f32 %v3584_v38, %v960_v4  ;;  %v966_v58 = vpop.permute.xlu1 %965 }
 0xed9   :  { %v4122_v63 = vmul.f32 %v3586_v28, %v966_v58 }
 0xeda   :  { %970 = vrot.lane.b32.xlu0 %v4120_v60, %s3825_s19 }
 0xedb   :  { %974 = vrot.lane.b32.xlu1 %v4122_v63, %s3824_s1 }
 0xf4c   :  { %v971_v61 = vpop.permute.xlu0 %970 }
 0xf4d   :  { %v975_v2 = vpop.permute.xlu1 %974 }
 0xf4e   :  { %v977_v3 = vsel %vm394_vm5, %v971_v61, %v975_v2 }
 0xf4f   :  { %3077 = vmatmul.mubr.msk.f32.vlgmr.msra.gmra.mrb[6].mxu0 %vm261_vm6, %v977_v3 }
 0xf50   :  { %3320 = vmatpush1.bf16.msra.mxu0 %v3903_v31  ;;  %1339 = vmatprep.mubr.f32.mxu0 %v3823_v9 }
 0xf51   :  { %3322 = vmatprep.subr.bf16.mxu0 %v3908_v34 }
 0xf54   :  { %3324 = vmatpush1.bf16.msra.mxu0 %v3910_v37 }
 0xf55   :  { %3326 = vmatprep.subr.bf16.mxu0 %v3914_v40 }
 0xf58   :  { %3328 = vmatpush1.bf16.msra.mxu0 %v3916_v43 }
 0xf59   :  { %3330 = vmatprep.subr.bf16.mxu0 %v3920_v46 }
 0xf5c   :  { %3332 = vmatpush1.bf16.msra.mxu0 %v3922_v49 }
0x1022   :  { %v1049_v5 = vpop.f32.mrb[6].mxu0 }
0x1023   :  { %v1056_v6 = vrot.slane %v1049_v5, 6  ;;  %v1051_v7 = vpop.f32.mrb[7].mxu0 }
0x1024   :  { %v1057_v31 = vrot.slane %v1051_v7, 6 }
0x1025   :  { %v1060_v11 = vadd.f32 %v1056_v6, %v3958_v62 }
0x1026   :  { %v1061_v34 = vadd.f32 %v1057_v31, %v978_v10 }
0x1027   :  { %3591 = vtanh.f32 %v1060_v11  ;;  %v3078_v43 = vmul.f32 -1.442695, %v1060_v11 }
0x1028   :  { %3593 = vtanh.f32 %v1061_v34  ;;  %v3079_v46 = vmul.f32 -1.442695, %v1061_v34 }
0x1029   :  { %3595 = vpow2.f32 %v3078_v43 }
0x102a   :  { %3597 = vpow2.f32 %v3079_v46 }
0x1031   :  { %v3592_v37 = vpop.eup %3591 }
0x1032   :  { %v3594_v40 = vpop.eup %3593  ;;  %1081 = vrot.lane.b32.xlu0 %v3592_v37, %s3824_s1 }
0x1033   :  { %1095 = vrot.lane.b32.xlu1 %v3594_v40, %s3824_s1  ;;  %v3596_v49 = vpop.eup %3595 }
0x1034   :  { %v3598_v12 = vpop.eup %3597  ;;  %v1068_v13 = vadd.f32 1.0, %v3596_v49 }
0x1035   :  { %v1069_v14 = vadd.f32 1.0, %v3598_v12 }
0x1036   :  { %3599 = vrcp.f32 %v1068_v13 }
0x1037   :  { %3601 = vrcp.f32 %v1069_v14 }
0x1040   :  { %v3600_v15 = vpop.eup %3599 }
0x1041   :  { %v3602_v20 = vpop.eup %3601  ;;  %v1079_v25 = vmul.f32 %v3600_v15, %v1077_v17 }
0x1042   :  { %v1093_v22 = vmul.f32 %v3602_v20, %v1091_v23 }
0x10a4   :  { %v1082_v18 = vpop.permute.xlu0 %1081 }
0x10a5   :  { %v1084_v19 = vmul.f32 %v3600_v15, %v1082_v18  ;;  %v1096_v21 = vpop.permute.xlu1 %1095 }
0x10a6   :  { %v1098_v36 = vmul.f32 %v3602_v20, %v1096_v21 }
0x10a7   :  { %1086 = vrot.lane.b32.xlu0 %v1084_v19, %s3825_s19 }
0x10a8   :  { %1100 = vrot.lane.b32.xlu1 %v1098_v36, %s3825_s19 }
0x1119   :  { %v1087_v33 = vpop.permute.xlu0 %1086 }
0x111a   :  { %v1089_v26 = vadd.f32 %v1087_v33, %v1079_v25  ;;  %v1101_v27 = vpop.permute.xlu1 %1100 }
0x111b   :  { %v1103_v29 = vadd.f32 %v1101_v27, %v1093_v22 }
0x111c   :  { %3603 = vtanh.f32 %v1089_v26  ;;  %v1223_v34 = vrot.slane %v1089_v26, 6 }
0x111d   :  { %3605 = vtanh.f32 %v1103_v29  ;;  %v1237_v37 = vrot.slane %v1103_v29, 6 }
0x1126   :  { %v3604_v30 = vpop.eup %3603 }
0x1127   :  { %v3606_v32 = vpop.eup %3605  ;;  %1106 = vrot.lane.b32.xlu0 %v3604_v30, %s3824_s1 }
0x1128   :  { %1112 = vrot.lane.b32.xlu1 %v3606_v32, %s3824_s1 }
0x1199   :  { %v1107_v35 = vpop.permute.xlu0 %1106 }
0x119a   :  { %v1109_v38 = vmul.f32 %v3600_v15, %v1107_v35  ;;  %v1113_v39 = vpop.permute.xlu1 %1112 }
0x119b   :  { %v4148_v28 = vmul.f32 %v3602_v20, %v1113_v39 }
0x119c   :  { %1117 = vrot.lane.b32.xlu0 %v1109_v38, %s3825_s19  ;;  %v1422_v21 = vsel %vm62_vm0, %v4120_v60, %v1109_v38 }
0x119d   :  { %1121 = vrot.lane.b32.xlu1 %v4148_v28, %s3824_s1 }
0x120e   :  { %v1118_v41 = vpop.permute.xlu0 %1117 }
0x120f   :  { %v1122_v42 = vpop.permute.xlu1 %1121 }
0x1210   :  { %v1124_v44 = vsel %vm394_vm5, %v1118_v41, %v1122_v42 }
0x1211   :  { %v1126_v0 = vrot.slane %v1124_v44, 2 }
0x1213   :  { %3080 = vmatmul.mubr.msk.f32.vlgmr.msra.gmra.mrb[10].mxu1 %vm261_vm6, %v1126_v0 }
0x1214   :  { %1537 = vmatprep.mubr.f32.mxu1 %v3823_v9 }
0x12e6   :  { %v1195_v1 = vpop.f32.mrb[10].mxu1 }
0x12e7   :  { %v1202_v47 = vrot.slane %v1195_v1, 4  ;;  %v1197_v45 = vpop.f32.mrb[11].mxu1 }
0x12e8   :  { %v1203_v48 = vrot.slane %v1197_v45, 4 }
0x12e9   :  { %v1206_v50 = vadd.f32 %v1202_v47, %v3958_v62 }
0x12ea   :  { %v1207_v51 = vadd.f32 %v1203_v48, %v836_v24 }
0x12eb   :  { %3607 = vtanh.f32 %v1206_v50  ;;  %v3081_v57 = vmul.f32 -1.442695, %v1206_v50 }
0x12ec   :  { %3609 = vtanh.f32 %v1207_v51  ;;  %v3082_v4 = vmul.f32 -1.442695, %v1207_v51 }
0x12ed   :  { %3611 = vpow2.f32 %v3081_v57 }
0x12ee   :  { %3613 = vpow2.f32 %v3082_v4 }
0x12f5   :  { %v3608_v54 = vpop.eup %3607 }
0x12f6   :  { %v3610_v55 = vpop.eup %3609  ;;  %1227 = vrot.lane.b32.xlu0 %v3608_v54, %s3824_s1 }
0x12f7   :  { %1241 = vrot.lane.b32.xlu1 %v3610_v55, %s3824_s1  ;;  %v3612_v58 = vpop.eup %3611 }
0x12f8   :  { %v3614_v61 = vpop.eup %3613  ;;  %v1214_v2 = vadd.f32 1.0, %v3612_v58 }
0x12f9   :  { %v1215_v3 = vadd.f32 1.0, %v3614_v61 }
0x12fa   :  { %3615 = vrcp.f32 %v1214_v2 }
0x12fb   :  { %3617 = vrcp.f32 %v1215_v3  ;;  %v1456_v3 = vld [vmem:[#allocation2 + $0xe8] sm:$0xff] }
0x1304   :  { %v3616_v5 = vpop.eup %3615 }
0x1305   :  { %v3618_v6 = vpop.eup %3617  ;;  %v1225_v40 = vmul.f32 %v3616_v5, %v1223_v34  ;;  %v1657_v34 = vld [vmem:[#allocation2 + $0x138] sm:$0xff] }
0x1306   :  { %v1239_v46 = vmul.f32 %v3618_v6, %v1237_v37 }
0x1368   :  { %v1228_v24 = vpop.permute.xlu0 %1227 }
0x1369   :  { %v1230_v7 = vmul.f32 %v3616_v5, %v1228_v24  ;;  %v1242_v31 = vpop.permute.xlu1 %1241  ;;  %v1455_v24 = vld [vmem:[#allocation2 + $0xe0] sm:$0xff] }
0x136a   :  { %v1244_v11 = vmul.f32 %v3618_v6, %v1242_v31  ;;  %v1457_v31 = vld [vmem:[#allocation2 + $0xf0] sm:$0xff] }
0x136b   :  { %1232 = vrot.lane.b32.xlu0 %v1230_v7, %s3825_s19  ;;  %v3335_v37 = vpack.c.bf16 %v1457_v31, %v1455_v24 }
0x136c   :  { %1246 = vrot.lane.b32.xlu1 %v1244_v11, %s3825_s19  ;;  %v1655_v11 = vld [vmem:[#allocation2 + $0x128] sm:$0xff] }
0x13dd   :  { %v1233_v43 = vpop.permute.xlu0 %1232 }
0x13de   :  { %v1235_v49 = vadd.f32 %v1233_v43, %v1225_v40  ;;  %v1247_v12 = vpop.permute.xlu1 %1246  ;;  %v4195_v40 = vpack.c.bf16 %v1657_v34, %v1655_v11  ;;  %v1654_v43 = vld [vmem:[#allocation2 + $0x120] sm:$0xff] }
0x13df   :  { %v1249_v13 = vadd.f32 %v1247_v12, %v1239_v46  ;;  %v1656_v46 = vld [vmem:[#allocation2 + $0x130] sm:$0xff]  ;;  %v1462_v12 = vld [vmem:[#allocation2 + $0x118] sm:$0xff]  ;;  %v1638_v34 = vld [vmem:[#allocation2 + $0x1a1] ss:$8 sm:$0x3] }
0x13e0   :  { %3619 = vtanh.f32 %v1235_v49  ;;  %v1369_v50 = vrot.slane %v1235_v49, 6  ;;  %3350 = vmatprep.subr.bf16.mxu0 %v4195_v40  ;;  %v1460_v49 = vld [vmem:[#allocation2 + $0x108] sm:$0xff] }
0x13e1   :  { %3621 = vtanh.f32 %v1249_v13  ;;  %v1383_v51 = vrot.slane %v1249_v13, 6  ;;  %v4200_v13 = vpack.c.bf16 %v1656_v46, %v1654_v43  ;;  %v1647_v43 = vrot.slane %v1638_v34, %v154_v53 }
0x13ea   :  { %v3620_v14 = vpop.eup %3619 }
0x13eb   :  { %v3622_v15 = vpop.eup %3621  ;;  %1252 = vrot.lane.b32.xlu0 %v3620_v14, %s3824_s1  ;;  %v3337_v14 = vpack.c.bf16 %v1462_v12, %v1460_v49 }
0x13ec   :  { %1258 = vrot.lane.b32.xlu1 %v3622_v15, %s3824_s1  ;;  %v1459_v15 = vld [vmem:[#allocation2 + $0x100] sm:$0xff] }
0x145d   :  { %v1253_v18 = vpop.permute.xlu0 %1252 }
0x145e   :  { %v1255_v20 = vmul.f32 %v3616_v5, %v1253_v18  ;;  %v1259_v19 = vpop.permute.xlu1 %1258  ;;  %v1458_v5 = vld [vmem:[#allocation2 + $0xf8] sm:$0xff]  ;;  %v1461_v18 = vld [vmem:[#allocation2 + $0x110] sm:$0xff] }
0x145f   :  { %v4167_v36 = vmul.f32 %v3618_v6, %v1259_v19  ;;  %v3333_v7 = vpack.c.bf16 %v1458_v5, %v1456_v3  ;;  %v3339_v19 = vpack.c.bf16 %v1461_v18, %v1459_v15  ;;  %v1453_v3 = vld [vmem:[#allocation2 + $0xd0] sm:$0xff] }
0x1460   :  { %1263 = vrot.lane.b32.xlu0 %v1255_v20, %s3825_s19  ;;  %v4171_v17 = vsel %vm1418_vm7, %v1422_v21, %v1255_v20  ;;  %v1659_v20 = vld [vmem:[#allocation2 + $0x148] sm:$0xff]  ;;  %v1661_v21 = vld [vmem:[#allocation2 + $0x158] sm:$0xff] }
0x1461   :  { %1267 = vrot.lane.b32.xlu1 %v4167_v36, %s3824_s1  ;;  %3334 = vmatprep.subr.bf16.mxu1 %v3333_v7 }
0x1462   :  { %3336 = vmatpush1.bf16.msra.mxu1 %v3335_v37  ;;  %v1643_v37 = vrot.slane %v1638_v34, %v150_v56 }
0x1463   :  { %3338 = vmatprep.subr.bf16.mxu1 %v3337_v14 }
0x1466   :  { %3340 = vmatpush1.bf16.msra.mxu1 %v3339_v19 }
0x14d2   :  { %v1264_v23 = vpop.permute.xlu0 %1263 }
0x14d3   :  { %v1268_v25 = vpop.permute.xlu1 %1267 }
0x14d4   :  { %v1270_v33 = vsel %vm394_vm5, %v1264_v23, %v1268_v25  ;;  %v1448_v23 = vld [vmem:[#allocation2 + $0xa8] sm:$0xff]  ;;  %v1450_v25 = vld [vmem:[#allocation2 + $0xb8] sm:$0xff] }
0x14d5   :  { %v1272_v22 = vrot.slane %v1270_v33, 4  ;;  %v4203_v33 = vpack.c.bf16 %v1661_v21, %v1659_v20 }
0x14d7   :  { %3083 = vmatmul.mubr.msk.f32.vlgmr.msra.gmra.mrb[8].mxu0 %vm261_vm6, %v1272_v22  ;;  %v1658_v22 = vld [vmem:[#allocation2 + $0x140] sm:$0xff] }
0x14d8   :  { %1737 = vmatprep.mubr.f32.mxu0 %v3823_v9  ;;  %3352 = vmatpush1.bf16.msra.mxu0 %v4200_v13 }
0x14d9   :  { %3354 = vmatprep.subr.bf16.mxu0 %v4203_v33 }
0x15aa   :  { %v1341_v60 = vpop.f32.mrb[8].mxu0 }
0x15ab   :  { %v1348_v26 = vrot.slane %v1341_v60, 2  ;;  %v1343_v27 = vpop.f32.mrb[9].mxu0  ;;  %v1660_v60 = vld [vmem:[#allocation2 + $0x150] sm:$0xff] }
0x15ac   :  { %v1349_v29 = vrot.slane %v1343_v27, 2  ;;  %v1663_v27 = vld [vmem:[#allocation2 + $0x168] sm:$0xff] }
0x15ad   :  { %v1352_v30 = vadd.f32 %v1348_v26, %v3958_v62  ;;  %v4205_v26 = vpack.c.bf16 %v1660_v60, %v1658_v22 }
0x15ae   :  { %v1353_v32 = vadd.f32 %v1349_v29, %v978_v10  ;;  %v1665_v29 = vld [vmem:[#allocation2 + $0x178] sm:$0xff] }
0x15af   :  { %3623 = vtanh.f32 %v1352_v30  ;;  %v3084_v39 = vmul.f32 -1.442695, %v1352_v30  ;;  %3356 = vmatpush1.bf16.msra.mxu0 %v4205_v26  ;;  %v4209_v30 = vpack.c.bf16 %v1665_v29, %v1663_v27 }
0x15b0   :  { %3625 = vtanh.f32 %v1353_v32  ;;  %v3085_v41 = vmul.f32 -1.442695, %v1353_v32  ;;  %v1662_v32 = vld [vmem:[#allocation2 + $0x160] sm:$0xff] }
0x15b1   :  { %3627 = vpow2.f32 %v3084_v39  ;;  %3358 = vmatprep.subr.bf16.mxu0 %v4209_v30  ;;  %v1667_v39 = vld [vmem:[#allocation2 + $0x188] sm:$0xff] }
0x15b2   :  { %3629 = vpow2.f32 %v3085_v41  ;;  %v1669_v41 = vld [vmem:[#allocation2 + $0x198] sm:$0xff] }
0x15b9   :  { %v3624_v35 = vpop.eup %3623 }
0x15ba   :  { %v3626_v38 = vpop.eup %3625  ;;  %1373 = vrot.lane.b32.xlu1 %v3624_v35, %s3824_s1  ;;  %v1664_v35 = vld [vmem:[#allocation2 + $0x170] sm:$0xff] }
0x15bb   :  { %1387 = vrot.lane.b32.xlu0 %v3626_v38, %s3824_s1  ;;  %v3628_v42 = vpop.eup %3627  ;;  %v4211_v38 = vpack.c.bf16 %v1664_v35, %v1662_v32 }
0x15bc   :  { %v3630_v44 = vpop.eup %3629  ;;  %v1360_v0 = vadd.f32 1.0, %v3628_v42 }
0x15bd   :  { %v1361_v1 = vadd.f32 1.0, %v3630_v44  ;;  %3360 = vmatpush1.bf16.msra.mxu0 %v4211_v38  ;;  %v4215_v44 = vpack.c.bf16 %v1669_v41, %v1667_v39 }
0x15be   :  { %3631 = vrcp.f32 %v1360_v0  ;;  %v1666_v0 = vld [vmem:[#allocation2 + $0x180] sm:$0xff] }
0x15bf   :  { %3633 = vrcp.f32 %v1361_v1  ;;  %v1668_v1 = vld [vmem:[#allocation2 + $0x190] sm:$0xff]  ;;  %3362 = vmatprep.subr.bf16.mxu0 %v4215_v44 }
0x15c8   :  { %v4183_v59 = vpop.eup %3631 }
0x15c9   :  { %v4185_v10 = vpop.eup %3633  ;;  %v1371_v54 = vmul.f32 %v4183_v59, %v1369_v50 }
0x15ca   :  { %v1385_v57 = vmul.f32 %v4185_v10, %v1383_v51  ;;  %v1427_v51 = vrot.slane %v4167_v36, 2 }
0x162c   :  { %v1374_v62 = vpop.permute.xlu1 %1373 }
0x162d   :  { %v1376_v47 = vmul.f32 %v4183_v59, %v1374_v62  ;;  %v1388_v45 = vpop.permute.xlu0 %1387 }
0x162e   :  { %v1390_v48 = vmul.f32 %v4185_v10, %v1388_v45  ;;  %v4220_v45 = vpack.c.bf16 %v1668_v1, %v1666_v0 }
0x162f   :  { %1378 = vrot.lane.b32.xlu1 %v1376_v47, %s3825_s19 }
0x1630   :  { %1392 = vrot.lane.b32.xlu0 %v1390_v48, %s3825_s19  ;;  %3364 = vmatpush1.bf16.msra.mxu0 %v4220_v45 }
0x1631   :  { %3382 = vmatprep.subr.bf16.mxu0 %v4195_v40 }
0x1633   :  { %1738 = vmatmul.mubr.f32.vlgmr.msra.gmra.mrb[10].mxu0 %v3823_v9 }
0x1634   :  { %3384 = vmatpush1.bf16.msra.mxu0 %v4200_v13  ;;  %2018 = vmatprep.mubr.f32.mxu0 %v3823_v9 }
0x1635   :  { %3386 = vmatprep.subr.bf16.mxu0 %v4203_v33 }
0x1638   :  { %3388 = vmatpush1.bf16.msra.mxu0 %v4205_v26 }
0x1639   :  { %3390 = vmatprep.subr.bf16.mxu0 %v4209_v30 }
0x163c   :  { %3392 = vmatpush1.bf16.msra.mxu0 %v4211_v38 }
0x163d   :  { %3394 = vmatprep.subr.bf16.mxu0 %v4215_v44 }
0x1640   :  { %3396 = vmatpush1.bf16.msra.mxu0 %v4220_v45 }
0x1641   :  { %3414 = vmatprep.subr.bf16.mxu0 %v4195_v40 }
0x16a1   :  { %v1379_v55 = vpop.permute.xlu1 %1378 }
0x16a2   :  { %v1381_v4 = vadd.f32 %v1379_v55, %v1371_v54  ;;  %v1393_v58 = vpop.permute.xlu0 %1392 }
0x16a3   :  { %v1395_v61 = vadd.f32 %v1393_v58, %v1385_v57  ;;  %v1452_v57 = vld [vmem:[#allocation2 + $0xc8] sm:$0xff] }
0x16a4   :  { %3635 = vtanh.f32 %v1381_v4  ;;  %v1454_v4 = vld [vmem:[#allocation2 + $0xd8] sm:$0xff] }
0x16a5   :  { %3637 = vtanh.f32 %v1395_v61  ;;  %v3345_v61 = vpack.c.bf16 %v1454_v4, %v1452_v57 }
0x16ae   :  { %v3636_v2 = vpop.eup %3635 }
0x16af   :  { %v3638_v6 = vpop.eup %3637  ;;  %1398 = vrot.lane.b32.xlu1 %v3636_v2, %s3824_s1  ;;  %v1451_v2 = vld [vmem:[#allocation2 + $0xc0] sm:$0xff] }
0x16b0   :  { %1404 = vrot.lane.b32.xlu0 %v3638_v6, %s3824_s1 }
0x16b3   :  { %1467 = vrot.lane.b32.xlu1 %v4096_v16, %s3825_s19  ;;  %v3341_v16 = vpack.c.bf16 %v1450_v25, %v1448_v23 }
0x16b5   :  { %3342 = vmatprep.subr.bf16.mxu1 %v3341_v16 }
0x1706   :  { %v1739_v31 = vpop.f32.mrb[10].mxu0 }
0x1707   :  { %v1741_v11 = vpop.f32.mrb[11].mxu0 }
0x1721   :  { %v1399_v42 = vpop.permute.xlu1 %1398 }
0x1722   :  { %v4218_v62 = vmul.f32 %v4183_v59, %v1399_v42  ;;  %v1405_v47 = vpop.permute.xlu0 %1404  ;;  %v1429_v59 = vrot.slane %v4148_v28, 6  ;;  %v1449_v28 = vld [vmem:[#allocation2 + $0xb0] sm:$0xff] }
0x1723   :  { %v4223_v48 = vmul.f32 %v4185_v10, %v1405_v47  ;;  %v1431_v10 = vrot.slane %v4122_v63, 2  ;;  %v1447_v63 = vld [vmem:[#allocation2 + $0xa0] sm:$0xff] }
0x1724   :  { %v1424_v50 = vsel %vm1420_vm8, %v4171_v17, %v4218_v62  ;;  %v3343_v58 = vpack.c.bf16 %v1449_v28, %v1447_v63 }
0x1725   :  { %v1425_v54 = vrot.slane %v4223_v48, 6  ;;  %1554 = vrot.lane.b32.xlu1 %v1424_v50, %s3825_s19  ;;  %v1468_v24 = vpop.permute.xlu1 %1467 }
0x1727   :  { %v1441_v55 = vsel %vm62_vm0, %v1425_v54, %v1427_v51 }
0x1728   :  { %v1442_v17 = vsel %vm1418_vm7, %v1441_v55, %v1429_v59 }
0x1729   :  { %v1443_v36 = vsel %vm1420_vm8, %v1442_v17, %v1431_v10 }
0x172a   :  { %1465 = vrot.lane.b32.xlu0 %v1443_v36, %s3825_s19 }
0x172e   :  { %1552 = vrot.lane.b32.xlu0 %v4087_v8, %s3825_s19  ;;  %v3347_v8 = vpack.c.bf16 %v1453_v3, %v1451_v2 }
0x1797   :  { %v1555_v7 = vpop.permute.xlu1 %1554 }
0x179c   :  { %v1466_v5 = vpop.permute.xlu0 %1465 }
0x179d   :  { %3086 = vmatmul.mubr.msk.f32.vlgmr.msra.gmra.mrb[12].mxu1 %vm394_vm5, %v1466_v5 }
0x179e   :  { %3344 = vmatpush1.bf16.msra.mxu1 %v3343_v58  ;;  %1543 = vmatprep.mubr.f32.mxu1 %v3823_v9 }
0x179f   :  { %3346 = vmatprep.subr.bf16.mxu1 %v3345_v61 }
0x17a0   :  { %v1553_v6 = vpop.permute.xlu0 %1552 }
0x17a1   :  { %3087 = vmatmul.mubr.msk.f32.gmra.mrb[14].mxu1 %vm394_vm5, %v1468_v24 }
0x17a2   :  { %3348 = vmatpush1.bf16.msra.mxu1 %v3347_v8  ;;  %1624 = vmatprep.mubr.f32.mxu1 %v3823_v9 }
0x17a3   :  { %3366 = vmatprep.subr.bf16.mxu1 %v4195_v40 }
0x17a5   :  { %3088 = vmatmul.mubr.msk.f32.vlgmr.msra.gmra.mrb[12].mxu1 %vm394_vm5, %v1553_v6 }
0x17a6   :  { %1630 = vmatprep.mubr.f32.mxu1 %v3823_v9  ;;  %3368 = vmatpush1.bf16.msra.mxu1 %v4200_v13 }
0x17a7   :  { %3370 = vmatprep.subr.bf16.mxu1 %v4203_v33 }
0x17a9   :  { %3089 = vmatmul.mubr.msk.f32.gmra.mrb[14].mxu1 %vm394_vm5, %v1555_v7 }
0x17aa   :  { %3372 = vmatpush1.bf16.msra.mxu1 %v4205_v26  ;;  %1872 = vmatprep.mubr.f32.mxu1 %v3823_v9 }
0x17ab   :  { %3374 = vmatprep.subr.bf16.mxu1 %v4209_v30 }
0x17ae   :  { %3376 = vmatpush1.bf16.msra.mxu1 %v4211_v38 }
0x17af   :  { %3378 = vmatprep.subr.bf16.mxu1 %v4215_v44 }
0x17b2   :  { %3380 = vmatpush1.bf16.msra.mxu1 %v4220_v45 }
0x17b3   :  { %3398 = vmatprep.subr.bf16.mxu1 %v4195_v40 }
0x1878   :  { %v1626_v46 = vpop.f32.mrb[12].mxu1 }
0x1879   :  { %v4273_v49 = vadd.f32 %v1643_v37, %v1626_v46  ;;  %v1628_v12 = vpop.f32.mrb[13].mxu1 }
0x187a   :  { %v4275_v14 = vadd.f32 %v1647_v43, %v1628_v12 }
0x187b   :  { %v1744_v15 = vadd.f32 %v1739_v31, %v4273_v49 }
0x187c   :  { %v1632_v18 = vpop.f32.mrb[14].mxu1 }
0x187d   :  { %3639 = vtanh.f32 %v1744_v15  ;;  %v4278_v20 = vadd.f32 %v1643_v37, %v1632_v18  ;;  %v1634_v19 = vpop.f32.mrb[15].mxu1  ;;  %v3090_v25 = vmul.f32 -1.442695, %v1744_v15 }
0x187e   :  { %v4280_v21 = vadd.f32 %v1647_v43, %v1634_v19 }
0x1880   :  { %v1671_v56 = vrot.slane %v4280_v21, 6  ;;  %v1803_v5 = vrot.slane %v4280_v21, 2 }
0x1882   :  { %v1745_v52 = vadd.f32 %v1741_v11, %v1671_v56 }
0x1884   :  { %3641 = vtanh.f32 %v1745_v52  ;;  %v3091_v16 = vmul.f32 -1.442695, %v1745_v52 }
0x1885   :  { %3643 = vpow2.f32 %v3090_v25 }
0x1886   :  { %3645 = vpow2.f32 %v3091_v16 }
0x1887   :  { %v3640_v53 = vpop.eup %3639 }
0x1888   :  { %1762 = vrot.lane.b32.xlu0 %v3640_v53, %s3824_s1 }
0x188e   :  { %v3642_v23 = vpop.eup %3641 }
0x188f   :  { %1773 = vrot.lane.b32.xlu1 %v3642_v23, %s3824_s1  ;;  %v3644_v22 = vpop.eup %3643 }
0x1890   :  { %v1752_v60 = vadd.f32 1.0, %v3644_v22  ;;  %v3646_v27 = vpop.eup %3645 }
0x1891   :  { %v1753_v29 = vadd.f32 1.0, %v3646_v27 }
0x1892   :  { %3647 = vrcp.f32 %v1752_v60 }
0x1893   :  { %3649 = vrcp.f32 %v1753_v29 }
0x189c   :  { %v3648_v32 = vpop.eup %3647 }
0x189d   :  { %v3650_v41 = vpop.eup %3649  ;;  %v1760_v1 = vmul.f32 0.0, %v3648_v32 }
0x189e   :  { %v1771_v51 = vmul.f32 0.0, %v3650_v41 }
0x18fa   :  { %v1763_v35 = vpop.permute.xlu0 %1762 }
0x18fb   :  { %v1765_v39 = vmul.f32 %v3648_v32, %v1763_v35 }
0x18fd   :  { %1767 = vrot.lane.b32.xlu0 %v1765_v39, %s3825_s19 }
0x1901   :  { %v1774_v42 = vpop.permute.xlu1 %1773 }
0x1902   :  { %v1776_v0 = vmul.f32 %v3650_v41, %v1774_v42 }
0x1904   :  { %1778 = vrot.lane.b32.xlu1 %v1776_v0, %s3825_s19 }
0x196f   :  { %v1768_v47 = vpop.permute.xlu0 %1767 }
0x1970   :  { %v4289_v50 = vadd.f32 %v1768_v47, %v1760_v1 }
0x1972   :  { %3651 = vtanh.f32 %v4289_v50  ;;  %v1902_v25 = vrot.slane %v4289_v50, 6 }
0x1976   :  { %v1779_v54 = vpop.permute.xlu1 %1778 }
0x1977   :  { %v1781_v59 = vadd.f32 %v1779_v54, %v1771_v51 }
0x1979   :  { %3653 = vtanh.f32 %v1781_v59  ;;  %v1916_v16 = vrot.slane %v1781_v59, 6 }
0x197c   :  { %v3652_v10 = vpop.eup %3651 }
0x197d   :  { %1784 = vrot.lane.b32.xlu0 %v3652_v10, %s3824_s1 }
0x1983   :  { %v3654_v55 = vpop.eup %3653 }
0x1984   :  { %1790 = vrot.lane.b32.xlu1 %v3654_v55, %s3824_s1 }
0x19ef   :  { %v1785_v17 = vpop.permute.xlu0 %1784 }
0x19f0   :  { %v1787_v36 = vmul.f32 %v3648_v32, %v1785_v17 }
0x19f2   :  { %1795 = vrot.lane.b32.xlu0 %v1787_v36, %s3825_s19 }
0x19f6   :  { %v1791_v63 = vpop.permute.xlu1 %1790 }
0x19f7   :  { %v1793_v28 = vmul.f32 %v3650_v41, %v1791_v63 }
0x19f9   :  { %1799 = vrot.lane.b32.xlu1 %v1793_v28, %s3824_s1 }
0x1a64   :  { %v1796_v57 = vpop.permute.xlu0 %1795 }
0x1a6b   :  { %v1800_v4 = vpop.permute.xlu1 %1799 }
0x1a6c   :  { %v1802_v58 = vsel %vm394_vm5, %v1796_v57, %v1800_v4 }
0x1a6d   :  { %3092 = vmatmul.mubr.msk.f32.vlgmr.msra.gmra.mrb[16].mxu1 %vm261_vm6, %v1802_v58 }
0x1a6e   :  { %3400 = vmatpush1.bf16.msra.mxu1 %v4200_v13  ;;  %2164 = vmatprep.mubr.f32.mxu1 %v3823_v9 }
0x1a6f   :  { %3402 = vmatprep.subr.bf16.mxu1 %v4203_v33 }
0x1a72   :  { %3404 = vmatpush1.bf16.msra.mxu1 %v4205_v26 }
0x1a73   :  { %3406 = vmatprep.subr.bf16.mxu1 %v4209_v30 }
0x1a76   :  { %3408 = vmatpush1.bf16.msra.mxu1 %v4211_v38 }
0x1a77   :  { %3410 = vmatprep.subr.bf16.mxu1 %v4215_v44 }
0x1a7a   :  { %3412 = vmatpush1.bf16.msra.mxu1 %v4220_v45 }
0x1a7b   :  { %3430 = vmatprep.subr.bf16.mxu1 %v4195_v40 }
0x1b40   :  { %v1874_v61 = vpop.f32.mrb[16].mxu1 }
0x1b41   :  { %v1881_v2 = vrot.slane %v1874_v61, 6  ;;  %v1876_v3 = vpop.f32.mrb[17].mxu1 }
0x1b42   :  { %v1882_v8 = vrot.slane %v1876_v3, 6 }
0x1b43   :  { %v1885_v24 = vadd.f32 %v1881_v2, %v4273_v49 }
0x1b44   :  { %v1886_v6 = vadd.f32 %v1882_v8, %v1803_v5 }
0x1b45   :  { %3655 = vtanh.f32 %v1885_v24  ;;  %v3093_v11 = vmul.f32 -1.442695, %v1885_v24 }
0x1b46   :  { %3657 = vtanh.f32 %v1886_v6  ;;  %v3094_v34 = vmul.f32 -1.442695, %v1886_v6 }
0x1b47   :  { %3659 = vpow2.f32 %v3093_v11 }
0x1b48   :  { %3661 = vpow2.f32 %v3094_v34 }
0x1b4f   :  { %v3656_v7 = vpop.eup %3655 }
0x1b50   :  { %v3658_v31 = vpop.eup %3657  ;;  %1906 = vrot.lane.b32.xlu0 %v3656_v7, %s3824_s1 }
0x1b51   :  { %1920 = vrot.lane.b32.xlu1 %v3658_v31, %s3824_s1  ;;  %v3660_v37 = vpop.eup %3659 }
0x1b52   :  { %v3662_v43 = vpop.eup %3661  ;;  %v1893_v46 = vadd.f32 1.0, %v3660_v37 }
0x1b53   :  { %v1894_v12 = vadd.f32 1.0, %v3662_v43 }
0x1b54   :  { %3663 = vrcp.f32 %v1893_v46 }
0x1b55   :  { %3665 = vrcp.f32 %v1894_v12 }
0x1b5e   :  { %v3664_v15 = vpop.eup %3663 }
0x1b5f   :  { %v3666_v19 = vpop.eup %3665  ;;  %v1904_v22 = vmul.f32 %v3664_v15, %v1902_v25 }
0x1b60   :  { %v1918_v27 = vmul.f32 %v3666_v19, %v1916_v16 }
0x1bc2   :  { %v1907_v18 = vpop.permute.xlu0 %1906 }
0x1bc3   :  { %v1909_v52 = vmul.f32 %v3664_v15, %v1907_v18  ;;  %v1921_v53 = vpop.permute.xlu1 %1920 }
0x1bc4   :  { %v1923_v23 = vmul.f32 %v3666_v19, %v1921_v53 }
0x1bc5   :  { %1911 = vrot.lane.b32.xlu0 %v1909_v52, %s3825_s19 }
0x1bc6   :  { %1925 = vrot.lane.b32.xlu1 %v1923_v23, %s3825_s19 }
0x1c37   :  { %v1912_v60 = vpop.permute.xlu0 %1911 }
0x1c38   :  { %v1914_v29 = vadd.f32 %v1912_v60, %v1904_v22  ;;  %v1926_v32 = vpop.permute.xlu1 %1925 }
0x1c39   :  { %v1928_v35 = vadd.f32 %v1926_v32, %v1918_v27 }
0x1c3a   :  { %3667 = vtanh.f32 %v1914_v29  ;;  %v2048_v37 = vrot.slane %v1914_v29, 6 }
0x1c3b   :  { %3669 = vtanh.f32 %v1928_v35  ;;  %v2062_v43 = vrot.slane %v1928_v35, 6 }
0x1c44   :  { %v3668_v39 = vpop.eup %3667 }
0x1c45   :  { %v3670_v41 = vpop.eup %3669  ;;  %1931 = vrot.lane.b32.xlu0 %v3668_v39, %s3824_s1 }
0x1c46   :  { %1937 = vrot.lane.b32.xlu1 %v3670_v41, %s3824_s1 }
0x1cb7   :  { %v1932_v42 = vpop.permute.xlu0 %1931 }
0x1cb8   :  { %v1934_v0 = vmul.f32 %v3664_v15, %v1932_v42  ;;  %v1938_v1 = vpop.permute.xlu1 %1937 }
0x1cb9   :  { %v1940_v47 = vmul.f32 %v3666_v19, %v1938_v1 }
0x1cba   :  { %1942 = vrot.lane.b32.xlu0 %v1934_v0, %s3825_s19 }
0x1cbb   :  { %1946 = vrot.lane.b32.xlu1 %v1940_v47, %s3824_s1 }
0x1d2c   :  { %v1943_v50 = vpop.permute.xlu0 %1942 }
0x1d2d   :  { %v1947_v51 = vpop.permute.xlu1 %1946 }
0x1d2e   :  { %v1949_v54 = vsel %vm394_vm5, %v1943_v50, %v1947_v51 }
0x1d2f   :  { %v1951_v59 = vrot.slane %v1949_v54, 2 }
0x1d31   :  { %3095 = vmatmul.mubr.msk.f32.vlgmr.msra.gmra.mrb[12].mxu0 %vm261_vm6, %v1951_v59 }
0x1d32   :  { %3416 = vmatpush1.bf16.msra.mxu0 %v4200_v13  ;;  %2313 = vmatprep.mubr.f32.mxu0 %v3823_v9 }
0x1d33   :  { %3418 = vmatprep.subr.bf16.mxu0 %v4203_v33 }
0x1d36   :  { %3420 = vmatpush1.bf16.msra.mxu0 %v4205_v26 }
0x1d37   :  { %3422 = vmatprep.subr.bf16.mxu0 %v4209_v30 }
0x1d3a   :  { %3424 = vmatpush1.bf16.msra.mxu0 %v4211_v38 }
0x1d3b   :  { %3426 = vmatprep.subr.bf16.mxu0 %v4215_v44 }
0x1d3e   :  { %3428 = vmatpush1.bf16.msra.mxu0 %v4220_v45 }
0x1d3f   :  { %3446 = vmatprep.subr.bf16.mxu0 %v4195_v40 }
0x1e04   :  { %v2020_v10 = vpop.f32.mrb[12].mxu0 }
0x1e05   :  { %v2027_v55 = vrot.slane %v2020_v10, 4  ;;  %v2022_v17 = vpop.f32.mrb[13].mxu0 }
0x1e06   :  { %v2028_v36 = vrot.slane %v2022_v17, 4 }
0x1e07   :  { %v2031_v63 = vadd.f32 %v2027_v55, %v4273_v49 }
0x1e08   :  { %v2032_v28 = vadd.f32 %v2028_v36, %v1671_v56 }
0x1e09   :  { %3671 = vtanh.f32 %v2031_v63  ;;  %v3096_v58 = vmul.f32 -1.442695, %v2031_v63 }
0x1e0a   :  { %3673 = vtanh.f32 %v2032_v28  ;;  %v3097_v61 = vmul.f32 -1.442695, %v2032_v28 }
0x1e0b   :  { %3675 = vpow2.f32 %v3096_v58 }
0x1e0c   :  { %3677 = vpow2.f32 %v3097_v61 }
0x1e13   :  { %v3672_v57 = vpop.eup %3671 }
0x1e14   :  { %v3674_v4 = vpop.eup %3673  ;;  %2052 = vrot.lane.b32.xlu0 %v3672_v57, %s3824_s1 }
0x1e15   :  { %2066 = vrot.lane.b32.xlu1 %v3674_v4, %s3824_s1  ;;  %v3676_v2 = vpop.eup %3675 }
0x1e16   :  { %v3678_v3 = vpop.eup %3677  ;;  %v2039_v8 = vadd.f32 1.0, %v3676_v2 }
0x1e17   :  { %v2040_v24 = vadd.f32 1.0, %v3678_v3 }
0x1e18   :  { %3679 = vrcp.f32 %v2039_v8 }
0x1e19   :  { %3681 = vrcp.f32 %v2040_v24 }
0x1e22   :  { %v3680_v6 = vpop.eup %3679 }
0x1e23   :  { %v3682_v7 = vpop.eup %3681  ;;  %v2050_v46 = vmul.f32 %v3680_v6, %v2048_v37 }
0x1e24   :  { %v2064_v15 = vmul.f32 %v3682_v7, %v2062_v43 }
0x1e86   :  { %v2053_v56 = vpop.permute.xlu0 %2052 }
0x1e87   :  { %v2055_v31 = vmul.f32 %v3680_v6, %v2053_v56  ;;  %v2067_v11 = vpop.permute.xlu1 %2066 }
0x1e88   :  { %v2069_v34 = vmul.f32 %v3682_v7, %v2067_v11 }
0x1e89   :  { %2057 = vrot.lane.b32.xlu0 %v2055_v31, %s3825_s19 }
0x1e8a   :  { %2071 = vrot.lane.b32.xlu1 %v2069_v34, %s3825_s19 }
0x1efb   :  { %v2058_v12 = vpop.permute.xlu0 %2057 }
0x1efc   :  { %v2060_v18 = vadd.f32 %v2058_v12, %v2050_v46  ;;  %v2072_v19 = vpop.permute.xlu1 %2071 }
0x1efd   :  { %v2074_v52 = vadd.f32 %v2072_v19, %v2064_v15 }
0x1efe   :  { %3683 = vtanh.f32 %v2060_v18  ;;  %v2194_v57 = vrot.slane %v2060_v18, 6  ;;  %v2243_v18 = vrot.slane %v4275_v14, 6 }
0x1eff   :  { %3685 = vtanh.f32 %v2074_v52  ;;  %v2208_v4 = vrot.slane %v2074_v52, 6 }
0x1f08   :  { %v3684_v53 = vpop.eup %3683 }
0x1f09   :  { %v3686_v23 = vpop.eup %3685  ;;  %2077 = vrot.lane.b32.xlu0 %v3684_v53, %s3824_s1 }
0x1f0a   :  { %2083 = vrot.lane.b32.xlu1 %v3686_v23, %s3824_s1 }
0x1f7b   :  { %v2078_v25 = vpop.permute.xlu0 %2077 }
0x1f7c   :  { %v2080_v16 = vmul.f32 %v3680_v6, %v2078_v25  ;;  %v2084_v22 = vpop.permute.xlu1 %2083 }
0x1f7d   :  { %v2086_v60 = vmul.f32 %v3682_v7, %v2084_v22 }
0x1f7e   :  { %2088 = vrot.lane.b32.xlu0 %v2080_v16, %s3825_s19 }
0x1f7f   :  { %2092 = vrot.lane.b32.xlu1 %v2086_v60, %s3824_s1 }
0x1ff0   :  { %v2089_v27 = vpop.permute.xlu0 %2088 }
0x1ff1   :  { %v2093_v29 = vpop.permute.xlu1 %2092 }
0x1ff2   :  { %v2095_v32 = vsel %vm394_vm5, %v2089_v27, %v2093_v29 }
0x1ff3   :  { %v2097_v35 = vrot.slane %v2095_v32, 4 }
0x1ff5   :  { %3098 = vmatmul.mubr.msk.f32.vlgmr.msra.gmra.mrb[18].mxu1 %vm261_vm6, %v2097_v35 }
0x1ff6   :  { %3432 = vmatpush1.bf16.msra.mxu1 %v4200_v13  ;;  %2454 = vmatprep.mubr.f32.mxu1 %v3823_v9 }
0x1ff7   :  { %3434 = vmatprep.subr.bf16.mxu1 %v4203_v33 }
0x1ffa   :  { %3436 = vmatpush1.bf16.msra.mxu1 %v4205_v26 }
0x1ffb   :  { %3438 = vmatprep.subr.bf16.mxu1 %v4209_v30 }
0x1ffe   :  { %3440 = vmatpush1.bf16.msra.mxu1 %v4211_v38 }
0x1fff   :  { %3442 = vmatprep.subr.bf16.mxu1 %v4215_v44 }
0x2002   :  { %3444 = vmatpush1.bf16.msra.mxu1 %v4220_v45 }
0x2003   :  { %3462 = vmatprep.subr.bf16.mxu1 %v4195_v40 }
0x20c8   :  { %v2166_v39 = vpop.f32.mrb[18].mxu1 }
0x20c9   :  { %v2173_v41 = vrot.slane %v2166_v39, 2  ;;  %v2168_v42 = vpop.f32.mrb[19].mxu1 }
0x20ca   :  { %v2174_v0 = vrot.slane %v2168_v42, 2 }
0x20cb   :  { %v2177_v1 = vadd.f32 %v2173_v41, %v4273_v49 }
0x20cc   :  { %v2178_v47 = vadd.f32 %v2174_v0, %v1803_v5 }
0x20cd   :  { %3687 = vtanh.f32 %v2177_v1  ;;  %v3099_v54 = vmul.f32 -1.442695, %v2177_v1 }
0x20ce   :  { %3689 = vtanh.f32 %v2178_v47  ;;  %v3100_v59 = vmul.f32 -1.442695, %v2178_v47 }
0x20cf   :  { %3691 = vpow2.f32 %v3099_v54 }
0x20d0   :  { %3693 = vpow2.f32 %v3100_v59 }
0x20d7   :  { %v3688_v50 = vpop.eup %3687 }
0x20d8   :  { %v3690_v51 = vpop.eup %3689  ;;  %2198 = vrot.lane.b32.xlu0 %v3688_v50, %s3824_s1 }
0x20d9   :  { %2212 = vrot.lane.b32.xlu1 %v3690_v51, %s3824_s1  ;;  %v3692_v40 = vpop.eup %3691 }
0x20da   :  { %v3694_v10 = vpop.eup %3693  ;;  %v2185_v55 = vadd.f32 1.0, %v3692_v40 }
0x20db   :  { %v2186_v17 = vadd.f32 1.0, %v3694_v10 }
0x20dc   :  { %3695 = vrcp.f32 %v2185_v55 }
0x20dd   :  { %3697 = vrcp.f32 %v2186_v17 }
0x20e6   :  { %v3696_v49 = vpop.eup %3695 }
0x20e7   :  { %v3698_v5 = vpop.eup %3697  ;;  %v2196_v58 = vmul.f32 %v3696_v49, %v2194_v57 }
0x20e8   :  { %v2210_v2 = vmul.f32 %v3698_v5, %v2208_v4 }
0x214a   :  { %v2199_v21 = vpop.permute.xlu0 %2198 }
0x214b   :  { %v2201_v36 = vmul.f32 %v3696_v49, %v2199_v21  ;;  %v2213_v63 = vpop.permute.xlu1 %2212 }
0x214c   :  { %v2215_v28 = vmul.f32 %v3698_v5, %v2213_v63 }
0x214d   :  { %2203 = vrot.lane.b32.xlu0 %v2201_v36, %s3825_s19 }
0x214e   :  { %2217 = vrot.lane.b32.xlu1 %v2215_v28, %s3825_s19 }
0x21bf   :  { %v2204_v61 = vpop.permute.xlu0 %2203 }
0x21c0   :  { %v2206_v3 = vadd.f32 %v2204_v61, %v2196_v58  ;;  %v2218_v8 = vpop.permute.xlu1 %2217 }
0x21c1   :  { %v2220_v24 = vadd.f32 %v2218_v8, %v2210_v2 }
0x21c2   :  { %3699 = vtanh.f32 %v2206_v3  ;;  %v2337_v47 = vrot.slane %v2206_v3, 6  ;;  %v2385_v3 = vrot.slane %v4275_v14, 2 }
0x21c3   :  { %3701 = vtanh.f32 %v2220_v24  ;;  %v2351_v50 = vrot.slane %v2220_v24, 6 }
0x21cc   :  { %v3700_v6 = vpop.eup %3699 }
0x21cd   :  { %v3702_v56 = vpop.eup %3701  ;;  %2223 = vrot.lane.b32.xlu0 %v3700_v6, %s3824_s1 }
0x21ce   :  { %2229 = vrot.lane.b32.xlu1 %v3702_v56, %s3824_s1 }
0x223f   :  { %v2224_v7 = vpop.permute.xlu0 %2223 }
0x2240   :  { %v2226_v31 = vmul.f32 %v3696_v49, %v2224_v7  ;;  %v2230_v11 = vpop.permute.xlu1 %2229 }
0x2241   :  { %v2232_v34 = vmul.f32 %v3698_v5, %v2230_v11 }
0x2242   :  { %2234 = vrot.lane.b32.xlu0 %v2226_v31, %s3825_s19 }
0x2243   :  { %2238 = vrot.lane.b32.xlu1 %v2232_v34, %s3824_s1 }
0x22b4   :  { %v2235_v37 = vpop.permute.xlu0 %2234 }
0x22b5   :  { %v2239_v43 = vpop.permute.xlu1 %2238 }
0x22b6   :  { %v2241_v46 = vsel %vm394_vm5, %v2235_v37, %v2239_v43 }
0x22b7   :  { %v2246_v12 = vrot.slane %v2241_v46, 6 }
0x22b9   :  { %3101 = vmatmul.mubr.msk.f32.vlgmr.msra.gmra.mrb[14].mxu0 %vm261_vm6, %v2246_v12 }
0x22ba   :  { %3448 = vmatpush1.bf16.msra.mxu0 %v4200_v13  ;;  %2600 = vmatprep.mubr.f32.mxu0 %v3823_v9 }
0x22bb   :  { %3450 = vmatprep.subr.bf16.mxu0 %v4203_v33 }
0x22be   :  { %3452 = vmatpush1.bf16.msra.mxu0 %v4205_v26 }
0x22bf   :  { %3454 = vmatprep.subr.bf16.mxu0 %v4209_v30 }
0x22c2   :  { %3456 = vmatpush1.bf16.msra.mxu0 %v4211_v38 }
0x22c3   :  { %3458 = vmatprep.subr.bf16.mxu0 %v4215_v44 }
0x22c6   :  { %3460 = vmatpush1.bf16.msra.mxu0 %v4220_v45 }
0x238c   :  { %v2315_v15 = vpop.f32.mrb[14].mxu0 }
0x238d   :  { %v2320_v19 = vadd.f32 %v2315_v15, %v4278_v20  ;;  %v2317_v52 = vpop.f32.mrb[15].mxu0 }
0x238e   :  { %v2321_v53 = vadd.f32 %v2317_v52, %v2243_v18 }
0x238f   :  { %3703 = vtanh.f32 %v2320_v19  ;;  %v3102_v16 = vmul.f32 -1.442695, %v2320_v19 }
0x2390   :  { %3705 = vtanh.f32 %v2321_v53  ;;  %v3103_v22 = vmul.f32 -1.442695, %v2321_v53 }
0x2391   :  { %3707 = vpow2.f32 %v3102_v16 }
0x2392   :  { %3709 = vpow2.f32 %v3103_v22 }
0x2399   :  { %v3704_v23 = vpop.eup %3703 }
0x239a   :  { %v3706_v25 = vpop.eup %3705  ;;  %2341 = vrot.lane.b32.xlu0 %v3704_v23, %s3824_s1 }
0x239b   :  { %2355 = vrot.lane.b32.xlu1 %v3706_v25, %s3824_s1  ;;  %v3708_v60 = vpop.eup %3707 }
0x239c   :  { %v3710_v27 = vpop.eup %3709  ;;  %v2328_v29 = vadd.f32 1.0, %v3708_v60 }
0x239d   :  { %v2329_v32 = vadd.f32 1.0, %v3710_v27 }
0x239e   :  { %3711 = vrcp.f32 %v2328_v29 }
0x239f   :  { %3713 = vrcp.f32 %v2329_v32 }
0x23a8   :  { %v3712_v35 = vpop.eup %3711 }
0x23a9   :  { %v3714_v41 = vpop.eup %3713  ;;  %v2339_v51 = vmul.f32 %v3712_v35, %v2337_v47 }
0x23aa   :  { %v2353_v59 = vmul.f32 %v3714_v41, %v2351_v50 }
0x240c   :  { %v2342_v39 = vpop.permute.xlu0 %2341 }
0x240d   :  { %v2344_v42 = vmul.f32 %v3712_v35, %v2342_v39  ;;  %v2356_v0 = vpop.permute.xlu1 %2355 }
0x240e   :  { %v2358_v1 = vmul.f32 %v3714_v41, %v2356_v0 }
0x240f   :  { %2346 = vrot.lane.b32.xlu0 %v2344_v42, %s3825_s19 }
0x2410   :  { %2360 = vrot.lane.b32.xlu1 %v2358_v1, %s3825_s19 }
0x2481   :  { %v2347_v54 = vpop.permute.xlu0 %2346 }
0x2482   :  { %v2349_v40 = vadd.f32 %v2347_v54, %v2339_v51  ;;  %v2361_v10 = vpop.permute.xlu1 %2360 }
0x2483   :  { %v2363_v55 = vadd.f32 %v2361_v10, %v2353_v59 }
0x2484   :  { %3715 = vtanh.f32 %v2349_v40  ;;  %v2484_v46 = vrot.slane %v2349_v40, 6 }
0x2485   :  { %3717 = vtanh.f32 %v2363_v55  ;;  %v2498_v12 = vrot.slane %v2363_v55, 6 }
0x248e   :  { %v3716_v17 = vpop.eup %3715 }
0x248f   :  { %v3718_v49 = vpop.eup %3717  ;;  %2366 = vrot.lane.b32.xlu0 %v3716_v17, %s3824_s1 }
0x2490   :  { %2372 = vrot.lane.b32.xlu1 %v3718_v49, %s3824_s1 }
0x2501   :  { %v2367_v21 = vpop.permute.xlu0 %2366 }
0x2502   :  { %v2369_v5 = vmul.f32 %v3712_v35, %v2367_v21  ;;  %v2373_v36 = vpop.permute.xlu1 %2372 }
0x2503   :  { %v2375_v63 = vmul.f32 %v3714_v41, %v2373_v36 }
0x2504   :  { %2377 = vrot.lane.b32.xlu0 %v2369_v5, %s3825_s19 }
0x2505   :  { %2381 = vrot.lane.b32.xlu1 %v2375_v63, %s3824_s1 }
0x2576   :  { %v2378_v28 = vpop.permute.xlu0 %2377 }
0x2577   :  { %v2382_v57 = vpop.permute.xlu1 %2381 }
0x2578   :  { %v2384_v4 = vsel %vm394_vm5, %v2378_v28, %v2382_v57 }
0x2579   :  { %3104 = vmatmul.mubr.msk.f32.vlgmr.msra.gmra.mrb[20].mxu1 %vm261_vm6, %v2384_v4 }
0x257a   :  { %3464 = vmatpush1.bf16.msra.mxu1 %v4200_v13  ;;  %2746 = vmatprep.mubr.f32.mxu1 %v3823_v9 }
0x257b   :  { %3466 = vmatprep.subr.bf16.mxu1 %v4203_v33 }
0x257e   :  { %3468 = vmatpush1.bf16.msra.mxu1 %v4205_v26 }
0x257f   :  { %3470 = vmatprep.subr.bf16.mxu1 %v4209_v30 }
0x2582   :  { %3472 = vmatpush1.bf16.msra.mxu1 %v4211_v38 }
0x2583   :  { %3474 = vmatprep.subr.bf16.mxu1 %v4215_v44 }
0x2586   :  { %3476 = vmatpush1.bf16.msra.mxu1 %v4220_v45 }
0x264c   :  { %v2456_v58 = vpop.f32.mrb[20].mxu1 }
0x264d   :  { %v2463_v61 = vrot.slane %v2456_v58, 6  ;;  %v2458_v2 = vpop.f32.mrb[21].mxu1 }
0x264e   :  { %v2464_v13 = vrot.slane %v2458_v2, 6 }
0x264f   :  { %v2467_v8 = vadd.f32 %v2463_v61, %v4278_v20 }
0x2650   :  { %v2468_v33 = vadd.f32 %v2464_v13, %v2385_v3 }
0x2651   :  { %3719 = vtanh.f32 %v2467_v8  ;;  %v3105_v38 = vmul.f32 -1.442695, %v2467_v8 }
0x2652   :  { %3721 = vtanh.f32 %v2468_v33  ;;  %v3106_v44 = vmul.f32 -1.442695, %v2468_v33 }
0x2653   :  { %3723 = vpow2.f32 %v3105_v38 }
0x2654   :  { %3725 = vpow2.f32 %v3106_v44 }
0x265b   :  { %v3720_v26 = vpop.eup %3719 }
0x265c   :  { %v3722_v30 = vpop.eup %3721  ;;  %2488 = vrot.lane.b32.xlu0 %v3720_v26, %s3824_s1 }
0x265d   :  { %2502 = vrot.lane.b32.xlu1 %v3722_v30, %s3824_s1  ;;  %v3724_v45 = vpop.eup %3723 }
0x265e   :  { %v3726_v24 = vpop.eup %3725  ;;  %v2475_v6 = vadd.f32 1.0, %v3724_v45 }
0x265f   :  { %v2476_v56 = vadd.f32 1.0, %v3726_v24 }
0x2660   :  { %3727 = vrcp.f32 %v2475_v6 }
0x2661   :  { %3729 = vrcp.f32 %v2476_v56 }
0x266a   :  { %v3728_v7 = vpop.eup %3727 }
0x266b   :  { %v3730_v11 = vpop.eup %3729  ;;  %v2486_v15 = vmul.f32 %v3728_v7, %v2484_v46 }
0x266c   :  { %v2500_v52 = vmul.f32 %v3730_v11, %v2498_v12 }
0x26ce   :  { %v2489_v31 = vpop.permute.xlu0 %2488 }
0x26cf   :  { %v2491_v34 = vmul.f32 %v3728_v7, %v2489_v31  ;;  %v2503_v37 = vpop.permute.xlu1 %2502 }
0x26d0   :  { %v2505_v43 = vmul.f32 %v3730_v11, %v2503_v37 }
0x26d1   :  { %2493 = vrot.lane.b32.xlu0 %v2491_v34, %s3825_s19 }
0x26d2   :  { %2507 = vrot.lane.b32.xlu1 %v2505_v43, %s3825_s19 }
0x2743   :  { %v2494_v19 = vpop.permute.xlu0 %2493 }
0x2744   :  { %v2496_v53 = vadd.f32 %v2494_v19, %v2486_v15  ;;  %v2508_v23 = vpop.permute.xlu1 %2507 }
0x2745   :  { %v2510_v25 = vadd.f32 %v2508_v23, %v2500_v52 }
0x2746   :  { %3731 = vtanh.f32 %v2496_v53  ;;  %v2630_v58 = vrot.slane %v2496_v53, 6 }
0x2747   :  { %3733 = vtanh.f32 %v2510_v25  ;;  %v2644_v61 = vrot.slane %v2510_v25, 6 }
0x2750   :  { %v3732_v16 = vpop.eup %3731 }
0x2751   :  { %v3734_v22 = vpop.eup %3733  ;;  %2513 = vrot.lane.b32.xlu0 %v3732_v16, %s3824_s1 }
0x2752   :  { %2519 = vrot.lane.b32.xlu1 %v3734_v22, %s3824_s1 }
0x27c3   :  { %v2514_v60 = vpop.permute.xlu0 %2513 }
0x27c4   :  { %v2516_v27 = vmul.f32 %v3728_v7, %v2514_v60  ;;  %v2520_v29 = vpop.permute.xlu1 %2519 }
0x27c5   :  { %v2522_v32 = vmul.f32 %v3730_v11, %v2520_v29 }
0x27c6   :  { %2524 = vrot.lane.b32.xlu0 %v2516_v27, %s3825_s19 }
0x27c7   :  { %2528 = vrot.lane.b32.xlu1 %v2522_v32, %s3824_s1 }
0x2838   :  { %v2525_v35 = vpop.permute.xlu0 %2524 }
0x2839   :  { %v2529_v39 = vpop.permute.xlu1 %2528 }
0x283a   :  { %v2531_v41 = vsel %vm394_vm5, %v2525_v35, %v2529_v39 }
0x283b   :  { %v2533_v42 = vrot.slane %v2531_v41, 2 }
0x283d   :  { %3107 = vmatmul.mubr.msk.f32.vlgmr.msra.gmra.mrb[16].mxu0 %vm261_vm6, %v2533_v42 }
0x283e   :  { %3175 = vmatprep.mubr.msk.f32.mxu0 %vm3828_vm10, %v3823_v9 }
0x2910   :  { %v2602_v0 = vpop.f32.mrb[16].mxu0 }
0x2911   :  { %v2609_v1 = vrot.slane %v2602_v0, 4  ;;  %v2604_v47 = vpop.f32.mrb[17].mxu0 }
0x2912   :  { %v2610_v50 = vrot.slane %v2604_v47, 4 }
0x2913   :  { %v2613_v51 = vadd.f32 %v2609_v1, %v4278_v20 }
0x2914   :  { %v2614_v54 = vadd.f32 %v2610_v50, %v2243_v18 }
0x2915   :  { %3735 = vtanh.f32 %v2613_v51  ;;  %v3108_v10 = vmul.f32 -1.442695, %v2613_v51 }
0x2916   :  { %3737 = vtanh.f32 %v2614_v54  ;;  %v3109_v55 = vmul.f32 -1.442695, %v2614_v54 }
0x2917   :  { %3739 = vpow2.f32 %v3108_v10 }
0x2918   :  { %3741 = vpow2.f32 %v3109_v55 }
0x291f   :  { %v3736_v59 = vpop.eup %3735 }
0x2920   :  { %v3738_v40 = vpop.eup %3737  ;;  %2634 = vrot.lane.b32.xlu0 %v3736_v59, %s3824_s1 }
0x2921   :  { %2648 = vrot.lane.b32.xlu1 %v3738_v40, %s3824_s1  ;;  %v3740_v17 = vpop.eup %3739 }
0x2922   :  { %v3742_v49 = vpop.eup %3741  ;;  %v2621_v21 = vadd.f32 1.0, %v3740_v17 }
0x2923   :  { %v2622_v5 = vadd.f32 1.0, %v3742_v49 }
0x2924   :  { %3743 = vrcp.f32 %v2621_v21 }
0x2925   :  { %3745 = vrcp.f32 %v2622_v5 }
0x292e   :  { %v3744_v36 = vpop.eup %3743 }
0x292f   :  { %v3746_v63 = vpop.eup %3745  ;;  %v2632_v2 = vmul.f32 %v3744_v36, %v2630_v58 }
0x2930   :  { %v2646_v8 = vmul.f32 %v3746_v63, %v2644_v61 }
0x2992   :  { %v2635_v18 = vpop.permute.xlu0 %2634 }
0x2993   :  { %v2637_v28 = vmul.f32 %v3744_v36, %v2635_v18  ;;  %v2649_v57 = vpop.permute.xlu1 %2648 }
0x2994   :  { %v2651_v4 = vmul.f32 %v3746_v63, %v2649_v57 }
0x2995   :  { %2639 = vrot.lane.b32.xlu0 %v2637_v28, %s3825_s19 }
0x2996   :  { %2653 = vrot.lane.b32.xlu1 %v2651_v4, %s3825_s19 }
0x2a07   :  { %v2640_v13 = vpop.permute.xlu0 %2639 }
0x2a08   :  { %v2642_v33 = vadd.f32 %v2640_v13, %v2632_v2  ;;  %v2654_v26 = vpop.permute.xlu1 %2653 }
0x2a09   :  { %v2656_v30 = vadd.f32 %v2654_v26, %v2646_v8 }
0x2a0a   :  { %3747 = vtanh.f32 %v2642_v33  ;;  %v2776_v39 = vrot.slane %v2642_v33, 6 }
0x2a0b   :  { %3749 = vtanh.f32 %v2656_v30  ;;  %v2790_v41 = vrot.slane %v2656_v30, 6 }
0x2a14   :  { %v3748_v38 = vpop.eup %3747 }
0x2a15   :  { %v3750_v44 = vpop.eup %3749  ;;  %2659 = vrot.lane.b32.xlu0 %v3748_v38, %s3824_s1 }
0x2a16   :  { %2665 = vrot.lane.b32.xlu1 %v3750_v44, %s3824_s1 }
0x2a87   :  { %v2660_v45 = vpop.permute.xlu0 %2659 }
0x2a88   :  { %v2662_v24 = vmul.f32 %v3744_v36, %v2660_v45  ;;  %v2666_v6 = vpop.permute.xlu1 %2665  ;;  %v2869_v45 = vld [vmem:[%s4509_s3 + $0x2] sm:$0xff] }
0x2a89   :  { %v2668_v56 = vmul.f32 %v3746_v63, %v2666_v6 }
0x2a8a   :  { %2670 = vrot.lane.b32.xlu0 %v2662_v24, %s3825_s19  ;;  %v2870_v24 = vld [vmem:[%s4509_s3 + $0xa] sm:$0xff] }
0x2a8b   :  { %2674 = vrot.lane.b32.xlu1 %v2668_v56, %s3824_s1  ;;  %v3478_v6 = vpack.c.bf16 %v2870_v24, %v2869_v45  ;;  %v3827_v56 = vmov 0.0|0.0  }
0x2a8c   :  { %3477 = vmatprep.subr.bf16.mxu0 %v3827_v56  ;;  %3489 = vmatprep.subr.bf16.mxu1 %v3827_v56 }
0x2a8d   :  { %3479 = vmatpush3.bf16.msra.mxu0 %v3478_v6 }
0x2a8e   :  { %3480 = vmatprep.subr.bf16.mxu0 %v3827_v56 }
0x2afc   :  { %v2671_v7 = vpop.permute.xlu0 %2670 }
0x2afd   :  { %v2675_v31 = vpop.permute.xlu1 %2674 }
0x2afe   :  { %v2677_v11 = vsel %vm394_vm5, %v2671_v7, %v2675_v31  ;;  %v2871_v7 = vld [vmem:[%s4509_s3 + $0x12] sm:$0xff]  ;;  %v2872_v31 = vld [vmem:[%s4509_s3 + $0x1a] sm:$0xff] }
0x2aff   :  { %v2679_v34 = vrot.slane %v2677_v11, 4  ;;  %v3481_v11 = vpack.c.bf16 %v2872_v31, %v2871_v7 }
0x2b01   :  { %3110 = vmatmul.mubr.msk.f32.vlgmr.msra.gmra.mrb[22].mxu1 %vm261_vm6, %v2679_v34  ;;  %3482 = vmatpush3.bf16.msra.mxu0 %v3481_v11  ;;  %v2873_v34 = vld [vmem:[%s4509_s3 + $0x22] sm:$0xff] }
0x2b02   :  { %3483 = vmatprep.subr.bf16.mxu0 %v3827_v56  ;;  %3186 = vmatprep.mubr.msk.f32.mxu1 %vm3828_vm10, %v3823_v9  ;;  %v2957_v9 = vld [vmem:[%s4509_s3 + $0x43] sm:$0xff] }
0x2bd4   :  { %v2748_v37 = vpop.f32.mrb[22].mxu1 }
0x2bd5   :  { %v2755_v43 = vrot.slane %v2748_v37, 2  ;;  %v2750_v46 = vpop.f32.mrb[23].mxu1  ;;  %v2874_v37 = vld [vmem:[%s4509_s3 + $0x2a] sm:$0xff] }
0x2bd6   :  { %v2756_v12 = vrot.slane %v2750_v46, 2  ;;  %v2875_v46 = vld [vmem:[%s4509_s3 + $0x32] sm:$0xff] }
0x2bd7   :  { %v2759_v15 = vadd.f32 %v2755_v43, %v4278_v20  ;;  %v3484_v43 = vpack.c.bf16 %v2874_v37, %v2873_v34 }
0x2bd8   :  { %v2760_v19 = vadd.f32 %v2756_v12, %v2385_v3  ;;  %v2876_v12 = vld [vmem:[%s4509_s3 + $0x3a] sm:$0xff] }
0x2bd9   :  { %3751 = vtanh.f32 %v2759_v15  ;;  %v3111_v23 = vmul.f32 -1.442695, %v2759_v15  ;;  %3485 = vmatpush3.bf16.msra.mxu0 %v3484_v43  ;;  %v3487_v15 = vpack.c.bf16 %v2876_v12, %v2875_v46 }
0x2bda   :  { %3753 = vtanh.f32 %v2760_v19  ;;  %v3112_v25 = vmul.f32 -1.442695, %v2760_v19  ;;  %3486 = vmatprep.subr.bf16.mxu0 %v3827_v56 }
0x2bdb   :  { %3755 = vpow2.f32 %v3111_v23 }
0x2bdc   :  { %3757 = vpow2.f32 %v3112_v25  ;;  %v3113_v25 = vld [vmem:[%s4509_s3] ss:$0 sm:$0xff] }
0x2bdd   :  { %3488 = vmatpush3.bf16.msra.mxu0 %v3487_v15 }
0x2be3   :  { %v3752_v52 = vpop.eup %3751 }
0x2be4   :  { %v3754_v53 = vpop.eup %3753  ;;  %2780 = vrot.lane.b32.xlu0 %v3752_v52, %s3824_s1 }
0x2be5   :  { %2794 = vrot.lane.b32.xlu1 %v3754_v53, %s3824_s1  ;;  %v3756_v16 = vpop.eup %3755 }
0x2be6   :  { %v3758_v22 = vpop.eup %3757  ;;  %v2767_v60 = vadd.f32 1.0, %v3756_v16 }
0x2be7   :  { %v2768_v27 = vadd.f32 1.0, %v3758_v22  ;;  %v3114_v22 = vld [vmem:[%s4509_s3 + $0x1] ss:$0 sm:$0xff] }
0x2be8   :  { %3759 = vrcp.f32 %v2767_v60 }
0x2be9   :  { %3761 = vrcp.f32 %v2768_v27 }
0x2bf2   :  { %v3760_v14 = vpop.eup %3759 }
0x2bf3   :  { %v3762_v3 = vpop.eup %3761  ;;  %v2778_v42 = vmul.f32 %v3760_v14, %v2776_v39  ;;  %v3115_v39 = vld [vmem:[%s4509_s3 + $0x42] ss:$0 sm:$0xff] }
0x2bf4   :  { %v2792_v1 = vmul.f32 %v3762_v3, %v2790_v41 }
0x2c56   :  { %v2781_v20 = vpop.permute.xlu0 %2780 }
0x2c57   :  { %v2783_v29 = vmul.f32 %v3760_v14, %v2781_v20  ;;  %v2795_v32 = vpop.permute.xlu1 %2794  ;;  %v2958_v20 = vld [vmem:[%s4509_s3 + $0x4b] sm:$0xff] }
0x2c58   :  { %v2797_v35 = vmul.f32 %v3762_v3, %v2795_v32  ;;  %v2960_v32 = vld [vmem:[%s4509_s3 + $0x5b] sm:$0xff] }
0x2c59   :  { %2785 = vrot.lane.b32.xlu0 %v2783_v29, %s3825_s19  ;;  %v3490_v29 = vpack.c.bf16 %v2958_v20, %v2957_v9 }
0x2c5a   :  { %2799 = vrot.lane.b32.xlu1 %v2797_v35, %s3825_s19 }
0x2c5b   :  { %3491 = vmatpush3.bf16.msra.mxu1 %v3490_v29 }
0x2c5c   :  { %3492 = vmatprep.subr.bf16.mxu1 %v3827_v56 }
0x2ccb   :  { %v2786_v0 = vpop.permute.xlu0 %2785 }
0x2ccc   :  { %v2788_v47 = vadd.f32 %v2786_v0, %v2778_v42  ;;  %v2800_v50 = vpop.permute.xlu1 %2799 }
0x2ccd   :  { %v2802_v51 = vadd.f32 %v2800_v50, %v2792_v1 }
0x2cce   :  { %3763 = vtanh.f32 %v2788_v47  ;;  %v3117_v47 = vld [vmem:[%s4509_s3 + $0x63] ss:$0 sm:$0xff] }
0x2ccf   :  { %3765 = vtanh.f32 %v2802_v51 }
0x2cd8   :  { %v3764_v54 = vpop.eup %3763 }
0x2cd9   :  { %v3766_v59 = vpop.eup %3765  ;;  %2805 = vrot.lane.b32.xlu0 %v3764_v54, %s3824_s1 }
0x2cda   :  { %2811 = vrot.lane.b32.xlu1 %v3766_v59, %s3824_s1 }
0x2cdd   :  { %1409 = vrot.lane.b32.xlu0 %v4218_v62, %s3825_s19 }
0x2cde   :  { %1413 = vrot.lane.b32.xlu1 %v4223_v48, %s3824_s1 }
0x2d4b   :  { %v2806_v40 = vpop.permute.xlu0 %2805 }
0x2d4c   :  { %v2808_v10 = vmul.f32 %v3760_v14, %v2806_v40  ;;  %v2812_v55 = vpop.permute.xlu1 %2811 }
0x2d4d   :  { %v2814_v17 = vmul.f32 %v3762_v3, %v2812_v55  ;;  %v2959_v3 = vld [vmem:[%s4509_s3 + $0x53] sm:$0xff] }
0x2d4e   :  { %2816 = vrot.lane.b32.xlu0 %v2808_v10, %s3825_s19  ;;  %v3493_v35 = vpack.c.bf16 %v2960_v32, %v2959_v3 }
0x2d4f   :  { %2820 = vrot.lane.b32.xlu1 %v2814_v17, %s3824_s1  ;;  %v1410_v49 = vpop.permute.xlu0 %1409 }
0x2d50   :  { %v1414_v21 = vpop.permute.xlu1 %1413  ;;  %3494 = vmatpush3.bf16.msra.mxu1 %v3493_v35 }
0x2d51   :  { %v1416_v18 = vsel %vm394_vm5, %v1410_v49, %v1414_v21 }
0x2dc0   :  { %v2817_v5 = vpop.permute.xlu0 %2816 }
0x2dc1   :  { %v2821_v36 = vpop.permute.xlu1 %2820 }
0x2dc2   :  { %v2823_v63 = vsel %vm394_vm5, %v2817_v5, %v2821_v36 }
0x2dc3   :  { %v2824_v62 = vmax.f32 %v1416_v18, %v2823_v63  ;;  %v2830_v28 = vadd.f32 %v2823_v63, %v1416_v18 }
0x2dc5   :  { %2832 = vrot.lane.b32.xlu0 %v2830_v28, %s3826_s20  ;;  %2826 = vrot.lane.b32.xlu1 %v2824_v62, %s3826_s20 }
0x2e37   :  { %v2833_v48 = vpop.permute.xlu0 %2832  ;;  %v2827_v58 = vpop.permute.xlu1 %2826 }
0x2e38   :  { %v2835_v57 = vadd.f32 %v2833_v48, %v2830_v28  ;;  %v2829_v61 = vmax.f32 %v2824_v62, %v2827_v58 }
0x2e3a   :  { %v2836_v4 = vmul.f32 0.25, %v2835_v57 }
0x2e3c   :  { %2838 = vrot.lane.b32.xlu0 %v2836_v4, %s3825_s19 }
0x2eae   :  { %v2839_v2 = vpop.permute.xlu0 %2838 }
0x2eaf   :  { %v2841_v13 = vsel %vm394_vm5, %v2829_v61, %v2839_v2 }
0x2eb0   :  { %v2843_v8 = vsel %vm2842_vm9, %v2841_v13, 0.0 }
0x2eb1   :  { %2844 = vadd.xlane.f32.xlu1 %v2843_v8 }
0x2f3e   :  { %v2845_v33 = vpop.xlane.xlu1 %2844 }
0x2f3f   :  { %v2847_v26 = vmul.f32 0.015625, %v2845_v33 }
0x2f41   :  { %v2848_v30 = vsub.f32 %v2841_v13, %v2847_v26 }
0x2f43   :  { %v2849_v38 = vmul.f32 %v2848_v30, %v2848_v30 }
0x2f45   :  { %v2850_v44 = vsel %vm2842_vm9, %v2849_v38, 0.0 }
0x2f46   :  { %2851 = vadd.xlane.f32.xlu0 %v2850_v44 }
0x2fd3   :  { %v2852_v19 = vpop.xlane.xlu0 %2851 }
0x2fd4   :  { %v2853_v52 = vmul.f32 0.015625, %v2852_v19 }
0x2fd6   :  { %v2854_v53 = vadd.f32 1e-05, %v2853_v52 }
0x2fd8   :  { %3767 = vrsqrt.f32 %v2854_v53 }
0x2fe2   :  { %v3768_v23 = vpop.eup %3767 }
0x2fe3   :  { %v2856_v16 = vmul.f32 %v3768_v23, %v2848_v30 }
0x2fe5   :  { %v2862_v60 = vmul.f32 %v3113_v25, %v2856_v16 }
0x2fe7   :  { %v2868_v27 = vadd.f32 %v3114_v22, %v2862_v60 }
0x2fe9   :  { %v2883_v14 = vrot.slane %v2868_v27, 6 }
0x2feb   :  { %3176 = vmatmul.mubr.msk.f32.vlgmr.msra.gmra.mrb[18].mxu0 %vm261_vm6, %v2883_v14 }
0x30be   :  { %v2952_v41 = vpop.f32.mrb[18].mxu0 }
0x30bf   :  { %v2953_v42 = vadd.f32 %v3115_v39, %v2952_v41  ;;  %v3177_v0 = vpop.f32.mrb[19].mxu0 }
0x30c1   :  { %3769 = vtanh.f32 %v2953_v42 }
0x30cb   :  { %v3770_v1 = vpop.eup %3769 }
0x30cc   :  { %3187 = vmatmul.mubr.msk.f32.vlgmr.msra.gmra.mrb[24].mxu1 %vm394_vm5, %v3770_v1 }
0x319f   :  { %v3035_v50 = vpop.f32.mrb[24].mxu1 }
0x31a0   :  { %v3036_v51 = vadd.f32 %v3117_v47, %v3035_v50  ;;  %v3188_v54 = vpop.f32.mrb[25].mxu1 }
0x31a2   :  { %3040 = vst.msk [vmem:[#allocation5] sm:$0x3] %vm3039_vm11, %v3036_v51 }
0x31a3   :  { %3804 = shalt.err (!%p3801_p12)
}
0x31a4   :  { %s3805_s29 = scalar_lea.hbm %s4510_s4, 32 }
0x31a5   :  { %p3806_p13 = scmp.ne.s32.totalorder %s4510_s4, %s3805_s29  ;;  %p3809_p0 = scmp.lt.u32.totalorder %s3805_s29, %s4510_s4 }
0x31a7   :  { %p3811_p1 = pnand %p3809_p0, %p3806_p13 }
0x31a9   :  { %3814 = shalt.err (!%p3811_p1)
}
0x31aa   :  { %3050 = dma.vmem_to_hbm [thread:$0]  %s3048_s25, 32, %s4510_s4, [#allocation4]  }
0x31ab   :  { %3817 = dma.done.wait [#allocation4], 32  }
0x31ac   :  { %3818 = vsyncadd [#allocation4], 4294967264 }
0x31ad   :  { %3054 = vsyncpa [#allocation3], 1 }
0x31ae   :  { %3055 = vsyncpa [#allocation4], 1 }

</bundles_post_ra>
